<compile_context>
chip_gen: v6e
topology: v6e:2x2x1
jax: 0.10.0
libtpu: 0.0.40
codegen_flags: <defaults>
</compile_context>

<pallas_src>
import functools
import math

import numpy as np

import jax
import jax.numpy as jnp
from jax.experimental import pallas as pl
from jax.experimental.pallas import tpu as pltpu


def _gaussian_kernel_weights(kernel_size: int, sigma: float) -> np.ndarray:
    """Matches the PyTorch construction (normalization removes the prefactor)."""
    ax = np.arange(kernel_size)
    yy, xx = np.meshgrid(ax, ax, indexing="ij")          # torch.meshgrid default 'ij'
    mean = (kernel_size - 1) // 2
    k = np.exp(-(((yy - mean) ** 2 + (xx - mean) ** 2) / float(sigma) ** 2) / 2.0)
    k = k / k.sum()
    return k.astype(np.float64)                           # (K, K)


def _gauss_conv_kernel(x_ref, o_ref, *, ksize, weights, out_h, out_w):
    # x_ref: (1, C, H+2p, W+2p) padded input block, o_ref: (1, C, H, W)
    x = x_ref[0].astype(jnp.float32)                       # (C, H_pad, W_pad)
    acc = jnp.zeros(o_ref.shape[1:], dtype=jnp.float32)    # (C, H, W) f32 accumulator
    # Static unrolled loop over the K*K taps; weights are compile-time constants.
    for dy in range(ksize):
        for dx in range(ksize):
            w = weights[dy * ksize + dx]
            acc = acc + x[:, dy:dy + out_h, dx:dx + out_w] * w
    o_ref[0] = acc.astype(o_ref.dtype)


def gaussian_conv2d(x, *, kernel_size=9, sigma=1):
    """x: (B, C, H, W).  Returns F.conv2d(x, gaussian, groups=C, padding=K//2)."""
    B, C, H, W = x.shape
    pad = kernel_size // 2
    h_pad, w_pad = H + 2 * pad, W + 2 * pad

    # Zero padding (layout plumbing) done once in the wrapper.
    x_padded = jnp.pad(x, ((0, 0), (0, 0), (pad, pad), (pad, pad)))

    weights = tuple(float(v) for v in _gaussian_kernel_weights(kernel_size, sigma).ravel())
    kernel = functools.partial(
        _gauss_conv_kernel, ksize=kernel_size, weights=weights, out_h=H, out_w=W)

    # TODO(synk): for W not a multiple of 128 the output stores are masked
    # (vst.msk); a production version for large images would tile H and pad W
    # to a lane-dense multiple of 128 in the wrapper.
    return pl.pallas_call(
        kernel,
        out_shape=jax.ShapeDtypeStruct((B, C, H, W), x.dtype),
        grid=(B,),
        in_specs=[
            pl.BlockSpec((1, C, h_pad, w_pad), lambda b: (b, 0, 0, 0)),
        ],
        out_specs=pl.BlockSpec((1, C, H, W), lambda b: (b, 0, 0, 0)),
        compiler_params=pltpu.CompilerParams(
            dimension_semantics=("parallel",)),
    )(x_padded)


def _reference(x, *, kernel_size=9, sigma=1):
    """Pure-JAX reference mirroring F.conv2d(groups=C, padding=K//2)."""
    B, C, H, W = x.shape
    pad = kernel_size // 2
    k = _gaussian_kernel_weights(kernel_size, sigma)
    w = jnp.asarray(k, dtype=x.dtype).reshape(1, 1, kernel_size, kernel_size)
    w = jnp.tile(w, (C, 1, 1, 1))                          # (C, 1, K, K) depthwise
    return jax.lax.conv_general_dilated(
        x, w,
        window_strides=(1, 1),
        padding=[(pad, pad), (pad, pad)],
        dimension_numbers=("NCHW", "OIHW", "NCHW"),
        feature_group_count=C)


if __name__ == "__main__":
    B, C, H, W = 2, 4, 16, 16
    kernel_size, sigma = 9, 1

    key = jax.random.PRNGKey(0)
    x = jax.random.normal(key, (B, C, H, W), dtype=jnp.float32)

    out = gaussian_conv2d(x, kernel_size=kernel_size, sigma=sigma)
    out = jax.block_until_ready(out)

    ref = _reference(x, kernel_size=kernel_size, sigma=sigma)
    assert out.shape == (B, C, H, W)
    assert jnp.allclose(out, ref, atol=1e-5, rtol=1e-5), "mismatch vs reference"

    print("KERNEL_OK")
</pallas_src>

<mosaic_0001>
module attributes {stable_mosaic.version = 11 : i64} {
  func.func @_gauss_conv_kernel(%arg0: i32, %arg1: memref<1x4x24x24xf32, #tpu.memory_space<vmem>>, %arg2: memref<1x4x16x16xf32, #tpu.memory_space<vmem>>) attributes {dimension_semantics = [#tpu.dimension_semantics<parallel>], iteration_bounds = array<i64: 2>, scalar_prefetch = 0 : i64, scratch_operands = 0 : i64, tpu.core_type = #tpu.core_type<tc>, window_params = [{transform_indices = @transform_0, window_bounds = array<i64: 1, 4, 24, 24>}, {transform_indices = @transform_1, window_bounds = array<i64: 1, 4, 16, 16>}]} {
    %c0 = arith.constant 0 : index
    %c0_0 = arith.constant 0 : index
    %c0_1 = arith.constant 0 : index
    %c0_2 = arith.constant 0 : index
    %0 = vector.load %arg1[%c0, %c0_0, %c0_1, %c0_2] : memref<1x4x24x24xf32, #tpu.memory_space<vmem>>, vector<1x4x24x24xf32>
    %1 = vector.shape_cast %0 : vector<1x4x24x24xf32> to vector<4x24x24xf32>
    %cst = arith.constant 0.000000e+00 : f32
    %2 = vector.broadcast %cst : f32 to vector<4x16x16xf32>
    %3 = vector.extract_strided_slice %1 {offsets = [0, 0, 0], sizes = [4, 16, 16], strides = [1, 1, 1]} : vector<4x24x24xf32> to vector<4x16x16xf32>
    %cst_3 = arith.constant 1.79106365E-8 : f32
    %4 = vector.broadcast %cst_3 : f32 to vector<4x16x16xf32>
    %5 = arith.mulf %3, %4 : vector<4x16x16xf32>
    %6 = arith.addf %2, %5 : vector<4x16x16xf32>
    %7 = vector.extract_strided_slice %1 {offsets = [0, 0, 1], sizes = [4, 16, 16], strides = [1, 1, 1]} : vector<4x24x24xf32> to vector<4x16x16xf32>
    %cst_4 = arith.constant 5.93118784E-7 : f32
    %8 = vector.broadcast %cst_4 : f32 to vector<4x16x16xf32>
    %9 = arith.mulf %7, %8 : vector<4x16x16xf32>
    %10 = arith.addf %6, %9 : vector<4x16x16xf32>
    %11 = vector.extract_strided_slice %1 {offsets = [0, 0, 2], sizes = [4, 16, 16], strides = [1, 1, 1]} : vector<4x24x24xf32> to vector<4x16x16xf32>
    %cst_5 = arith.constant 7.2256662E-6 : f32
    %12 = vector.broadcast %cst_5 : f32 to vector<4x16x16xf32>
    %13 = arith.mulf %11, %12 : vector<4x16x16xf32>
    %14 = arith.addf %10, %13 : vector<4x16x16xf32>
    %15 = vector.extract_strided_slice %1 {offsets = [0, 0, 3], sizes = [4, 16, 16], strides = [1, 1, 1]} : vector<4x24x24xf32> to vector<4x16x16xf32>
    %cst_6 = arith.constant 3.23831882E-5 : f32
    %16 = vector.broadcast %cst_6 : f32 to vector<4x16x16xf32>
    %17 = arith.mulf %15, %16 : vector<4x16x16xf32>
    %18 = arith.addf %14, %17 : vector<4x16x16xf32>
    %19 = vector.extract_strided_slice %1 {offsets = [0, 0, 4], sizes = [4, 16, 16], strides = [1, 1, 1]} : vector<4x24x24xf32> to vector<4x16x16xf32>
    %cst_7 = arith.constant 5.33908533E-5 : f32
    %20 = vector.broadcast %cst_7 : f32 to vector<4x16x16xf32>
    %21 = arith.mulf %19, %20 : vector<4x16x16xf32>
    %22 = arith.addf %18, %21 : vector<4x16x16xf32>
    %23 = vector.extract_strided_slice %1 {offsets = [0, 0, 5], sizes = [4, 16, 16], strides = [1, 1, 1]} : vector<4x24x24xf32> to vector<4x16x16xf32>
    %cst_8 = arith.constant 3.23831882E-5 : f32
    %24 = vector.broadcast %cst_8 : f32 to vector<4x16x16xf32>
    %25 = arith.mulf %23, %24 : vector<4x16x16xf32>
    %26 = arith.addf %22, %25 : vector<4x16x16xf32>
    %27 = vector.extract_strided_slice %1 {offsets = [0, 0, 6], sizes = [4, 16, 16], strides = [1, 1, 1]} : vector<4x24x24xf32> to vector<4x16x16xf32>
    %cst_9 = arith.constant 7.2256662E-6 : f32
    %28 = vector.broadcast %cst_9 : f32 to vector<4x16x16xf32>
    %29 = arith.mulf %27, %28 : vector<4x16x16xf32>
    %30 = arith.addf %26, %29 : vector<4x16x16xf32>
    %31 = vector.extract_strided_slice %1 {offsets = [0, 0, 7], sizes = [4, 16, 16], strides = [1, 1, 1]} : vector<4x24x24xf32> to vector<4x16x16xf32>
    %cst_10 = arith.constant 5.93118784E-7 : f32
    %32 = vector.broadcast %cst_10 : f32 to vector<4x16x16xf32>
    %33 = arith.mulf %31, %32 : vector<4x16x16xf32>
    %34 = arith.addf %30, %33 : vector<4x16x16xf32>
    %35 = vector.extract_strided_slice %1 {offsets = [0, 0, 8], sizes = [4, 16, 16], strides = [1, 1, 1]} : vector<4x24x24xf32> to vector<4x16x16xf32>
    %cst_11 = arith.constant 1.79106365E-8 : f32
    %36 = vector.broadcast %cst_11 : f32 to vector<4x16x16xf32>
    %37 = arith.mulf %35, %36 : vector<4x16x16xf32>
    %38 = arith.addf %34, %37 : vector<4x16x16xf32>
    %39 = vector.extract_strided_slice %1 {offsets = [0, 1, 0], sizes = [4, 16, 16], strides = [1, 1, 1]} : vector<4x24x24xf32> to vector<4x16x16xf32>
    %cst_12 = arith.constant 5.93118784E-7 : f32
    %40 = vector.broadcast %cst_12 : f32 to vector<4x16x16xf32>
    %41 = arith.mulf %39, %40 : vector<4x16x16xf32>
    %42 = arith.addf %38, %41 : vector<4x16x16xf32>
    %43 = vector.extract_strided_slice %1 {offsets = [0, 1, 1], sizes = [4, 16, 16], strides = [1, 1, 1]} : vector<4x24x24xf32> to vector<4x16x16xf32>
    %cst_13 = arith.constant 1.96413966E-5 : f32
    %44 = vector.broadcast %cst_13 : f32 to vector<4x16x16xf32>
    %45 = arith.mulf %43, %44 : vector<4x16x16xf32>
    %46 = arith.addf %42, %45 : vector<4x16x16xf32>
    %47 = vector.extract_strided_slice %1 {offsets = [0, 1, 2], sizes = [4, 16, 16], strides = [1, 1, 1]} : vector<4x24x24xf32> to vector<4x16x16xf32>
    %cst_14 = arith.constant 2.39281202E-4 : f32
    %48 = vector.broadcast %cst_14 : f32 to vector<4x16x16xf32>
    %49 = arith.mulf %47, %48 : vector<4x16x16xf32>
    %50 = arith.addf %46, %49 : vector<4x16x16xf32>
    %51 = vector.extract_strided_slice %1 {offsets = [0, 1, 3], sizes = [4, 16, 16], strides = [1, 1, 1]} : vector<4x24x24xf32> to vector<4x16x16xf32>
    %cst_15 = arith.constant 0.00107238395 : f32
    %52 = vector.broadcast %cst_15 : f32 to vector<4x16x16xf32>
    %53 = arith.mulf %51, %52 : vector<4x16x16xf32>
    %54 = arith.addf %50, %53 : vector<4x16x16xf32>
    %55 = vector.extract_strided_slice %1 {offsets = [0, 1, 4], sizes = [4, 16, 16], strides = [1, 1, 1]} : vector<4x24x24xf32> to vector<4x16x16xf32>
    %cst_16 = arith.constant 0.00176806224 : f32
    %56 = vector.broadcast %cst_16 : f32 to vector<4x16x16xf32>
    %57 = arith.mulf %55, %56 : vector<4x16x16xf32>
    %58 = arith.addf %54, %57 : vector<4x16x16xf32>
    %59 = vector.extract_strided_slice %1 {offsets = [0, 1, 5], sizes = [4, 16, 16], strides = [1, 1, 1]} : vector<4x24x24xf32> to vector<4x16x16xf32>
    %cst_17 = arith.constant 0.00107238395 : f32
    %60 = vector.broadcast %cst_17 : f32 to vector<4x16x16xf32>
    %61 = arith.mulf %59, %60 : vector<4x16x16xf32>
    %62 = arith.addf %58, %61 : vector<4x16x16xf32>
    %63 = vector.extract_strided_slice %1 {offsets = [0, 1, 6], sizes = [4, 16, 16], strides = [1, 1, 1]} : vector<4x24x24xf32> to vector<4x16x16xf32>
    %cst_18 = arith.constant 2.39281202E-4 : f32
    %64 = vector.broadcast %cst_18 : f32 to vector<4x16x16xf32>
    %65 = arith.mulf %63, %64 : vector<4x16x16xf32>
    %66 = arith.addf %62, %65 : vector<4x16x16xf32>
    %67 = vector.extract_strided_slice %1 {offsets = [0, 1, 7], sizes = [4, 16, 16], strides = [1, 1, 1]} : vector<4x24x24xf32> to vector<4x16x16xf32>
    %cst_19 = arith.constant 1.96413966E-5 : f32
    %68 = vector.broadcast %cst_19 : f32 to vector<4x16x16xf32>
    %69 = arith.mulf %67, %68 : vector<4x16x16xf32>
    %70 = arith.addf %66, %69 : vector<4x16x16xf32>
    %71 = vector.extract_strided_slice %1 {offsets = [0, 1, 8], sizes = [4, 16, 16], strides = [1, 1, 1]} : vector<4x24x24xf32> to vector<4x16x16xf32>
    %cst_20 = arith.constant 5.93118784E-7 : f32
    %72 = vector.broadcast %cst_20 : f32 to vector<4x16x16xf32>
    %73 = arith.mulf %71, %72 : vector<4x16x16xf32>
    %74 = arith.addf %70, %73 : vector<4x16x16xf32>
    %75 = vector.extract_strided_slice %1 {offsets = [0, 2, 0], sizes = [4, 16, 16], strides = [1, 1, 1]} : vector<4x24x24xf32> to vector<4x16x16xf32>
    %cst_21 = arith.constant 7.2256662E-6 : f32
    %76 = vector.broadcast %cst_21 : f32 to vector<4x16x16xf32>
    %77 = arith.mulf %75, %76 : vector<4x16x16xf32>
    %78 = arith.addf %74, %77 : vector<4x16x16xf32>
    %79 = vector.extract_strided_slice %1 {offsets = [0, 2, 1], sizes = [4, 16, 16], strides = [1, 1, 1]} : vector<4x24x24xf32> to vector<4x16x16xf32>
    %cst_22 = arith.constant 2.39281202E-4 : f32
    %80 = vector.broadcast %cst_22 : f32 to vector<4x16x16xf32>
    %81 = arith.mulf %79, %80 : vector<4x16x16xf32>
    %82 = arith.addf %78, %81 : vector<4x16x16xf32>
    %83 = vector.extract_strided_slice %1 {offsets = [0, 2, 2], sizes = [4, 16, 16], strides = [1, 1, 1]} : vector<4x24x24xf32> to vector<4x16x16xf32>
    %cst_23 = arith.constant 0.00291504175 : f32
    %84 = vector.broadcast %cst_23 : f32 to vector<4x16x16xf32>
    %85 = arith.mulf %83, %84 : vector<4x16x16xf32>
    %86 = arith.addf %82, %85 : vector<4x16x16xf32>
    %87 = vector.extract_strided_slice %1 {offsets = [0, 2, 3], sizes = [4, 16, 16], strides = [1, 1, 1]} : vector<4x24x24xf32> to vector<4x16x16xf32>
    %cst_24 = arith.constant 0.0130643109 : f32
    %88 = vector.broadcast %cst_24 : f32 to vector<4x16x16xf32>
    %89 = arith.mulf %87, %88 : vector<4x16x16xf32>
    %90 = arith.addf %86, %89 : vector<4x16x16xf32>
    %91 = vector.extract_strided_slice %1 {offsets = [0, 2, 4], sizes = [4, 16, 16], strides = [1, 1, 1]} : vector<4x24x24xf32> to vector<4x16x16xf32>
    %cst_25 = arith.constant 0.0215394069 : f32
    %92 = vector.broadcast %cst_25 : f32 to vector<4x16x16xf32>
    %93 = arith.mulf %91, %92 : vector<4x16x16xf32>
    %94 = arith.addf %90, %93 : vector<4x16x16xf32>
    %95 = vector.extract_strided_slice %1 {offsets = [0, 2, 5], sizes = [4, 16, 16], strides = [1, 1, 1]} : vector<4x24x24xf32> to vector<4x16x16xf32>
    %cst_26 = arith.constant 0.0130643109 : f32
    %96 = vector.broadcast %cst_26 : f32 to vector<4x16x16xf32>
    %97 = arith.mulf %95, %96 : vector<4x16x16xf32>
    %98 = arith.addf %94, %97 : vector<4x16x16xf32>
    %99 = vector.extract_strided_slice %1 {offsets = [0, 2, 6], sizes = [4, 16, 16], strides = [1, 1, 1]} : vector<4x24x24xf32> to vector<4x16x16xf32>
    %cst_27 = arith.constant 0.00291504175 : f32
    %100 = vector.broadcast %cst_27 : f32 to vector<4x16x16xf32>
    %101 = arith.mulf %99, %100 : vector<4x16x16xf32>
    %102 = arith.addf %98, %101 : vector<4x16x16xf32>
    %103 = vector.extract_strided_slice %1 {offsets = [0, 2, 7], sizes = [4, 16, 16], strides = [1, 1, 1]} : vector<4x24x24xf32> to vector<4x16x16xf32>
    %cst_28 = arith.constant 2.39281202E-4 : f32
    %104 = vector.broadcast %cst_28 : f32 to vector<4x16x16xf32>
    %105 = arith.mulf %103, %104 : vector<4x16x16xf32>
    %106 = arith.addf %102, %105 : vector<4x16x16xf32>
    %107 = vector.extract_strided_slice %1 {offsets = [0, 2, 8], sizes = [4, 16, 16], strides = [1, 1, 1]} : vector<4x24x24xf32> to vector<4x16x16xf32>
    %cst_29 = arith.constant 7.2256662E-6 : f32
    %108 = vector.broadcast %cst_29 : f32 to vector<4x16x16xf32>
    %109 = arith.mulf %107, %108 : vector<4x16x16xf32>
    %110 = arith.addf %106, %109 : vector<4x16x16xf32>
    %111 = vector.extract_strided_slice %1 {offsets = [0, 3, 0], sizes = [4, 16, 16], strides = [1, 1, 1]} : vector<4x24x24xf32> to vector<4x16x16xf32>
    %cst_30 = arith.constant 3.23831882E-5 : f32
    %112 = vector.broadcast %cst_30 : f32 to vector<4x16x16xf32>
    %113 = arith.mulf %111, %112 : vector<4x16x16xf32>
    %114 = arith.addf %110, %113 : vector<4x16x16xf32>
    %115 = vector.extract_strided_slice %1 {offsets = [0, 3, 1], sizes = [4, 16, 16], strides = [1, 1, 1]} : vector<4x24x24xf32> to vector<4x16x16xf32>
    %cst_31 = arith.constant 0.00107238395 : f32
    %116 = vector.broadcast %cst_31 : f32 to vector<4x16x16xf32>
    %117 = arith.mulf %115, %116 : vector<4x16x16xf32>
    %118 = arith.addf %114, %117 : vector<4x16x16xf32>
    %119 = vector.extract_strided_slice %1 {offsets = [0, 3, 2], sizes = [4, 16, 16], strides = [1, 1, 1]} : vector<4x24x24xf32> to vector<4x16x16xf32>
    %cst_32 = arith.constant 0.0130643109 : f32
    %120 = vector.broadcast %cst_32 : f32 to vector<4x16x16xf32>
    %121 = arith.mulf %119, %120 : vector<4x16x16xf32>
    %122 = arith.addf %118, %121 : vector<4x16x16xf32>
    %123 = vector.extract_strided_slice %1 {offsets = [0, 3, 3], sizes = [4, 16, 16], strides = [1, 1, 1]} : vector<4x24x24xf32> to vector<4x16x16xf32>
    %cst_33 = arith.constant 0.058550179 : f32
    %124 = vector.broadcast %cst_33 : f32 to vector<4x16x16xf32>
    %125 = arith.mulf %123, %124 : vector<4x16x16xf32>
    %126 = arith.addf %122, %125 : vector<4x16x16xf32>
    %127 = vector.extract_strided_slice %1 {offsets = [0, 3, 4], sizes = [4, 16, 16], strides = [1, 1, 1]} : vector<4x24x24xf32> to vector<4x16x16xf32>
    %cst_34 = arith.constant 0.096532926 : f32
    %128 = vector.broadcast %cst_34 : f32 to vector<4x16x16xf32>
    %129 = arith.mulf %127, %128 : vector<4x16x16xf32>
    %130 = arith.addf %126, %129 : vector<4x16x16xf32>
    %131 = vector.extract_strided_slice %1 {offsets = [0, 3, 5], sizes = [4, 16, 16], strides = [1, 1, 1]} : vector<4x24x24xf32> to vector<4x16x16xf32>
    %cst_35 = arith.constant 0.058550179 : f32
    %132 = vector.broadcast %cst_35 : f32 to vector<4x16x16xf32>
    %133 = arith.mulf %131, %132 : vector<4x16x16xf32>
    %134 = arith.addf %130, %133 : vector<4x16x16xf32>
    %135 = vector.extract_strided_slice %1 {offsets = [0, 3, 6], sizes = [4, 16, 16], strides = [1, 1, 1]} : vector<4x24x24xf32> to vector<4x16x16xf32>
    %cst_36 = arith.constant 0.0130643109 : f32
    %136 = vector.broadcast %cst_36 : f32 to vector<4x16x16xf32>
    %137 = arith.mulf %135, %136 : vector<4x16x16xf32>
    %138 = arith.addf %134, %137 : vector<4x16x16xf32>
    %139 = vector.extract_strided_slice %1 {offsets = [0, 3, 7], sizes = [4, 16, 16], strides = [1, 1, 1]} : vector<4x24x24xf32> to vector<4x16x16xf32>
    %cst_37 = arith.constant 0.00107238395 : f32
    %140 = vector.broadcast %cst_37 : f32 to vector<4x16x16xf32>
    %141 = arith.mulf %139, %140 : vector<4x16x16xf32>
    %142 = arith.addf %138, %141 : vector<4x16x16xf32>
    %143 = vector.extract_strided_slice %1 {offsets = [0, 3, 8], sizes = [4, 16, 16], strides = [1, 1, 1]} : vector<4x24x24xf32> to vector<4x16x16xf32>
    %cst_38 = arith.constant 3.23831882E-5 : f32
    %144 = vector.broadcast %cst_38 : f32 to vector<4x16x16xf32>
    %145 = arith.mulf %143, %144 : vector<4x16x16xf32>
    %146 = arith.addf %142, %145 : vector<4x16x16xf32>
    %147 = vector.extract_strided_slice %1 {offsets = [0, 4, 0], sizes = [4, 16, 16], strides = [1, 1, 1]} : vector<4x24x24xf32> to vector<4x16x16xf32>
    %cst_39 = arith.constant 5.33908533E-5 : f32
    %148 = vector.broadcast %cst_39 : f32 to vector<4x16x16xf32>
    %149 = arith.mulf %147, %148 : vector<4x16x16xf32>
    %150 = arith.addf %146, %149 : vector<4x16x16xf32>
    %151 = vector.extract_strided_slice %1 {offsets = [0, 4, 1], sizes = [4, 16, 16], strides = [1, 1, 1]} : vector<4x24x24xf32> to vector<4x16x16xf32>
    %cst_40 = arith.constant 0.00176806224 : f32
    %152 = vector.broadcast %cst_40 : f32 to vector<4x16x16xf32>
    %153 = arith.mulf %151, %152 : vector<4x16x16xf32>
    %154 = arith.addf %150, %153 : vector<4x16x16xf32>
    %155 = vector.extract_strided_slice %1 {offsets = [0, 4, 2], sizes = [4, 16, 16], strides = [1, 1, 1]} : vector<4x24x24xf32> to vector<4x16x16xf32>
    %cst_41 = arith.constant 0.0215394069 : f32
    %156 = vector.broadcast %cst_41 : f32 to vector<4x16x16xf32>
    %157 = arith.mulf %155, %156 : vector<4x16x16xf32>
    %158 = arith.addf %154, %157 : vector<4x16x16xf32>
    %159 = vector.extract_strided_slice %1 {offsets = [0, 4, 3], sizes = [4, 16, 16], strides = [1, 1, 1]} : vector<4x24x24xf32> to vector<4x16x16xf32>
    %cst_42 = arith.constant 0.096532926 : f32
    %160 = vector.broadcast %cst_42 : f32 to vector<4x16x16xf32>
    %161 = arith.mulf %159, %160 : vector<4x16x16xf32>
    %162 = arith.addf %158, %161 : vector<4x16x16xf32>
    %163 = vector.extract_strided_slice %1 {offsets = [0, 4, 4], sizes = [4, 16, 16], strides = [1, 1, 1]} : vector<4x24x24xf32> to vector<4x16x16xf32>
    %cst_43 = arith.constant 0.15915589 : f32
    %164 = vector.broadcast %cst_43 : f32 to vector<4x16x16xf32>
    %165 = arith.mulf %163, %164 : vector<4x16x16xf32>
    %166 = arith.addf %162, %165 : vector<4x16x16xf32>
    %167 = vector.extract_strided_slice %1 {offsets = [0, 4, 5], sizes = [4, 16, 16], strides = [1, 1, 1]} : vector<4x24x24xf32> to vector<4x16x16xf32>
    %cst_44 = arith.constant 0.096532926 : f32
    %168 = vector.broadcast %cst_44 : f32 to vector<4x16x16xf32>
    %169 = arith.mulf %167, %168 : vector<4x16x16xf32>
    %170 = arith.addf %166, %169 : vector<4x16x16xf32>
    %171 = vector.extract_strided_slice %1 {offsets = [0, 4, 6], sizes = [4, 16, 16], strides = [1, 1, 1]} : vector<4x24x24xf32> to vector<4x16x16xf32>
    %cst_45 = arith.constant 0.0215394069 : f32
    %172 = vector.broadcast %cst_45 : f32 to vector<4x16x16xf32>
    %173 = arith.mulf %171, %172 : vector<4x16x16xf32>
    %174 = arith.addf %170, %173 : vector<4x16x16xf32>
    %175 = vector.extract_strided_slice %1 {offsets = [0, 4, 7], sizes = [4, 16, 16], strides = [1, 1, 1]} : vector<4x24x24xf32> to vector<4x16x16xf32>
    %cst_46 = arith.constant 0.00176806224 : f32
    %176 = vector.broadcast %cst_46 : f32 to vector<4x16x16xf32>
    %177 = arith.mulf %175, %176 : vector<4x16x16xf32>
    %178 = arith.addf %174, %177 : vector<4x16x16xf32>
    %179 = vector.extract_strided_slice %1 {offsets = [0, 4, 8], sizes = [4, 16, 16], strides = [1, 1, 1]} : vector<4x24x24xf32> to vector<4x16x16xf32>
    %cst_47 = arith.constant 5.33908533E-5 : f32
    %180 = vector.broadcast %cst_47 : f32 to vector<4x16x16xf32>
    %181 = arith.mulf %179, %180 : vector<4x16x16xf32>
    %182 = arith.addf %178, %181 : vector<4x16x16xf32>
    %183 = vector.extract_strided_slice %1 {offsets = [0, 5, 0], sizes = [4, 16, 16], strides = [1, 1, 1]} : vector<4x24x24xf32> to vector<4x16x16xf32>
    %cst_48 = arith.constant 3.23831882E-5 : f32
    %184 = vector.broadcast %cst_48 : f32 to vector<4x16x16xf32>
    %185 = arith.mulf %183, %184 : vector<4x16x16xf32>
    %186 = arith.addf %182, %185 : vector<4x16x16xf32>
    %187 = vector.extract_strided_slice %1 {offsets = [0, 5, 1], sizes = [4, 16, 16], strides = [1, 1, 1]} : vector<4x24x24xf32> to vector<4x16x16xf32>
    %cst_49 = arith.constant 0.00107238395 : f32
    %188 = vector.broadcast %cst_49 : f32 to vector<4x16x16xf32>
    %189 = arith.mulf %187, %188 : vector<4x16x16xf32>
    %190 = arith.addf %186, %189 : vector<4x16x16xf32>
    %191 = vector.extract_strided_slice %1 {offsets = [0, 5, 2], sizes = [4, 16, 16], strides = [1, 1, 1]} : vector<4x24x24xf32> to vector<4x16x16xf32>
    %cst_50 = arith.constant 0.0130643109 : f32
    %192 = vector.broadcast %cst_50 : f32 to vector<4x16x16xf32>
    %193 = arith.mulf %191, %192 : vector<4x16x16xf32>
    %194 = arith.addf %190, %193 : vector<4x16x16xf32>
    %195 = vector.extract_strided_slice %1 {offsets = [0, 5, 3], sizes = [4, 16, 16], strides = [1, 1, 1]} : vector<4x24x24xf32> to vector<4x16x16xf32>
    %cst_51 = arith.constant 0.058550179 : f32
    %196 = vector.broadcast %cst_51 : f32 to vector<4x16x16xf32>
    %197 = arith.mulf %195, %196 : vector<4x16x16xf32>
    %198 = arith.addf %194, %197 : vector<4x16x16xf32>
    %199 = vector.extract_strided_slice %1 {offsets = [0, 5, 4], sizes = [4, 16, 16], strides = [1, 1, 1]} : vector<4x24x24xf32> to vector<4x16x16xf32>
    %cst_52 = arith.constant 0.096532926 : f32
    %200 = vector.broadcast %cst_52 : f32 to vector<4x16x16xf32>
    %201 = arith.mulf %199, %200 : vector<4x16x16xf32>
    %202 = arith.addf %198, %201 : vector<4x16x16xf32>
    %203 = vector.extract_strided_slice %1 {offsets = [0, 5, 5], sizes = [4, 16, 16], strides = [1, 1, 1]} : vector<4x24x24xf32> to vector<4x16x16xf32>
    %cst_53 = arith.constant 0.058550179 : f32
    %204 = vector.broadcast %cst_53 : f32 to vector<4x16x16xf32>
    %205 = arith.mulf %203, %204 : vector<4x16x16xf32>
    %206 = arith.addf %202, %205 : vector<4x16x16xf32>
    %207 = vector.extract_strided_slice %1 {offsets = [0, 5, 6], sizes = [4, 16, 16], strides = [1, 1, 1]} : vector<4x24x24xf32> to vector<4x16x16xf32>
    %cst_54 = arith.constant 0.0130643109 : f32
    %208 = vector.broadcast %cst_54 : f32 to vector<4x16x16xf32>
    %209 = arith.mulf %207, %208 : vector<4x16x16xf32>
    %210 = arith.addf %206, %209 : vector<4x16x16xf32>
    %211 = vector.extract_strided_slice %1 {offsets = [0, 5, 7], sizes = [4, 16, 16], strides = [1, 1, 1]} : vector<4x24x24xf32> to vector<4x16x16xf32>
    %cst_55 = arith.constant 0.00107238395 : f32
    %212 = vector.broadcast %cst_55 : f32 to vector<4x16x16xf32>
    %213 = arith.mulf %211, %212 : vector<4x16x16xf32>
    %214 = arith.addf %210, %213 : vector<4x16x16xf32>
    %215 = vector.extract_strided_slice %1 {offsets = [0, 5, 8], sizes = [4, 16, 16], strides = [1, 1, 1]} : vector<4x24x24xf32> to vector<4x16x16xf32>
    %cst_56 = arith.constant 3.23831882E-5 : f32
    %216 = vector.broadcast %cst_56 : f32 to vector<4x16x16xf32>
    %217 = arith.mulf %215, %216 : vector<4x16x16xf32>
    %218 = arith.addf %214, %217 : vector<4x16x16xf32>
    %219 = vector.extract_strided_slice %1 {offsets = [0, 6, 0], sizes = [4, 16, 16], strides = [1, 1, 1]} : vector<4x24x24xf32> to vector<4x16x16xf32>
    %cst_57 = arith.constant 7.2256662E-6 : f32
    %220 = vector.broadcast %cst_57 : f32 to vector<4x16x16xf32>
    %221 = arith.mulf %219, %220 : vector<4x16x16xf32>
    %222 = arith.addf %218, %221 : vector<4x16x16xf32>
    %223 = vector.extract_strided_slice %1 {offsets = [0, 6, 1], sizes = [4, 16, 16], strides = [1, 1, 1]} : vector<4x24x24xf32> to vector<4x16x16xf32>
    %cst_58 = arith.constant 2.39281202E-4 : f32
    %224 = vector.broadcast %cst_58 : f32 to vector<4x16x16xf32>
    %225 = arith.mulf %223, %224 : vector<4x16x16xf32>
    %226 = arith.addf %222, %225 : vector<4x16x16xf32>
    %227 = vector.extract_strided_slice %1 {offsets = [0, 6, 2], sizes = [4, 16, 16], strides = [1, 1, 1]} : vector<4x24x24xf32> to vector<4x16x16xf32>
    %cst_59 = arith.constant 0.00291504175 : f32
    %228 = vector.broadcast %cst_59 : f32 to vector<4x16x16xf32>
    %229 = arith.mulf %227, %228 : vector<4x16x16xf32>
    %230 = arith.addf %226, %229 : vector<4x16x16xf32>
    %231 = vector.extract_strided_slice %1 {offsets = [0, 6, 3], sizes = [4, 16, 16], strides = [1, 1, 1]} : vector<4x24x24xf32> to vector<4x16x16xf32>
    %cst_60 = arith.constant 0.0130643109 : f32
    %232 = vector.broadcast %cst_60 : f32 to vector<4x16x16xf32>
    %233 = arith.mulf %231, %232 : vector<4x16x16xf32>
    %234 = arith.addf %230, %233 : vector<4x16x16xf32>
    %235 = vector.extract_strided_slice %1 {offsets = [0, 6, 4], sizes = [4, 16, 16], strides = [1, 1, 1]} : vector<4x24x24xf32> to vector<4x16x16xf32>
    %cst_61 = arith.constant 0.0215394069 : f32
    %236 = vector.broadcast %cst_61 : f32 to vector<4x16x16xf32>
    %237 = arith.mulf %235, %236 : vector<4x16x16xf32>
    %238 = arith.addf %234, %237 : vector<4x16x16xf32>
    %239 = vector.extract_strided_slice %1 {offsets = [0, 6, 5], sizes = [4, 16, 16], strides = [1, 1, 1]} : vector<4x24x24xf32> to vector<4x16x16xf32>
    %cst_62 = arith.constant 0.0130643109 : f32
    %240 = vector.broadcast %cst_62 : f32 to vector<4x16x16xf32>
    %241 = arith.mulf %239, %240 : vector<4x16x16xf32>
    %242 = arith.addf %238, %241 : vector<4x16x16xf32>
    %243 = vector.extract_strided_slice %1 {offsets = [0, 6, 6], sizes = [4, 16, 16], strides = [1, 1, 1]} : vector<4x24x24xf32> to vector<4x16x16xf32>
    %cst_63 = arith.constant 0.00291504175 : f32
    %244 = vector.broadcast %cst_63 : f32 to vector<4x16x16xf32>
    %245 = arith.mulf %243, %244 : vector<4x16x16xf32>
    %246 = arith.addf %242, %245 : vector<4x16x16xf32>
    %247 = vector.extract_strided_slice %1 {offsets = [0, 6, 7], sizes = [4, 16, 16], strides = [1, 1, 1]} : vector<4x24x24xf32> to vector<4x16x16xf32>
    %cst_64 = arith.constant 2.39281202E-4 : f32
    %248 = vector.broadcast %cst_64 : f32 to vector<4x16x16xf32>
    %249 = arith.mulf %247, %248 : vector<4x16x16xf32>
    %250 = arith.addf %246, %249 : vector<4x16x16xf32>
    %251 = vector.extract_strided_slice %1 {offsets = [0, 6, 8], sizes = [4, 16, 16], strides = [1, 1, 1]} : vector<4x24x24xf32> to vector<4x16x16xf32>
    %cst_65 = arith.constant 7.2256662E-6 : f32
    %252 = vector.broadcast %cst_65 : f32 to vector<4x16x16xf32>
    %253 = arith.mulf %251, %252 : vector<4x16x16xf32>
    %254 = arith.addf %250, %253 : vector<4x16x16xf32>
    %255 = vector.extract_strided_slice %1 {offsets = [0, 7, 0], sizes = [4, 16, 16], strides = [1, 1, 1]} : vector<4x24x24xf32> to vector<4x16x16xf32>
    %cst_66 = arith.constant 5.93118784E-7 : f32
    %256 = vector.broadcast %cst_66 : f32 to vector<4x16x16xf32>
    %257 = arith.mulf %255, %256 : vector<4x16x16xf32>
    %258 = arith.addf %254, %257 : vector<4x16x16xf32>
    %259 = vector.extract_strided_slice %1 {offsets = [0, 7, 1], sizes = [4, 16, 16], strides = [1, 1, 1]} : vector<4x24x24xf32> to vector<4x16x16xf32>
    %cst_67 = arith.constant 1.96413966E-5 : f32
    %260 = vector.broadcast %cst_67 : f32 to vector<4x16x16xf32>
    %261 = arith.mulf %259, %260 : vector<4x16x16xf32>
    %262 = arith.addf %258, %261 : vector<4x16x16xf32>
    %263 = vector.extract_strided_slice %1 {offsets = [0, 7, 2], sizes = [4, 16, 16], strides = [1, 1, 1]} : vector<4x24x24xf32> to vector<4x16x16xf32>
    %cst_68 = arith.constant 2.39281202E-4 : f32
    %264 = vector.broadcast %cst_68 : f32 to vector<4x16x16xf32>
    %265 = arith.mulf %263, %264 : vector<4x16x16xf32>
    %266 = arith.addf %262, %265 : vector<4x16x16xf32>
    %267 = vector.extract_strided_slice %1 {offsets = [0, 7, 3], sizes = [4, 16, 16], strides = [1, 1, 1]} : vector<4x24x24xf32> to vector<4x16x16xf32>
    %cst_69 = arith.constant 0.00107238395 : f32
    %268 = vector.broadcast %cst_69 : f32 to vector<4x16x16xf32>
    %269 = arith.mulf %267, %268 : vector<4x16x16xf32>
    %270 = arith.addf %266, %269 : vector<4x16x16xf32>
    %271 = vector.extract_strided_slice %1 {offsets = [0, 7, 4], sizes = [4, 16, 16], strides = [1, 1, 1]} : vector<4x24x24xf32> to vector<4x16x16xf32>
    %cst_70 = arith.constant 0.00176806224 : f32
    %272 = vector.broadcast %cst_70 : f32 to vector<4x16x16xf32>
    %273 = arith.mulf %271, %272 : vector<4x16x16xf32>
    %274 = arith.addf %270, %273 : vector<4x16x16xf32>
    %275 = vector.extract_strided_slice %1 {offsets = [0, 7, 5], sizes = [4, 16, 16], strides = [1, 1, 1]} : vector<4x24x24xf32> to vector<4x16x16xf32>
    %cst_71 = arith.constant 0.00107238395 : f32
    %276 = vector.broadcast %cst_71 : f32 to vector<4x16x16xf32>
    %277 = arith.mulf %275, %276 : vector<4x16x16xf32>
    %278 = arith.addf %274, %277 : vector<4x16x16xf32>
    %279 = vector.extract_strided_slice %1 {offsets = [0, 7, 6], sizes = [4, 16, 16], strides = [1, 1, 1]} : vector<4x24x24xf32> to vector<4x16x16xf32>
    %cst_72 = arith.constant 2.39281202E-4 : f32
    %280 = vector.broadcast %cst_72 : f32 to vector<4x16x16xf32>
    %281 = arith.mulf %279, %280 : vector<4x16x16xf32>
    %282 = arith.addf %278, %281 : vector<4x16x16xf32>
    %283 = vector.extract_strided_slice %1 {offsets = [0, 7, 7], sizes = [4, 16, 16], strides = [1, 1, 1]} : vector<4x24x24xf32> to vector<4x16x16xf32>
    %cst_73 = arith.constant 1.96413966E-5 : f32
    %284 = vector.broadcast %cst_73 : f32 to vector<4x16x16xf32>
    %285 = arith.mulf %283, %284 : vector<4x16x16xf32>
    %286 = arith.addf %282, %285 : vector<4x16x16xf32>
    %287 = vector.extract_strided_slice %1 {offsets = [0, 7, 8], sizes = [4, 16, 16], strides = [1, 1, 1]} : vector<4x24x24xf32> to vector<4x16x16xf32>
    %cst_74 = arith.constant 5.93118784E-7 : f32
    %288 = vector.broadcast %cst_74 : f32 to vector<4x16x16xf32>
    %289 = arith.mulf %287, %288 : vector<4x16x16xf32>
    %290 = arith.addf %286, %289 : vector<4x16x16xf32>
    %291 = vector.extract_strided_slice %1 {offsets = [0, 8, 0], sizes = [4, 16, 16], strides = [1, 1, 1]} : vector<4x24x24xf32> to vector<4x16x16xf32>
    %cst_75 = arith.constant 1.79106365E-8 : f32
    %292 = vector.broadcast %cst_75 : f32 to vector<4x16x16xf32>
    %293 = arith.mulf %291, %292 : vector<4x16x16xf32>
    %294 = arith.addf %290, %293 : vector<4x16x16xf32>
    %295 = vector.extract_strided_slice %1 {offsets = [0, 8, 1], sizes = [4, 16, 16], strides = [1, 1, 1]} : vector<4x24x24xf32> to vector<4x16x16xf32>
    %cst_76 = arith.constant 5.93118784E-7 : f32
    %296 = vector.broadcast %cst_76 : f32 to vector<4x16x16xf32>
    %297 = arith.mulf %295, %296 : vector<4x16x16xf32>
    %298 = arith.addf %294, %297 : vector<4x16x16xf32>
    %299 = vector.extract_strided_slice %1 {offsets = [0, 8, 2], sizes = [4, 16, 16], strides = [1, 1, 1]} : vector<4x24x24xf32> to vector<4x16x16xf32>
    %cst_77 = arith.constant 7.2256662E-6 : f32
    %300 = vector.broadcast %cst_77 : f32 to vector<4x16x16xf32>
    %301 = arith.mulf %299, %300 : vector<4x16x16xf32>
    %302 = arith.addf %298, %301 : vector<4x16x16xf32>
    %303 = vector.extract_strided_slice %1 {offsets = [0, 8, 3], sizes = [4, 16, 16], strides = [1, 1, 1]} : vector<4x24x24xf32> to vector<4x16x16xf32>
    %cst_78 = arith.constant 3.23831882E-5 : f32
    %304 = vector.broadcast %cst_78 : f32 to vector<4x16x16xf32>
    %305 = arith.mulf %303, %304 : vector<4x16x16xf32>
    %306 = arith.addf %302, %305 : vector<4x16x16xf32>
    %307 = vector.extract_strided_slice %1 {offsets = [0, 8, 4], sizes = [4, 16, 16], strides = [1, 1, 1]} : vector<4x24x24xf32> to vector<4x16x16xf32>
    %cst_79 = arith.constant 5.33908533E-5 : f32
    %308 = vector.broadcast %cst_79 : f32 to vector<4x16x16xf32>
    %309 = arith.mulf %307, %308 : vector<4x16x16xf32>
    %310 = arith.addf %306, %309 : vector<4x16x16xf32>
    %311 = vector.extract_strided_slice %1 {offsets = [0, 8, 5], sizes = [4, 16, 16], strides = [1, 1, 1]} : vector<4x24x24xf32> to vector<4x16x16xf32>
    %cst_80 = arith.constant 3.23831882E-5 : f32
    %312 = vector.broadcast %cst_80 : f32 to vector<4x16x16xf32>
    %313 = arith.mulf %311, %312 : vector<4x16x16xf32>
    %314 = arith.addf %310, %313 : vector<4x16x16xf32>
    %315 = vector.extract_strided_slice %1 {offsets = [0, 8, 6], sizes = [4, 16, 16], strides = [1, 1, 1]} : vector<4x24x24xf32> to vector<4x16x16xf32>
    %cst_81 = arith.constant 7.2256662E-6 : f32
    %316 = vector.broadcast %cst_81 : f32 to vector<4x16x16xf32>
    %317 = arith.mulf %315, %316 : vector<4x16x16xf32>
    %318 = arith.addf %314, %317 : vector<4x16x16xf32>
    %319 = vector.extract_strided_slice %1 {offsets = [0, 8, 7], sizes = [4, 16, 16], strides = [1, 1, 1]} : vector<4x24x24xf32> to vector<4x16x16xf32>
    %cst_82 = arith.constant 5.93118784E-7 : f32
    %320 = vector.broadcast %cst_82 : f32 to vector<4x16x16xf32>
    %321 = arith.mulf %319, %320 : vector<4x16x16xf32>
    %322 = arith.addf %318, %321 : vector<4x16x16xf32>
    %323 = vector.extract_strided_slice %1 {offsets = [0, 8, 8], sizes = [4, 16, 16], strides = [1, 1, 1]} : vector<4x24x24xf32> to vector<4x16x16xf32>
    %cst_83 = arith.constant 1.79106365E-8 : f32
    %324 = vector.broadcast %cst_83 : f32 to vector<4x16x16xf32>
    %325 = arith.mulf %323, %324 : vector<4x16x16xf32>
    %326 = arith.addf %322, %325 : vector<4x16x16xf32>
    %c0_84 = arith.constant 0 : index
    %c0_85 = arith.constant 0 : index
    %c0_86 = arith.constant 0 : index
    %c0_87 = arith.constant 0 : index
    %327 = vector.load %arg2[%c0_84, %c0_85, %c0_86, %c0_87] : memref<1x4x16x16xf32, #tpu.memory_space<vmem>>, vector<1x4x16x16xf32>
    %328 = vector.shape_cast %327 : vector<1x4x16x16xf32> to vector<4x16x16xf32>
    %329 = vector.shape_cast %326 : vector<4x16x16xf32> to vector<1x4x16x16xf32>
    tpu.vector_store %arg2[%c0_84, %c0_85, %c0_86, %c0_87], %329 {strides = array<i32>} : memref<1x4x16x16xf32, #tpu.memory_space<vmem>>, vector<1x4x16x16xf32>,
    return
  }
  func.func @transform_0(%arg0: i32) -> (i32, i32, i32, i32) {
    %c0_i32 = arith.constant 0 : i32
    %c0_i32_0 = arith.constant 0 : i32
    %c0_i32_1 = arith.constant 0 : i32
    %c0_i32_2 = arith.constant 0 : i32
    return %arg0, %c0_i32, %c0_i32_0, %c0_i32_1 : i32, i32, i32, i32
  }
  func.func @transform_1(%arg0: i32) -> (i32, i32, i32, i32) {
    %c0_i32 = arith.constant 0 : i32
    %c0_i32_0 = arith.constant 0 : i32
    %c0_i32_1 = arith.constant 0 : i32
    %c0_i32_2 = arith.constant 0 : i32
    return %arg0, %c0_i32, %c0_i32_0, %c0_i32_1 : i32, i32, i32, i32
  }
}

</mosaic_0001>

<bundles_post_ra>
// kernel: tpu_custom_call.1
= control target key start
LH: loop header
LB: loop body
LE: loop exit
PB: predicated region body
PF: predicated region fallthrough
CT: control target
= control target key end

     0   :  { %6 = vsyncpa [#allocation3], 0  ;;  %s8055_s0 = inlined_call_operand.hbm [shape: f32[2,4,24,24], index: 0, kind: input, shape index: {}]   ;;  %s8056_s1 = inlined_call_operand.hbm [shape: f32[2,4,16,16], index: 1, kind: output, shape index: {}]  }
   0x1   :  { %8 = vsyncpa [#allocation3 + $0x1], 0 }
   0x2   :  { %9 = vsyncpa [#allocation4], 0 }
   0x3   :  { %11 = vsyncpa [#allocation4 + $0x1], 0  ;;  %s3865_s6 = smov 0   ;;  %s3867_s7 = smov 0  }
   0x4   :  { %s3869_s8 = smov 0   ;;  %s3871_s9 = smov 0  }
   0x5 LB: > { %s3886_s10 = sadd.s32 4294967295, %s3839_s9   ;;  %s3646_s11 = sadd.s32 4294967294, %s3839_s9   ;;  %s3839_s9 = sphi %s3871_s9, %s9375_s9   ;;  %s3835_s8 = sphi %s3869_s8, %s9374_s8   ;;  %s3831_s7 = sphi %s3867_s7, %s9373_s7   ;;  %s3827_s6 = sphi %s3865_s6, %s9372_s6  }
   0x6   : > { %s3890_s12 = sadd.s32 1, %s3839_s9   ;;  %s24_s13 = sadd.s32 1, %s3835_s8 }
   0x7   : > { %s21_s14 = ssub.s32 %s3839_s9, %s3890_s12  ;;  %p31_p0 = scmp.ne.s32.totalorder %s3835_s8, %s3831_s7 }
   0x8   : > { %p22_p1 = scmp.eq.s32.totalorder %s21_s14, 0  ;;  %p32_p2 = scmp.eq.s32.totalorder %s3839_s9, 0 }
   0x9   : > { %p37_p3 = scmp.ne.s32.totalorder %s3831_s7, %s3827_s6  ;;  %p38_p4 = scmp.eq.s32.totalorder %s3886_s10, 0 }
   0xa   : > { %s3902_s15 = scalar_select %p22_p1, %s3835_s8, %s24_s13  }
   0xb   : > { %p33_p5 = por %p32_p2, %p31_p0  ;;  %p3904_p6 = por %p38_p4, %p37_p3 }
   0xc   : > { %p61_p7 = scmp.eq.s32.totalorder %s3886_s10, 1  ;;  %p67_p8 = scmp.eq.s32.totalorder %s3646_s11, 1 }
   0xd   : > { %s8459_s16 = scalar_select %p3904_p6, 1, 0 }
   0xe   : > { %p3673_p10 = scmp.lt.s32.totalorder %s3839_s9, 2  ;;  %p3911_p11 = por %p61_p7, %p31_p0 }
   0xf   : > { %p3915_p12 = por %p67_p8, %p37_p3  ;;  %s87_s19 = sand.u32 1, %s3835_s8  }
  0x10   : > { %s8460_s17 = scalar_select %p3911_p11, 1, 0 }
  0x11   : > { %s8461_s18 = scalar_select %p3915_p12, 1, 0 }
  0x12   : > { %s3659_s20 = smul.u32 1536, %s3839_s9  ;;  %p3926_p13 = pnand %p3673_p10, %p33_p5 }
  0x13   : > { %s3658_s21 = smul.u32 96, %s87_s19  ;;  %s3932_s28 = scalar_lea.sflag [#allocation3], %s87_s19 }
  0x14   : > { %s3924_s24 = scalar_lea.hbm %s8055_s0, %s3659_s20  ;;  %p3749_p1 = pneg %p3926_p13 }
  0x15   : > { %s91_s26 = scalar_lea.vmem [#allocation2], %s3658_s21  ;;  %s3747_s29 = scalar_lea.hbm %s3924_s24, 1536 }
  0x16   : > { %s98_s27 = sshll.u32 %s91_s26, 4  ;;  %p3748_p0 = scmp.ne.s32.totalorder %s3924_s24, %s3747_s29  ;;  %s3930_s27 = int_to_ptr.vmem [resolvable:$true] %s98_s27 }
  0x17   : > { %s3752_s3 = scalar_lea.hbm %s8055_s0, 3072  ;;  %p3753_p4 = scmp.lt.s32.totalorder %s3924_s24, %s8055_s0 }
  0x18   : > { %p3750_p2 = pnand %p3749_p1, %p3748_p0  ;;  %p3754_p5 = scmp.lt.s32.totalorder %s3752_s3, %s3747_s29 }
  0x1a   : > { %p3751_p3 = pneg %p3750_p2  ;;  %p3755_p7 = por %p3754_p5, %p3753_p4 }
  0x1c   : > { %p3756_p8 = pnand %p3755_p7, %p3751_p3 }
  0x1e   : > { %3759 = shalt.err (!%p3756_p8)
}
  0x1f   : > { %s3760_s11 = scalar_lea.vmem %s3930_s27, 1536  ;;  %s3841_s13 = smov [#allocation2]  }
  0x20   : > { %p3761_p10 = scmp.ne.s32.totalorder %s3930_s27, %s3760_s11  ;;  %s3765_s14 = sshll.u32 %s3841_s13, 4  ;;  %s3766_s14 = int_to_ptr.vmem [resolvable:$false] %s3765_s14 }
  0x21   : > { %s3767_s19 = scalar_lea.vmem %s3766_s14, 3072  ;;  %p3768_p2 = scmp.lt.s32.totalorder %s3930_s27, %s3766_s14 }
  0x22   : > { %p3763_p9 = pnand %p3761_p10, %p3749_p1  ;;  %p3769_p12 = scmp.lt.s32.totalorder %s3767_s19, %s3760_s11 }
  0x24   : > { %p3764_p0 = pneg %p3763_p9  ;;  %p3770_p11 = por %p3769_p12, %p3768_p2 }
  0x26   : > { %p3771_p6 = pnand %p3770_p11, %p3764_p0 }
  0x28   : > { %3774 = shalt.err (!%p3771_p6)
}
  0x29   : > { %s3842_s20 = smov 128   ;;  %s3843_s21 = smov 8  }
  0x2a   : > { %3668 = dma.hbm_to_vmem [thread:$0]  (!%p3926_p13), %s3924_s24, 1536, %s3930_s27, %s3932_s28, %s3842_s20, %s3842_s20, %s3843_s21  }
  0x2b   : > { %p3650_p9 = scmp.ge.s32.totalorder %s3839_s9, 1  ;;  %p106_p1 = scmp.lt.s32.totalorder %s3839_s9, 3 }
  0x2d   : > { %p107_p3 = pnand %p3650_p9, %p106_p1 }
  0x2f   : > { %110 = sbr.rel (%p107_p3) target bundleno = 1275 (0x4fb), region = 24 }
  0x34   : > { %s3956_s22 = sand.u32 1, %s3831_s7   ;;  %p8463_p6 = scmp.ne.s32.totalorder %s8459_s16, 0 }
  0x35   : > { %s3660_s23 = smul.u32 96, %s3956_s22  ;;  %s113_s26 = scalar_lea.sflag [#allocation3], %s3956_s22 }
  0x37   : > { %s3960_s29 = scalar_lea.vmem [#allocation2], %s3660_s23 }
  0x38   : > { %3818 = dma.done.wait (%p8463_p6), %s113_s26, 1536  }
  0x39   : > { %3820 = vsyncadd (%p8463_p6), %s113_s26, 4294965760  ;;  %v3967_v0 = vld [vmem:[%s3960_s29 + $0x18] sm:$0xff]  ;;  %v3970_v1 = vld [vmem:[%s3960_s29] sm:$0xff]  ;;  %s3844_s16 = smov 127   ;;  %s3845_s24 = smov 126   ;;  %vm499_vm0 = vcmask 1046528  }
  0x3a   : > { %8464 = vst [vmem:[#allocation8_spill] sm:$0xff] %v3970_v1  ;;  %v3973_v2 = vld [vmem:[%s3960_s29 + $0x20] sm:$0xff]  ;;  %v3976_v3 = vmul.f32 5.931188e-07, %v3967_v0  ;;  %v3979_v4 = vmul.f32 5.931188e-07, %v3970_v1 }
  0x3b   : > { %8465 = vst [vmem:[#allocation9_spill] sm:$0xff] %v3973_v2  ;;  %v3982_v5 = vld [vmem:[%s3960_s29 + $0x8] sm:$0xff]  ;;  %v3989_v6 = vmul.f32 5.931188e-07, %v3973_v2  ;;  %v3995_v8 = vld [vmem:[%s3960_s29 + $0x38] sm:$0xff]  ;;  %v3998_v9 = vld [vmem:[%s3960_s29 + $0x30] sm:$0xff] }
  0x3c   : > { %8466 = vst [vmem:[#allocation10_spill] sm:$0xff] %v3976_v3  ;;  %8467 = vst [vmem:[#allocation11_spill] sm:$0xff] %v3979_v4  ;;  %183 = vrot.lane.b32.xlu1 %v3976_v3, %s3844_s16  ;;  %179 = vrot.lane.b32.xlu0 %v3979_v4, %s3844_s16  ;;  %v3992_v7 = vmul.f32 5.931188e-07, %v3982_v5  ;;  %v4005_v10 = vmul.f32 5.931188e-07, %v3995_v8 }
  0x3d   : > { %8468 = vst [vmem:[#allocation12_spill] sm:$0xff] %v3982_v5  ;;  %8469 = vst [vmem:[#allocation13_spill] sm:$0xff] %v3989_v6  ;;  %v4008_v11 = vmul.f32 5.931188e-07, %v3998_v9  ;;  %v4011_v12 = vld [vmem:[%s3960_s29 + $0x50] sm:$0xff]  ;;  %v4014_v13 = vld [vmem:[%s3960_s29 + $0x48] sm:$0xff] }
  0x3e   : > { %8470 = vst [vmem:[#allocation14_spill] sm:$0xff] %v3992_v7  ;;  %8471 = vst [vmem:[#allocation15_spill] sm:$0xff] %v3995_v8  ;;  %v4021_v14 = vmul.f32 5.931188e-07, %v4011_v12  ;;  %v4024_v15 = vmul.f32 5.931188e-07, %v4014_v13 }
  0x3f   : > { %8472 = vst [vmem:[#allocation16_spill] sm:$0xff] %v3998_v9  ;;  %8473 = vst [vmem:[#allocation17_spill] sm:$0xff] %v4005_v10  ;;  %v4031_v16 = vmul.f32 7.225666e-06, %v3982_v5  ;;  %v4034_v17 = vmul.f32 7.225666e-06, %v3970_v1 }
  0x40   : > { %185 = vrot.lane.b32.xlu1 %v3989_v6, %s3844_s16  ;;  %181 = vrot.lane.b32.xlu0 %v3992_v7, %s3844_s16  ;;  %8474 = vst [vmem:[#allocation18_spill] sm:$0xff] %v4008_v11  ;;  %8475 = vst [vmem:[#allocation19_spill] sm:$0xff] %v4014_v13  ;;  %v4041_v18 = vmul.f32 7.225666e-06, %v3973_v2  ;;  %v4044_v19 = vmul.f32 7.225666e-06, %v3967_v0 }
  0x41   : > { %8476 = vst [vmem:[#allocation20_spill] sm:$0xff] %v4021_v14  ;;  %8477 = vst [vmem:[#allocation21_spill] sm:$0xff] %v4024_v15  ;;  %v4051_v20 = vmul.f32 7.225666e-06, %v3995_v8  ;;  %v4054_v21 = vmul.f32 7.225666e-06, %v3998_v9 }
  0x42   : > { %8478 = vst [vmem:[#allocation22_spill] sm:$0xff] %v4031_v16  ;;  %8479 = vst [vmem:[#allocation23_spill] sm:$0xff] %v4034_v17  ;;  %v4061_v22 = vmul.f32 7.225666e-06, %v4011_v12  ;;  %v4064_v23 = vmul.f32 7.225666e-06, %v4014_v13 }
  0x43   : > { %8480 = vst [vmem:[#allocation24_spill] sm:$0xff] %v4041_v18  ;;  %8481 = vst [vmem:[#allocation25_spill] sm:$0xff] %v4044_v19  ;;  %v4071_v24 = vmul.f32 3.238319e-05, %v3982_v5  ;;  %v4074_v25 = vmul.f32 3.238319e-05, %v3970_v1 }
  0x44   : > { %189 = vrot.lane.b32.xlu1 %v4005_v10, %s3844_s16  ;;  %187 = vrot.lane.b32.xlu0 %v4008_v11, %s3844_s16  ;;  %8482 = vst [vmem:[#allocation26_spill] sm:$0xff] %v4051_v20  ;;  %8483 = vst [vmem:[#allocation27_spill] sm:$0xff] %v4054_v21  ;;  %s3846_s25 = smov 125   ;;  %v4081_v26 = vmul.f32 3.238319e-05, %v3973_v2  ;;  %s3847_s27 = smov 124  }
  0x45   : > { %8484 = vst [vmem:[#allocation28_spill] sm:$0xff] %v4061_v22  ;;  %8485 = vst [vmem:[#allocation29_spill] sm:$0xff] %v4064_v23  ;;  %v4084_v27 = vmul.f32 3.238319e-05, %v3967_v0  ;;  %v4091_v28 = vmul.f32 3.238319e-05, %v3995_v8 }
  0x46   : > { %8486 = vst [vmem:[#allocation30_spill] sm:$0xff] %v4071_v24  ;;  %8487 = vst [vmem:[#allocation31_spill] sm:$0xff] %v4074_v25  ;;  %v4094_v29 = vmul.f32 3.238319e-05, %v3998_v9  ;;  %v4101_v30 = vmul.f32 3.238319e-05, %v4011_v12 }
  0x47   : > { %8488 = vst [vmem:[#allocation32_spill] sm:$0xff] %v4081_v26  ;;  %8489 = vst [vmem:[#allocation33_spill] sm:$0xff] %v4084_v27  ;;  %v4104_v31 = vmul.f32 3.238319e-05, %v4014_v13  ;;  %v4111_v32 = vmul.f32 5.3390853e-05, %v3982_v5 }
  0x48   : > { %193 = vrot.lane.b32.xlu1 %v4021_v14, %s3844_s16  ;;  %191 = vrot.lane.b32.xlu0 %v4024_v15, %s3844_s16  ;;  %8490 = vst [vmem:[#allocation34_spill] sm:$0xff] %v4091_v28  ;;  %8491 = vst [vmem:[#allocation35_spill] sm:$0xff] %v4094_v29  ;;  %v4114_v33 = vmul.f32 5.3390853e-05, %v3970_v1  ;;  %v4121_v34 = vmul.f32 5.3390853e-05, %v3973_v2 }
  0x49   : > { %8492 = vst [vmem:[#allocation36_spill] sm:$0xff] %v4101_v30  ;;  %8493 = vst [vmem:[#allocation37_spill] sm:$0xff] %v4104_v31  ;;  %v4124_v35 = vmul.f32 5.3390853e-05, %v3967_v0  ;;  %v4131_v36 = vmul.f32 5.3390853e-05, %v3995_v8 }
  0x4a   : > { %8494 = vst [vmem:[#allocation38_spill] sm:$0xff] %v4111_v32  ;;  %8495 = vst [vmem:[#allocation39_spill] sm:$0xff] %v4114_v33  ;;  %v4134_v37 = vmul.f32 5.3390853e-05, %v3998_v9  ;;  %v4141_v38 = vmul.f32 5.3390853e-05, %v4011_v12 }
  0x4b   : > { %8496 = vst [vmem:[#allocation40_spill] sm:$0xff] %v4121_v34  ;;  %8497 = vst [vmem:[#allocation41_spill] sm:$0xff] %v4124_v35  ;;  %v4144_v39 = vmul.f32 5.3390853e-05, %v4014_v13  ;;  %s3848_s28 = smov 123   ;;  %s3849_s30 = smov 122  }
  0x4c   : > { %229 = vrot.lane.b32.xlu1 %v4031_v16, %s3845_s24  ;;  %227 = vrot.lane.b32.xlu0 %v4034_v17, %s3845_s24  ;;  %8498 = vst [vmem:[#allocation42_spill] sm:$0xff] %v4131_v36  ;;  %8499 = vst [vmem:[#allocation43_spill] sm:$0xff] %v4134_v37  ;;  %s3850_s2 = smov 121   ;;  %v4199_v40 = vmul.f32 1.7910637e-08, %v3982_v5  ;;  %s3851_s3 = smov 120  }
  0x4d   : > { %8500 = vst [vmem:[#allocation44_spill] sm:$0xff] %v4141_v38  ;;  %8501 = vst [vmem:[#allocation45_spill] sm:$0xff] %v4144_v39  ;;  %v4202_v41 = vmul.f32 1.7910637e-08, %v3970_v1  ;;  %v4209_v42 = vmul.f32 1.7910637e-08, %v3967_v0 }
  0x4e   : > { %8502 = vst [vmem:[#allocation46_spill] sm:$0xff] %v4199_v40  ;;  %v4212_v43 = vmul.f32 1.7910637e-08, %v3973_v2  ;;  %v4219_v46 = vld [vmem:[%s3960_s29 + $0x10] sm:$0xff]  ;;  %v4226_v47 = vmul.f32 1.7910637e-08, %v3995_v8 }
  0x4f   : > { %8504 = vst [vmem:[#allocation48_spill] sm:$0xff] %v4219_v46  ;;  %v4229_v48 = vmul.f32 1.7910637e-08, %v3998_v9  ;;  %v4232_v49 = vld [vmem:[%s3960_s29 + $0x28] sm:$0xff]  ;;  %v4235_v50 = vmul.f32 1.9641397e-05, %v3982_v5 }
  0x50   : > { %233 = vrot.lane.b32.xlu1 %v4041_v18, %s3845_s24  ;;  %231 = vrot.lane.b32.xlu0 %v4044_v19, %s3845_s24  ;;  %8503 = vst [vmem:[#allocation47_spill] sm:$0xff] %v4212_v43  ;;  %8505 = vst [vmem:[#allocation49_spill] sm:$0xff] %v4226_v47  ;;  %v4238_v51 = vmul.f32 1.9641397e-05, %v4219_v46  ;;  %v4241_v52 = vmul.f32 1.9641397e-05, %v3970_v1 }
  0x51   : > { %8506 = vst [vmem:[#allocation50_spill] sm:$0xff] %v4232_v49  ;;  %8507 = vst [vmem:[#allocation51_spill] sm:$0xff] %v4235_v50  ;;  %v4248_v55 = vmul.f32 1.7910637e-08, %v4011_v12  ;;  %v4255_v56 = vmul.f32 1.7910637e-08, %v4014_v13 }
  0x52   : > { %8508 = vst [vmem:[#allocation52_spill] sm:$0xff] %v4238_v51  ;;  %8509 = vst [vmem:[#allocation53_spill] sm:$0xff] %v4241_v52  ;;  %v4258_v57 = vmul.f32 1.9641397e-05, %v3973_v2  ;;  %v4261_v58 = vmul.f32 1.9641397e-05, %v4232_v49 }
  0x53   : > { %8512 = vst [vmem:[#allocation56_spill] sm:$0xff] %v4248_v55  ;;  %v561_v59 = vrot.slane %v4235_v50, 1  ;;  %v563_v60 = vrot.slane %v4238_v51, 1  ;;  %v560_v61 = vrot.slane %v4241_v52, 1  ;;  %v4267_v62 = vmul.f32 1.9641397e-05, %v3967_v0 }
  0x54   : > { %237 = vrot.lane.b32.xlu1 %v4051_v20, %s3845_s24  ;;  %235 = vrot.lane.b32.xlu0 %v4054_v21, %s3845_s24  ;;  %8513 = vst [vmem:[#allocation57_spill] sm:$0xff] %v4258_v57  ;;  %8514 = vst [vmem:[#allocation58_spill] sm:$0xff] %v4261_v58  ;;  %v4270_v63 = vld [vmem:[%s3960_s29 + $0x40] sm:$0xff]  ;;  %v566_v51 = vrot.slane %v4258_v57, 1  ;;  %v568_v52 = vrot.slane %v4261_v58, 1  ;;  %vm976_vm1 = vcmask 1045504  }
  0x55   : > { %8515 = vst [vmem:[#allocation59_spill] sm:$0xff] %v4267_v62  ;;  %v4283_v50 = vmul.f32 1.9641397e-05, %v3995_v8  ;;  %vm1429_vm2 = vcmask 1044480   ;;  %vm1858_vm3 = vcmask 1043456   ;;  %vm2255_vm4 = vcmask 1042432  }
  0x56   : > { %vm2628_vm5 = vcmask 1041408   ;;  %vm3001_vm6 = vcmask 1040384   ;;  %s3651_s4 = sshll.u32 %s3956_s22, 6  ;;  %vm3550_vm7 = vcmask 130048   ;;  %s3657_s11 = sshll.u32 %s3886_s10, 10 }
  0x57   : > { %8517 = vst [vmem:[#allocation61_spill] sm:$0xff] %v4283_v50  ;;  %s7974_s5 = scalar_lea.vmem [#allocation5], %s3651_s4  ;;  %s8006_s20 = scalar_lea.hbm %s8056_s1, %s3657_s11 }
  0x58   : > { %241 = vrot.lane.b32.xlu1 %v4061_v22, %s3845_s24  ;;  %239 = vrot.lane.b32.xlu0 %v4064_v23, %s3845_s24  ;;  %s3573_s13 = sshll.u32 %s7974_s5, 4  ;;  %s3560_s10 = scalar_lea.sflag [#allocation4], %s3956_s22  ;;  %s8008_s13 = int_to_ptr.vmem [resolvable:$true] %s3573_s13 }
  0x59   : > { %s3775_s21 = scalar_lea.vmem %s8008_s13, 1024  ;;  %p9369_p12 = scmp.ne.s32.totalorder %s8460_s17, 0 }
  0x5a   : > { %p3776_p11 = scmp.ne.s32.totalorder %s8008_s13, %s3775_s21  ;;  %s3852_s23 = smov [#allocation5]  }
  0x5b   : > { %s3779_s26 = sshll.u32 %s3852_s23, 4  ;;  %s3780_s26 = int_to_ptr.vmem [resolvable:$false] %s3779_s26 }
  0x5c   : > { %277 = vrot.lane.b32.xlu1 %v4071_v24, %s3846_s25  ;;  %275 = vrot.lane.b32.xlu0 %v4074_v25, %s3846_s25  ;;  %p3777_p13 = pnand %p3776_p11, %p9369_p12  ;;  %p3782_p5 = scmp.lt.s32.totalorder %s8008_s13, %s3780_s26 }
  0x5e   : > { %p3778_p4 = pneg %p3777_p13 }
  0x60   : > { %281 = vrot.lane.b32.xlu1 %v4081_v26, %s3846_s25  ;;  %279 = vrot.lane.b32.xlu0 %v4084_v27, %s3846_s25 }
  0x64   : > { %285 = vrot.lane.b32.xlu1 %v4091_v28, %s3846_s25  ;;  %283 = vrot.lane.b32.xlu0 %v4094_v29, %s3846_s25 }
  0x68   : > { %289 = vrot.lane.b32.xlu1 %v4101_v30, %s3846_s25  ;;  %287 = vrot.lane.b32.xlu0 %v4104_v31, %s3846_s25 }
  0x6c   : > { %325 = vrot.lane.b32.xlu1 %v4111_v32, %s3847_s27  ;;  %323 = vrot.lane.b32.xlu0 %v4114_v33, %s3847_s27 }
  0x70   : > { %329 = vrot.lane.b32.xlu1 %v4121_v34, %s3847_s27  ;;  %327 = vrot.lane.b32.xlu0 %v4124_v35, %s3847_s27 }
  0x74   : > { %333 = vrot.lane.b32.xlu1 %v4131_v36, %s3847_s27  ;;  %331 = vrot.lane.b32.xlu0 %v4134_v37, %s3847_s27  ;;  %v4292_v37 = vsel %vm499_vm0, %v560_v61, %v561_v59  ;;  %v4303_v36 = vld [vmem:[%s3960_s29 + $0x58] sm:$0xff] }
  0x75   : > { %v4322_v33 = vmul.f32 1.9641397e-05, %v4303_v36 }
  0x77   : > { %8522 = vst [vmem:[#allocation66_spill] sm:$0xff] %v4322_v33 }
  0x78   : > { %337 = vrot.lane.b32.xlu1 %v4141_v38, %s3847_s27  ;;  %335 = vrot.lane.b32.xlu0 %v4144_v39, %s3847_s27 }
  0x7c   : > { %357 = vrot.lane.b32.xlu1 %v4071_v24, %s3848_s28  ;;  %355 = vrot.lane.b32.xlu0 %v4074_v25, %s3848_s28  ;;  %v578_v25 = vrot.slane %v4322_v33, 1  ;;  %v4351_v24 = vmul.f32 0.0002392812, %v3970_v1  ;;  %v4364_v33 = vmul.f32 0.0002392812, %v3973_v2 }
  0x7e   : > { %8529 = vst [vmem:[#allocation73_spill] sm:$0xff] %v4351_v24  ;;  %8531 = vst [vmem:[#allocation75_spill] sm:$0xff] %v4364_v33 }
  0x80   : > { %361 = vrot.lane.b32.xlu1 %v4081_v26, %s3848_s28  ;;  %359 = vrot.lane.b32.xlu0 %v4084_v27, %s3848_s28  ;;  %v4325_v27 = vmul.f32 1.9641397e-05, %v4014_v13 }
  0x82   : > { %8523 = vst [vmem:[#allocation67_spill] sm:$0xff] %v4325_v27  ;;  %v575_v32 = vrot.slane %v4325_v27, 1  ;;  %v4367_v27 = vmul.f32 0.0002392812, %v4232_v49 }
  0x84   : > { %365 = vrot.lane.b32.xlu1 %v4091_v28, %s3848_s28  ;;  %363 = vrot.lane.b32.xlu0 %v4094_v29, %s3848_s28  ;;  %v565_v29 = vrot.slane %v4267_v62, 1  ;;  %v4296_v28 = vmul.f32 1.9641397e-05, %v3998_v9  ;;  %v4315_v62 = vmul.f32 1.9641397e-05, %v4011_v12  ;;  %8532 = vst [vmem:[#allocation76_spill] sm:$0xff] %v4367_v27 }
  0x86   : > { %8519 = vst [vmem:[#allocation63_spill] sm:$0xff] %v4296_v28  ;;  %8521 = vst [vmem:[#allocation65_spill] sm:$0xff] %v4315_v62  ;;  %v4318_v35 = vsel %vm499_vm0, %v565_v29, %v566_v51  ;;  %v570_v34 = vrot.slane %v4296_v28, 1  ;;  %v4340_v28 = vmul.f32 0.0002392812, %v3982_v5 }
  0x88   : > { %369 = vrot.lane.b32.xlu1 %v4101_v30, %s3848_s28  ;;  %367 = vrot.lane.b32.xlu0 %v4104_v31, %s3848_s28  ;;  %v4286_v31 = vmul.f32 1.9641397e-05, %v4270_v63  ;;  %v4289_v30 = vsel %vm499_vm0, %v561_v59, %v563_v60  ;;  %v4310_v59 = vsel %vm499_vm0, %v566_v51, %v568_v52  ;;  %v571_v60 = vrot.slane %v4283_v50, 1  ;;  %8526 = vst [vmem:[#allocation70_spill] sm:$0xff] %v4340_v28 }
  0x89   : > { %v576_v51 = vrot.slane %v4315_v62, 1 }
  0x8a   : > { %8518 = vst [vmem:[#allocation62_spill] sm:$0xff] %v4286_v31  ;;  %v573_v61 = vrot.slane %v4286_v31, 1  ;;  %v4343_v31 = vmul.f32 0.0002392812, %v4219_v46  ;;  %v4346_v50 = vsel %vm499_vm0, %v570_v34, %v571_v60  ;;  %v637_v34 = vrot.slane %v4340_v28, 1 }
  0x8b   : > { %8528 = vst [vmem:[#allocation72_spill] sm:$0xff] %v4346_v50  ;;  %v4370_v62 = vsel %vm499_vm0, %v576_v51, %v578_v25 }
  0x8c   : > { %389 = vrot.lane.b32.xlu1 %v4031_v16, %s3849_s30  ;;  %387 = vrot.lane.b32.xlu0 %v4034_v17, %s3849_s30  ;;  %v4336_v29 = vsel %vm499_vm0, %v571_v60, %v573_v61  ;;  %8527 = vst [vmem:[#allocation71_spill] sm:$0xff] %v4343_v31  ;;  %v639_v60 = vrot.slane %v4343_v31, 1  ;;  %8533 = vst [vmem:[#allocation77_spill] sm:$0xff] %v4370_v62  ;;  %v4393_v17 = vmul.f32 0.0002392812, %v3995_v8 }
  0x8d   : > { %8525 = vst [vmem:[#allocation69_spill] sm:$0xff] %v4336_v29 }
  0x8e   : > { %v4388_v25 = vsel %vm499_vm0, %v637_v34, %v639_v60  ;;  %8537 = vst [vmem:[#allocation81_spill] sm:$0xff] %v4393_v17 }
  0x90   : > { %393 = vrot.lane.b32.xlu1 %v4041_v18, %s3849_s30  ;;  %391 = vrot.lane.b32.xlu0 %v4044_v19, %s3849_s30 }
  0x94   : > { %397 = vrot.lane.b32.xlu1 %v4051_v20, %s3849_s30  ;;  %395 = vrot.lane.b32.xlu0 %v4054_v21, %s3849_s30  ;;  %v636_v21 = vrot.slane %v4351_v24, 1  ;;  %v4377_v20 = vmul.f32 0.0002392812, %v3967_v0  ;;  %v4481_v24 = vmul.f32 0.001072384, %v3967_v0 }
  0x96   : > { %8535 = vst [vmem:[#allocation79_spill] sm:$0xff] %v4377_v20  ;;  %v4396_v16 = vsel %vm499_vm0, %v636_v21, %v637_v34  ;;  %v647_v34 = vrot.slane %v4393_v17, 1  ;;  %8551 = vst [vmem:[#allocation95_spill] sm:$0xff] %v4481_v24  ;;  %v717_v28 = vrot.slane %v4481_v24, 1  ;;  %v4526_v24 = vmul.f32 0.001072384, %v4014_v13 }
  0x98   : > { %401 = vrot.lane.b32.xlu1 %v4061_v22, %s3849_s30  ;;  %399 = vrot.lane.b32.xlu0 %v4064_v23, %s3849_s30  ;;  %v4373_v22 = vsel %vm499_vm0, %v575_v32, %v576_v51  ;;  %v642_v32 = vrot.slane %v4364_v33, 1  ;;  %v644_v51 = vrot.slane %v4367_v27, 1  ;;  %v4478_v33 = vmul.f32 0.001072384, %v4232_v49  ;;  %8560 = vst [vmem:[#allocation104_spill] sm:$0xff] %v4526_v24 }
  0x99   : > { %8534 = vst [vmem:[#allocation78_spill] sm:$0xff] %v4373_v22 }
  0x9a   : > { %v4414_v21 = vsel %vm499_vm0, %v642_v32, %v644_v51  ;;  %8550 = vst [vmem:[#allocation94_spill] sm:$0xff] %v4478_v33 }
  0x9c   : > { %421 = vrot.lane.b32.xlu1 %v3992_v7, %s3850_s2  ;;  %419 = vrot.lane.b32.xlu0 %v3979_v4, %s3850_s2 }
  0xa0   : > { %425 = vrot.lane.b32.xlu1 %v3989_v6, %s3850_s2  ;;  %423 = vrot.lane.b32.xlu0 %v3976_v3, %s3850_s2 }
  0xa4   : > { %429 = vrot.lane.b32.xlu1 %v4005_v10, %s3850_s2  ;;  %427 = vrot.lane.b32.xlu0 %v4008_v11, %s3850_s2  ;;  %v4559_v11 = vmul.f32 0.0017680622, %v3970_v1 }
  0xa6   : > { %8564 = vst [vmem:[#allocation108_spill] sm:$0xff] %v4559_v11 }
  0xa8   : > { %433 = vrot.lane.b32.xlu1 %v4021_v14, %s3850_s2  ;;  %431 = vrot.lane.b32.xlu0 %v4024_v15, %s3850_s2 }
  0xac   : > { %461 = vrot.lane.b32.xlu1 %v4199_v40, %s3851_s3  ;;  %459 = vrot.lane.b32.xlu0 %v4202_v41, %s3851_s3  ;;  %v4442_v40 = vmul.f32 0.001072384, %v3982_v5 }
  0xae   : > { %v4214_v44 = vpop.permute.xlu1 %183  ;;  %v4216_v45 = vpop.permute.xlu0 %179  ;;  %8545 = vst [vmem:[#allocation89_spill] sm:$0xff] %v4442_v40 }
  0xb0   : > { %465 = vrot.lane.b32.xlu1 %v4212_v43, %s3851_s3  ;;  %463 = vrot.lane.b32.xlu0 %v4209_v42, %s3851_s3 }
  0xb2   : > { %v4243_v53 = vpop.permute.xlu1 %185  ;;  %v4245_v54 = vpop.permute.xlu0 %181 }
  0xb3   : > { %8510 = vst [vmem:[#allocation54_spill] sm:$0xff] %v4243_v53  ;;  %8511 = vst [vmem:[#allocation55_spill] sm:$0xff] %v4245_v54 }
  0xb4   : > { %469 = vrot.lane.b32.xlu1 %v4226_v47, %s3851_s3  ;;  %467 = vrot.lane.b32.xlu0 %v4229_v48, %s3851_s3  ;;  %v4418_v47 = vmul.f32 0.0002392812, %v4011_v12 }
  0xb6   : > { %v4272_v39 = vpop.permute.xlu1 %189  ;;  %v4274_v38 = vpop.permute.xlu0 %187  ;;  %8541 = vst [vmem:[#allocation85_spill] sm:$0xff] %v4418_v47 }
  0xb7   : > { %8516 = vst [vmem:[#allocation60_spill] sm:$0xff] %v4272_v39 }
  0xb8   : > { %473 = vrot.lane.b32.xlu1 %v4248_v55, %s3851_s3  ;;  %471 = vrot.lane.b32.xlu0 %v4255_v56, %s3851_s3  ;;  %v4403_v55 = vmul.f32 0.0002392812, %v3998_v9 }
  0xba   : > { %v4298_v57 = vpop.permute.xlu1 %193  ;;  %v4300_v58 = vpop.permute.xlu0 %191  ;;  %8539 = vst [vmem:[#allocation83_spill] sm:$0xff] %v4403_v55  ;;  %v646_v43 = vrot.slane %v4403_v55, 1  ;;  %v4445_v55 = vmul.f32 0.001072384, %v4219_v46 }
  0xbb   : > { %8520 = vst [vmem:[#allocation64_spill] sm:$0xff] %v4298_v57  ;;  %v4400_v57 = vmul.f32 0.0002392812, %v4270_v63 }
  0xbc   : > { %582 = vrot.lane.b32.xlu1 %v4289_v30, %s3844_s16  ;;  %580 = vrot.lane.b32.xlu0 %v4292_v37, %s3844_s16  ;;  %8546 = vst [vmem:[#allocation90_spill] sm:$0xff] %v4445_v55 }
  0xbd   : > { %8538 = vst [vmem:[#allocation82_spill] sm:$0xff] %v4400_v57  ;;  %v649_v53 = vrot.slane %v4400_v57, 1  ;;  %v4451_v57 = vsel %vm499_vm0, %v646_v43, %v647_v34  ;;  %v713_v43 = vrot.slane %v4442_v40, 1  ;;  %v4491_v40 = vmul.f32 0.001072384, %v4270_v63 }
  0xbe   : > { %v4327_v52 = vpop.permute.xlu1 %229  ;;  %v4329_v26 = vpop.permute.xlu0 %227 }
  0xbf   : > { %8524 = vst [vmem:[#allocation68_spill] sm:$0xff] %v4327_v52  ;;  %v4429_v52 = vmul.f32 0.0002392812, %v4014_v13  ;;  %8554 = vst [vmem:[#allocation98_spill] sm:$0xff] %v4491_v40 }
  0xc0   : > { %586 = vrot.lane.b32.xlu1 %v4310_v59, %s3844_s16  ;;  %584 = vrot.lane.b32.xlu0 %v4318_v35, %s3844_s16 }
  0xc1   : > { %8543 = vst [vmem:[#allocation87_spill] sm:$0xff] %v4429_v52  ;;  %v651_v17 = vrot.slane %v4429_v52, 1  ;;  %v4471_v52 = vmul.f32 0.001072384, %v3973_v2 }
  0xc2   : > { %v4353_v61 = vpop.permute.xlu1 %233  ;;  %v4355_v23 = vpop.permute.xlu0 %231 }
  0xc3   : > { %8530 = vst [vmem:[#allocation74_spill] sm:$0xff] %v4353_v61  ;;  %v4421_v61 = vmul.f32 0.0002392812, %v4303_v36  ;;  %8549 = vst [vmem:[#allocation93_spill] sm:$0xff] %v4471_v52 }
  0xc4   : > { %590 = vrot.lane.b32.xlu1 %v4336_v29, %s3844_s16  ;;  %588 = vrot.lane.b32.xlu0 %v4346_v50, %s3844_s16  ;;  %v4556_v29 = vmul.f32 0.0017680622, %v4219_v46 }
  0xc5   : > { %8542 = vst [vmem:[#allocation86_spill] sm:$0xff] %v4421_v61 }
  0xc6   : > { %v4379_v19 = vpop.permute.xlu1 %237  ;;  %v4381_v18 = vpop.permute.xlu0 %235  ;;  %8563 = vst [vmem:[#allocation107_spill] sm:$0xff] %v4556_v29 }
  0xc7   : > { %8536 = vst [vmem:[#allocation80_spill] sm:$0xff] %v4379_v19  ;;  %v641_v19 = vrot.slane %v4377_v20, 1  ;;  %v4455_v20 = vmul.f32 0.001072384, %v3970_v1  ;;  %v4581_v1 = vmul.f32 0.0017680622, %v3967_v0 }
  0xc8   : > { %594 = vrot.lane.b32.xlu1 %v4370_v62, %s3844_s16  ;;  %592 = vrot.lane.b32.xlu0 %v4373_v22, %s3844_s16  ;;  %v4507_v22 = vmul.f32 0.001072384, %v3998_v9 }
  0xc9   : > { %8547 = vst [vmem:[#allocation91_spill] sm:$0xff] %v4455_v20  ;;  %v712_v27 = vrot.slane %v4455_v20, 1  ;;  %8568 = vst [vmem:[#allocation112_spill] sm:$0xff] %v4581_v1 }
  0xca   : > { %v4405_v60 = vpop.permute.xlu1 %241  ;;  %v4407_v39 = vpop.permute.xlu0 %239  ;;  %8555 = vst [vmem:[#allocation99_spill] sm:$0xff] %v4507_v22 }
  0xcb   : > { %8540 = vst [vmem:[#allocation84_spill] sm:$0xff] %v4405_v60  ;;  %v4424_v60 = vsel %vm499_vm0, %v641_v19, %v642_v32  ;;  %v652_v19 = vrot.slane %v4418_v47, 1  ;;  %v654_v32 = vrot.slane %v4421_v61, 1  ;;  %v4502_v20 = vsel %vm499_vm0, %v712_v27, %v713_v43 }
  0xcc   : > { %658 = vrot.lane.b32.xlu1 %v4388_v25, %s3845_s24  ;;  %656 = vrot.lane.b32.xlu0 %v4396_v16, %s3845_s24  ;;  %v4520_v27 = vmul.f32 0.001072384, %v4011_v12 }
  0xce   : > { %v4431_v51 = vpop.permute.xlu1 %277  ;;  %v4433_v54 = vpop.permute.xlu0 %275  ;;  %8558 = vst [vmem:[#allocation102_spill] sm:$0xff] %v4520_v27 }
  0xcf   : > { %8544 = vst [vmem:[#allocation88_spill] sm:$0xff] %v4431_v51  ;;  %v4448_v51 = vsel %vm499_vm0, %v647_v34, %v649_v53  ;;  %v4466_v53 = vsel %vm499_vm0, %v652_v19, %v654_v32  ;;  %v715_v34 = vrot.slane %v4445_v55, 1  ;;  %v4488_v55 = vmul.f32 0.001072384, %v3995_v8 }
  0xd0   : > { %662 = vrot.lane.b32.xlu1 %v4414_v21, %s3845_s24  ;;  %660 = vrot.lane.b32.xlu0 %v4424_v60, %s3845_s24 }
  0xd1   : > { %8553 = vst [vmem:[#allocation97_spill] sm:$0xff] %v4488_v55  ;;  %v723_v14 = vrot.slane %v4488_v55, 1  ;;  %v722_v55 = vrot.slane %v4507_v22, 1 }
  0xd2   : > { %v4457_v47 = vpop.permute.xlu1 %281  ;;  %v4459_v61 = vpop.permute.xlu0 %279 }
  0xd3   : > { %8548 = vst [vmem:[#allocation92_spill] sm:$0xff] %v4457_v47  ;;  %v4474_v47 = vsel %vm499_vm0, %v651_v17, %v652_v19  ;;  %v4498_v17 = vsel %vm499_vm0, %v713_v43, %v715_v34  ;;  %v718_v19 = vrot.slane %v4471_v52, 1  ;;  %v725_v34 = vrot.slane %v4491_v40, 1 }
  0xd4   : > { %666 = vrot.lane.b32.xlu1 %v4448_v51, %s3845_s24  ;;  %664 = vrot.lane.b32.xlu0 %v4451_v57, %s3845_s24  ;;  %v4523_v43 = vmul.f32 0.001072384, %v4303_v36  ;;  %v4550_v22 = vsel %vm499_vm0, %v722_v55, %v723_v14 }
  0xd5   : > { %v4532_v40 = vsel %vm499_vm0, %v717_v28, %v718_v19  ;;  %v4544_v50 = vsel %vm499_vm0, %v723_v14, %v725_v34 }
  0xd6   : > { %v4483_v32 = vpop.permute.xlu1 %285  ;;  %v4485_v31 = vpop.permute.xlu0 %283  ;;  %8559 = vst [vmem:[#allocation103_spill] sm:$0xff] %v4523_v43  ;;  %v730_v28 = vrot.slane %v4523_v43, 1  ;;  %v4566_v43 = vmul.f32 0.0017680622, %v3973_v2  ;;  %v788_v2 = vrot.slane %v4559_v11, 1 }
  0xd7   : > { %8552 = vst [vmem:[#allocation96_spill] sm:$0xff] %v4483_v32  ;;  %v720_v32 = vrot.slane %v4478_v33, 1 }
  0xd8   : > { %670 = vrot.lane.b32.xlu1 %v4466_v53, %s3845_s24  ;;  %668 = vrot.lane.b32.xlu0 %v4474_v47, %s3845_s24  ;;  %8566 = vst [vmem:[#allocation110_spill] sm:$0xff] %v4566_v43  ;;  %v794_v46 = vrot.slane %v4566_v43, 1  ;;  %v793_v43 = vrot.slane %v4581_v1, 1  ;;  %v4618_v1 = vmul.f32 0.0017680622, %v4303_v36 }
  0xd9   : > { %v4529_v33 = vsel %vm499_vm0, %v718_v19, %v720_v32  ;;  %v728_v32 = vrot.slane %v4520_v27, 1  ;;  %v727_v19 = vrot.slane %v4526_v24, 1  ;;  %v4569_v24 = vmul.f32 0.0017680622, %v4232_v49 }
  0xda   : > { %v4509_v62 = vpop.permute.xlu1 %289  ;;  %v4511_v15 = vpop.permute.xlu0 %287  ;;  %8575 = vst [vmem:[#allocation119_spill] sm:$0xff] %v4618_v1 }
  0xdb   : > { %8556 = vst [vmem:[#allocation100_spill] sm:$0xff] %v4509_v62  ;;  %8557 = vst [vmem:[#allocation101_spill] sm:$0xff] %v4511_v15  ;;  %v731_v14 = vsel %vm499_vm0, %v728_v32, %v730_v28  ;;  %v729_v55 = vsel %vm499_vm0, %v727_v19, %v728_v32  ;;  %v796_v15 = vrot.slane %v4569_v24, 1  ;;  %v4592_v32 = vmul.f32 0.0017680622, %v3995_v8 }
  0xdc   : > { %734 = vrot.lane.b32.xlu1 %v4498_v17, %s3846_s25  ;;  %732 = vrot.lane.b32.xlu0 %v4502_v20, %s3846_s25  ;;  %8567 = vst [vmem:[#allocation111_spill] sm:$0xff] %v4569_v24  ;;  %v4595_v28 = vmul.f32 0.0017680622, %v4270_v63  ;;  %v4598_v19 = vmul.f32 0.0017680622, %v3998_v9 }
  0xdd   : > { %8570 = vst [vmem:[#allocation114_spill] sm:$0xff] %v4592_v32  ;;  %v799_v8 = vrot.slane %v4592_v32, 1 }
  0xde   : > { %v4535_v52 = vpop.permute.xlu1 %325  ;;  %v4537_v62 = vpop.permute.xlu0 %323  ;;  %8571 = vst [vmem:[#allocation115_spill] sm:$0xff] %v4595_v28  ;;  %8572 = vst [vmem:[#allocation116_spill] sm:$0xff] %v4598_v19  ;;  %v801_v9 = vrot.slane %v4595_v28, 1  ;;  %v806_v28 = vrot.slane %v4618_v1, 1 }
  0xdf   : > { %8561 = vst [vmem:[#allocation105_spill] sm:$0xff] %v4535_v52  ;;  %v4553_v52 = vmul.f32 0.0017680622, %v3982_v5 }
  0xe0   : > { %738 = vrot.lane.b32.xlu1 %v4529_v33, %s3846_s25  ;;  %736 = vrot.lane.b32.xlu0 %v4532_v40, %s3846_s25 }
  0xe1   : > { %8562 = vst [vmem:[#allocation106_spill] sm:$0xff] %v4553_v52  ;;  %v789_v27 = vrot.slane %v4553_v52, 1 }
  0xe2   : > { %v4561_v34 = vpop.permute.xlu1 %329  ;;  %v4563_v10 = vpop.permute.xlu0 %327 }
  0xe3   : > { %8565 = vst [vmem:[#allocation109_spill] sm:$0xff] %v4561_v34  ;;  %v791_v34 = vrot.slane %v4556_v29, 1  ;;  %v790_v29 = vsel %vm499_vm0, %v788_v2, %v789_v27  ;;  %v795_v2 = vsel %vm499_vm0, %v793_v43, %v794_v46 }
  0xe4   : > { %742 = vrot.lane.b32.xlu1 %v4544_v50, %s3846_s25  ;;  %740 = vrot.lane.b32.xlu0 %v4550_v22, %s3846_s25 }
  0xe5   : > { %v792_v11 = vsel %vm499_vm0, %v789_v27, %v791_v34  ;;  %v798_v34 = vrot.slane %v4598_v19, 1  ;;  %v4615_v27 = vmul.f32 0.0017680622, %v4011_v12  ;;  %v802_v19 = vsel %vm499_vm0, %v799_v8, %v801_v9 }
  0xe6   : > { %v4583_v5 = vpop.permute.xlu1 %333  ;;  %v4585_v49 = vpop.permute.xlu0 %331 }
  0xe7   : > { %8569 = vst [vmem:[#allocation113_spill] sm:$0xff] %v4583_v5  ;;  %v797_v5 = vsel %vm499_vm0, %v794_v46, %v796_v15  ;;  %8574 = vst [vmem:[#allocation118_spill] sm:$0xff] %v4615_v27  ;;  %v800_v46 = vsel %vm499_vm0, %v798_v34, %v799_v8  ;;  %v804_v43 = vrot.slane %v4615_v27, 1 }
  0xe8   : > { %746 = vrot.lane.b32.xlu1 %v731_v14, %s3846_s25  ;;  %744 = vrot.lane.b32.xlu0 %v729_v55, %s3846_s25 }
  0xea   : > { %v4603_v24 = vpop.permute.xlu1 %337  ;;  %v4605_v52 = vpop.permute.xlu0 %335 }
  0xeb   : > { %8573 = vst [vmem:[#allocation117_spill] sm:$0xff] %v4603_v24 }
  0xec   : > { %810 = vrot.lane.b32.xlu1 %v792_v11, %s3847_s27  ;;  %808 = vrot.lane.b32.xlu0 %v790_v29, %s3847_s27  ;;  %v4621_v11 = vmul.f32 0.0017680622, %v4014_v13 }
  0xee   : > { %8576 = vst [vmem:[#allocation120_spill] sm:$0xff] %v4621_v11  ;;  %v4623_v29 = vpop.permute.xlu1 %357  ;;  %v356_v15 = vpop.permute.xlu0 %355  ;;  %v803_v32 = vrot.slane %v4621_v11, 1 }
  0xef   : > { %8577 = vst [vmem:[#allocation121_spill] sm:$0xff] %v4623_v29 }
  0xf0   : > { %814 = vrot.lane.b32.xlu1 %v797_v5, %s3847_s27  ;;  %812 = vrot.lane.b32.xlu0 %v795_v2, %s3847_s27  ;;  %v807_v5 = vsel %vm499_vm0, %v804_v43, %v806_v28  ;;  %v805_v2 = vsel %vm499_vm0, %v803_v32, %v804_v43 }
  0xf2   : > { %v4632_v24 = vpop.permute.xlu1 %361  ;;  %v360_v13 = vpop.permute.xlu0 %359 }
  0xf3   : > { %8578 = vst [vmem:[#allocation122_spill] sm:$0xff] %v4632_v24 }
  0xf4   : > { %818 = vrot.lane.b32.xlu1 %v802_v19, %s3847_s27  ;;  %816 = vrot.lane.b32.xlu0 %v800_v46, %s3847_s27 }
  0xf6   : > { %v4638_v9 = vpop.permute.xlu1 %365  ;;  %v4640_v8 = vpop.permute.xlu0 %363 }
  0xf7   : > { %8579 = vst [vmem:[#allocation123_spill] sm:$0xff] %v4638_v9 }
  0xf8   : > { %822 = vrot.lane.b32.xlu1 %v807_v5, %s3847_s27  ;;  %820 = vrot.lane.b32.xlu0 %v805_v2, %s3847_s27 }
  0xfa   : > { %v4644_v34 = vpop.permute.xlu1 %369  ;;  %v4646_v11 = vpop.permute.xlu0 %367 }
  0xfb   : > { %8580 = vst [vmem:[#allocation124_spill] sm:$0xff] %v4644_v34 }
  0xfc   : > { %842 = vrot.lane.b32.xlu1 %v4498_v17, %s3848_s28  ;;  %840 = vrot.lane.b32.xlu0 %v4502_v20, %s3848_s28 }
  0xfe   : > { %v4652_v28 = vpop.permute.xlu1 %389  ;;  %v388_v32 = vpop.permute.xlu0 %387 }
  0xff   : > { %8581 = vst [vmem:[#allocation125_spill] sm:$0xff] %v4652_v28 }
 0x100   : > { %846 = vrot.lane.b32.xlu1 %v4529_v33, %s3848_s28  ;;  %844 = vrot.lane.b32.xlu0 %v4532_v40, %s3848_s28 }
 0x102   : > { %v4658_v19 = vpop.permute.xlu1 %393  ;;  %v392_v46 = vpop.permute.xlu0 %391 }
 0x103   : > { %8582 = vst [vmem:[#allocation126_spill] sm:$0xff] %v4658_v19 }
 0x104   : > { %850 = vrot.lane.b32.xlu1 %v4544_v50, %s3848_s28  ;;  %848 = vrot.lane.b32.xlu0 %v4550_v22, %s3848_s28  ;;  %v203_v50 = vadd.f32 %v4216_v45, %v4202_v41 }
 0x106   : > { %v4664_v17 = vpop.permute.xlu1 %397  ;;  %v396_v20 = vpop.permute.xlu0 %395 }
 0x107   : > { %8583 = vst [vmem:[#allocation127_spill] sm:$0xff] %v4664_v17 }
 0x108   : > { %854 = vrot.lane.b32.xlu1 %v731_v14, %s3848_s28  ;;  %852 = vrot.lane.b32.xlu0 %v729_v55, %s3848_s28 }
 0x10a   : > { %v4668_v33 = vpop.permute.xlu1 %401  ;;  %v4670_v43 = vpop.permute.xlu0 %399 }
 0x10b   : > { %8584 = vst [vmem:[#allocation128_spill] sm:$0xff] %v4668_v33 }
 0x10c   : > { %874 = vrot.lane.b32.xlu1 %v4388_v25, %s3849_s30  ;;  %872 = vrot.lane.b32.xlu0 %v4396_v16, %s3849_s30  ;;  %v251_v25 = vadd.f32 %v4329_v26, %v203_v50  ;;  %v205_v16 = vadd.f32 %v4214_v44, %v4209_v42  ;;  %v207_v26 = vadd.f32 %v4274_v38, %v4229_v48 }
 0x10d   : > { %v209_v38 = vadd.f32 %v4300_v58, %v4255_v56 }
 0x10e   : > { %v4676_v40 = vpop.permute.xlu1 %421  ;;  %v420_v22 = vpop.permute.xlu0 %419  ;;  %v253_v41 = vadd.f32 %v4355_v23, %v205_v16  ;;  %v500_v23 = vrot.slane %v3979_v4, 1  ;;  %v8629_v4 = vld [vmem:[#allocation12_spill] sm:$0xff] }
 0x10f   : > { %8585 = vst [vmem:[#allocation129_spill] sm:$0xff] %v4676_v40 }
 0x110   : > { %878 = vrot.lane.b32.xlu1 %v4414_v21, %s3849_s30  ;;  %876 = vrot.lane.b32.xlu0 %v4424_v60, %s3849_s30  ;;  %v299_v21 = vadd.f32 %v4433_v54, %v251_v25  ;;  %v301_v42 = vadd.f32 %v4459_v61, %v253_v41 }
 0x112   : > { %v4684_v14 = vpop.permute.xlu1 %425  ;;  %v424_v55 = vpop.permute.xlu0 %423  ;;  %v347_v45 = vadd.f32 %v4537_v62, %v299_v21  ;;  %v255_v62 = vadd.f32 %v4381_v18, %v207_v26 }
 0x113   : > { %8586 = vst [vmem:[#allocation130_spill] sm:$0xff] %v4684_v14 }
 0x114   : > { %882 = vrot.lane.b32.xlu1 %v4448_v51, %s3849_s30  ;;  %880 = vrot.lane.b32.xlu0 %v4451_v57, %s3849_s30  ;;  %v379_v44 = vadd.f32 %v356_v15, %v347_v45  ;;  %v501_v51 = vrot.slane %v3992_v7, 1  ;;  %v8593_v45 = vld [vmem:[#allocation18_spill] sm:$0xff] }
 0x115   : > { %v510_v26 = vrot.slane %v8593_v45, 1 }
 0x116   : > { %v4694_v60 = vpop.permute.xlu1 %429  ;;  %v428_v5 = vpop.permute.xlu0 %427  ;;  %v411_v2 = vadd.f32 %v388_v32, %v379_v44  ;;  %v502_v18 = vsel %vm499_vm0, %v500_v23, %v501_v51  ;;  %v505_v32 = vrot.slane %v3976_v3, 1 }
 0x117   : > { %8587 = vst [vmem:[#allocation131_spill] sm:$0xff] %v4694_v60 }
 0x118   : > { %886 = vrot.lane.b32.xlu1 %v4466_v53, %s3849_s30  ;;  %884 = vrot.lane.b32.xlu0 %v4474_v47, %s3849_s30  ;;  %v349_v53 = vadd.f32 %v4563_v10, %v301_v42  ;;  %v303_v47 = vadd.f32 %v4485_v31, %v255_v62  ;;  %v443_v61 = vadd.f32 %v420_v22, %v411_v2  ;;  %v506_v10 = vrot.slane %v3989_v6, 1 }
 0x11a   : > { %v4705_v54 = vpop.permute.xlu1 %433  ;;  %v432_v57 = vpop.permute.xlu0 %431  ;;  %v381_v48 = vadd.f32 %v360_v13, %v349_v53  ;;  %v8590_v13 = vld [vmem:[#allocation101_spill] sm:$0xff] }
 0x11b   : > { %8588 = vst [vmem:[#allocation132_spill] sm:$0xff] %v4705_v54 }
 0x11c   : > { %906 = vrot.lane.b32.xlu1 %v4289_v30, %s3850_s2  ;;  %904 = vrot.lane.b32.xlu0 %v4292_v37, %s3850_s2  ;;  %v257_v30 = vadd.f32 %v4407_v39, %v209_v38  ;;  %v351_v37 = vadd.f32 %v4585_v49, %v303_v47  ;;  %v413_v25 = vadd.f32 %v392_v46, %v381_v48  ;;  %v8592_v46 = vld [vmem:[#allocation17_spill] sm:$0xff]  ;;  %v8599_v47 = vld [vmem:[#allocation20_spill] sm:$0xff] }
 0x11d   : > { %v507_v39 = vsel %vm499_vm0, %v505_v32, %v506_v10  ;;  %v511_v41 = vrot.slane %v8592_v46, 1  ;;  %v516_v48 = vrot.slane %v8599_v47, 1 }
 0x11e   : > { %v4718_v15 = vpop.permute.xlu1 %461  ;;  %v460_v50 = vpop.permute.xlu0 %459  ;;  %v305_v31 = vadd.f32 %v8590_v13, %v257_v30  ;;  %v383_v56 = vadd.f32 %v4640_v8, %v351_v37  ;;  %v445_v58 = vadd.f32 %v424_v55, %v413_v25  ;;  %v8596_v8 = vld [vmem:[#allocation69_spill] sm:$0xff]  ;;  %v8597_v55 = vld [vmem:[#allocation72_spill] sm:$0xff]  ;;  %v8601_v37 = vld [vmem:[#allocation50_spill] sm:$0xff] }
 0x11f   : > { %8589 = vst [vmem:[#allocation133_spill] sm:$0xff] %v4718_v15  ;;  %v483_v16 = vadd.f32 %v460_v50, %v443_v61  ;;  %v8600_v61 = vld [vmem:[#allocation21_spill] sm:$0xff]  ;;  %v4757_v25 = vmul.f32 5.931188e-07, %v8601_v37 }
 0x120   : > { %910 = vrot.lane.b32.xlu1 %v4310_v59, %s3850_s2  ;;  %908 = vrot.lane.b32.xlu0 %v4318_v35, %s3850_s2  ;;  %v353_v59 = vadd.f32 %v4605_v52, %v305_v31  ;;  %v415_v42 = vadd.f32 %v396_v20, %v383_v56  ;;  %v8594_v35 = vld [vmem:[#allocation48_spill] sm:$0xff]  ;;  %v512_v52 = vsel %vm499_vm0, %v510_v26, %v511_v41  ;;  %v515_v50 = vrot.slane %v8600_v61, 1 }
 0x121   : > { %v4731_v22 = vadd.f32 %v502_v18, %v483_v16  ;;  %v4740_v44 = vmul.f32 5.931188e-07, %v8594_v35  ;;  %8602 = vst [vmem:[#allocation72_spill] sm:$0xff] %v4757_v25  ;;  %v8604_v16 = vld [vmem:[#allocation78_spill] sm:$0xff]  ;;  %v508_v26 = vrot.slane %v4757_v25, 1 }
 0x122   : > { %v4733_v21 = vpop.permute.xlu1 %465  ;;  %v464_v49 = vpop.permute.xlu0 %463  ;;  %v385_v62 = vadd.f32 %v4646_v11, %v353_v59  ;;  %v447_v53 = vadd.f32 %v428_v5, %v415_v42  ;;  %v8603_v5 = vld [vmem:[#allocation77_spill] sm:$0xff]  ;;  %v4773_v59 = vmul.f32 5.931188e-07, %v4270_v63  ;;  %v4852_v7 = vmul.f32 0.0029150418, %v8594_v35 }
 0x123   : > { %8591 = vst [vmem:[#allocation101_spill] sm:$0xff] %v4733_v21  ;;  %8595 = vst [vmem:[#allocation48_spill] sm:$0xff] %v4740_v44  ;;  %v485_v23 = vadd.f32 %v464_v49, %v445_v58  ;;  %v503_v30 = vrot.slane %v4740_v44, 1  ;;  %v517_v58 = vsel %vm499_vm0, %v515_v50, %v516_v48  ;;  %v8611_v50 = vld [vmem:[#allocation70_spill] sm:$0xff]  ;;  %v4849_v44 = vmul.f32 0.0029150418, %v8629_v4 }
 0x124   : > { %914 = vrot.lane.b32.xlu1 %v8596_v8, %s3850_s2  ;;  %912 = vrot.lane.b32.xlu0 %v8597_v55, %s3850_s2  ;;  %v417_v32 = vadd.f32 %v4670_v43, %v385_v62  ;;  %8607 = vst [vmem:[#allocation78_spill] sm:$0xff] %v4773_v59  ;;  %v513_v55 = vrot.slane %v4773_v59, 1  ;;  %v4789_v62 = vmul.f32 5.931188e-07, %v4303_v36  ;;  %8631 = vst [vmem:[#allocation146_spill] sm:$0xff] %v4852_v7 }
 0x125   : > { %v4747_v2 = vadd.f32 %v507_v39, %v485_v23  ;;  %v4769_v49 = vsel %vm499_vm0, %v501_v51, %v503_v30  ;;  %v4785_v51 = vsel %vm499_vm0, %v506_v10, %v508_v26  ;;  %v8612_v30 = vld [vmem:[#allocation71_spill] sm:$0xff]  ;;  %8630 = vst [vmem:[#allocation12_spill] sm:$0xff] %v4849_v44 }
 0x126   : > { %v4749_v38 = vpop.permute.xlu1 %469  ;;  %v468_v20 = vpop.permute.xlu0 %467  ;;  %v449_v13 = vadd.f32 %v432_v57, %v417_v32  ;;  %8609 = vst [vmem:[#allocation135_spill] sm:$0xff] %v4789_v62  ;;  %v518_v10 = vrot.slane %v4789_v62, 1  ;;  %v1014_v32 = vrot.slane %v8611_v50, 2  ;;  %v8619_v26 = vld [vmem:[#allocation75_spill] sm:$0xff]  ;;  %v1090_v50 = vrot.slane %v4849_v44, 2 }
 0x127   : > { %8598 = vst [vmem:[#allocation69_spill] sm:$0xff] %v4749_v38  ;;  %v487_v11 = vadd.f32 %v468_v20, %v447_v53  ;;  %v4799_v20 = vsel %vm499_vm0, %v511_v41, %v513_v55  ;;  %v8620_v55 = vld [vmem:[#allocation76_spill] sm:$0xff]  ;;  %v8621_v62 = vld [vmem:[#allocation79_spill] sm:$0xff] }
 0x128   : > { %918 = vrot.lane.b32.xlu1 %v8603_v5, %s3850_s2  ;;  %916 = vrot.lane.b32.xlu0 %v8604_v16, %s3850_s2  ;;  %8610 = vst [vmem:[#allocation136_spill] sm:$0xff] %v4799_v20  ;;  %v4813_v41 = vsel %vm499_vm0, %v516_v48, %v518_v10  ;;  %v1021_v61 = vrot.slane %v8620_v55, 2  ;;  %v1018_v47 = vrot.slane %v8621_v62, 2  ;;  %v8637_v55 = vld [vmem:[#allocation8_spill] sm:$0xff] }
 0x129   : > { %v4763_v31 = vadd.f32 %v512_v52, %v487_v11  ;;  %v1016_v11 = vrot.slane %v8612_v30, 2  ;;  %8616 = vst [vmem:[#allocation139_spill] sm:$0xff] %v4813_v41 }
 0x12a   : > { %v4765_v56 = vpop.permute.xlu1 %473  ;;  %v472_v43 = vpop.permute.xlu0 %471 }
 0x12b   : > { %8605 = vst [vmem:[#allocation50_spill] sm:$0xff] %v4763_v31  ;;  %8606 = vst [vmem:[#allocation77_spill] sm:$0xff] %v4765_v56  ;;  %v489_v42 = vadd.f32 %v472_v43, %v449_v13  ;;  %v5039_v31 = vld [vmem:[%s3960_s29 + $0x30] sm:$0xff] }
 0x12c   : > { %938 = vrot.lane.b32.xlu1 %v4769_v49, %s3851_s3  ;;  %936 = vrot.lane.b32.xlu0 %v502_v18, %s3851_s3  ;;  %8680 = vst [vmem:[#allocation182_spill] sm:$0xff] %v5039_v31 }
 0x12d   : > { %v4778_v57 = vadd.f32 %v517_v58, %v489_v42  ;;  %v1019_v42 = vrot.slane %v8619_v26, 2  ;;  %v4868_v26 = vmul.f32 0.0029150418, %v8637_v55  ;;  %v4884_v55 = vmul.f32 0.0029150418, %v8601_v37 }
 0x12e   : > { %v4780_v23 = vpop.permute.xlu1 %582  ;;  %v4782_v8 = vpop.permute.xlu0 %580 }
 0x12f   : > { %8608 = vst [vmem:[#allocation134_spill] sm:$0xff] %v4778_v57  ;;  %v4839_v46 = vsel %vm976_vm1, %v1019_v42, %v1021_v61  ;;  %v4842_v3 = vsel %vm976_vm1, %v1018_v47, %v1019_v42  ;;  %v8634_v42 = vld [vmem:[#allocation85_spill] sm:$0xff]  ;;  %8638 = vst [vmem:[#allocation8_spill] sm:$0xff] %v4868_v26  ;;  %v1089_v44 = vrot.slane %v4868_v26, 2  ;;  %v8649_v26 = vld [vmem:[#allocation15_spill] sm:$0xff] }
 0x130   : > { %942 = vrot.lane.b32.xlu1 %v4785_v51, %s3851_s3  ;;  %940 = vrot.lane.b32.xlu0 %v507_v39, %s3851_s3  ;;  %v8613_v39 = vld [vmem:[#allocation73_spill] sm:$0xff]  ;;  %8627 = vst [vmem:[#allocation144_spill] sm:$0xff] %v4839_v46  ;;  %8628 = vst [vmem:[#allocation145_spill] sm:$0xff] %v4842_v3  ;;  %v4914_v27 = vmul.f32 0.0029150418, %v8649_v26 }
 0x131   : > { %v1013_v5 = vrot.slane %v8613_v39, 2  ;;  %8643 = vst [vmem:[#allocation151_spill] sm:$0xff] %v4884_v55  ;;  %v5004_v57 = vmul.f32 0.013064311, %v8601_v37 }
 0x132   : > { %v4794_v18 = vpop.permute.xlu1 %586  ;;  %v4796_v53 = vpop.permute.xlu0 %584  ;;  %8650 = vst [vmem:[#allocation15_spill] sm:$0xff] %v4914_v27 }
 0x133   : > { %v4822_v43 = vsel %vm976_vm1, %v1013_v5, %v1014_v32  ;;  %v8626_v5 = vld [vmem:[#allocation83_spill] sm:$0xff]  ;;  %8672 = vst [vmem:[#allocation174_spill] sm:$0xff] %v5004_v57 }
 0x134   : > { %946 = vrot.lane.b32.xlu1 %v4799_v20, %s3851_s3  ;;  %944 = vrot.lane.b32.xlu0 %v512_v52, %s3851_s3  ;;  %v4819_v52 = vsel %vm976_vm1, %v1014_v32, %v1016_v11  ;;  %8618 = vst [vmem:[#allocation141_spill] sm:$0xff] %v4822_v43  ;;  %v8625_v32 = vld [vmem:[#allocation82_spill] sm:$0xff]  ;;  %v1023_v59 = vrot.slane %v8626_v5, 2  ;;  %v1029_v5 = vrot.slane %v8634_v42, 2 }
 0x135   : > { %8617 = vst [vmem:[#allocation140_spill] sm:$0xff] %v4819_v52  ;;  %v1026_v11 = vrot.slane %v8625_v32, 2  ;;  %v8635_v32 = vld [vmem:[#allocation86_spill] sm:$0xff] }
 0x136   : > { %v4808_v16 = vpop.permute.xlu1 %590  ;;  %v4810_v13 = vpop.permute.xlu0 %588  ;;  %v1031_v4 = vrot.slane %v8635_v32, 2 }
 0x137   : > { %8614 = vst [vmem:[#allocation137_spill] sm:$0xff] %v4808_v16  ;;  %8615 = vst [vmem:[#allocation138_spill] sm:$0xff] %v4810_v13 }
 0x138   : > { %950 = vrot.lane.b32.xlu1 %v4813_v41, %s3851_s3  ;;  %948 = vrot.lane.b32.xlu0 %v517_v58, %s3851_s3  ;;  %v8624_v58 = vld [vmem:[#allocation81_spill] sm:$0xff]  ;;  %v4890_v32 = vsel %vm976_vm1, %v1029_v5, %v1031_v4 }
 0x139   : > { %v1024_v10 = vrot.slane %v8624_v58, 2  ;;  %v8636_v58 = vld [vmem:[#allocation87_spill] sm:$0xff]  ;;  %8645 = vst [vmem:[#allocation153_spill] sm:$0xff] %v4890_v32 }
 0x13a   : > { %v4827_v45 = vpop.permute.xlu1 %594  ;;  %v4829_v48 = vpop.permute.xlu0 %592  ;;  %v1028_v62 = vrot.slane %v8636_v58, 2  ;;  %v4887_v58 = vmul.f32 0.0029150418, %v3967_v0 }
 0x13b   : > { %8622 = vst [vmem:[#allocation142_spill] sm:$0xff] %v4827_v45  ;;  %8623 = vst [vmem:[#allocation143_spill] sm:$0xff] %v4829_v48  ;;  %v4859_v61 = vsel %vm976_vm1, %v1024_v10, %v1026_v11  ;;  %v4862_v47 = vsel %vm976_vm1, %v1023_v59, %v1024_v10  ;;  %v1092_v11 = vrot.slane %v4852_v7, 2  ;;  %v8641_v59 = vld [vmem:[#allocation9_spill] sm:$0xff]  ;;  %v5023_v45 = vmul.f32 0.013064311, %v4270_v63 }
 0x13c   : > { %1035 = vrot.lane.b32.xlu1 %v4819_v52, %s3844_s16  ;;  %1033 = vrot.lane.b32.xlu0 %v4822_v43, %s3844_s16  ;;  %8632 = vst [vmem:[#allocation147_spill] sm:$0xff] %v4859_v61  ;;  %8633 = vst [vmem:[#allocation148_spill] sm:$0xff] %v4862_v47  ;;  %v4881_v10 = vmul.f32 0.0029150418, %v8641_v59  ;;  %v4893_v7 = vsel %vm976_vm1, %v1028_v62, %v1029_v5  ;;  %v1097_v62 = vrot.slane %v4884_v55, 2  ;;  %v1094_v5 = vrot.slane %v4887_v58, 2 }
 0x13d   : > { %8644 = vst [vmem:[#allocation152_spill] sm:$0xff] %v4887_v58  ;;  %8646 = vst [vmem:[#allocation154_spill] sm:$0xff] %v4893_v7  ;;  %v4905_v0 = vsel %vm976_vm1, %v1090_v50, %v1092_v11  ;;  %v4911_v59 = vsel %vm976_vm1, %v1089_v44, %v1090_v50  ;;  %v4927_v55 = vmul.f32 0.0029150418, %v4011_v12  ;;  %v4930_v44 = vmul.f32 0.0029150418, %v4303_v36 }
 0x13e   : > { %v4844_v25 = vpop.permute.xlu1 %658  ;;  %v4846_v6 = vpop.permute.xlu0 %656  ;;  %8642 = vst [vmem:[#allocation9_spill] sm:$0xff] %v4881_v10  ;;  %v1095_v4 = vrot.slane %v4881_v10, 2  ;;  %v1100_v12 = vrot.slane %v4914_v27, 2  ;;  %v8658_v10 = vld [vmem:[#allocation19_spill] sm:$0xff]  ;;  %8679 = vst [vmem:[#allocation181_spill] sm:$0xff] %v5023_v45 }
 0x13f   : > { %8656 = vst [vmem:[#allocation160_spill] sm:$0xff] %v4927_v55  ;;  %8657 = vst [vmem:[#allocation161_spill] sm:$0xff] %v4930_v44  ;;  %v1105_v43 = vrot.slane %v4927_v55, 2 }
 0x140   : > { %1039 = vrot.lane.b32.xlu1 %v4839_v46, %s3844_s16  ;;  %1037 = vrot.lane.b32.xlu0 %v4842_v3, %s3844_s16  ;;  %v4937_v50 = vsel %vm976_vm1, %v1095_v4, %v1097_v62  ;;  %v4940_v26 = vsel %vm976_vm1, %v1094_v5, %v1095_v4  ;;  %v4946_v3 = vmul.f32 0.0029150418, %v8658_v10  ;;  %v1107_v62 = vrot.slane %v4930_v44, 2  ;;  %v4959_v4 = vld [vmem:[%s3960_s29 + $0x8] sm:$0xff] }
 0x141   : > { %8661 = vst [vmem:[#allocation163_spill] sm:$0xff] %v4959_v4  ;;  %v4962_v5 = vmul.f32 0.013064311, %v4959_v4  ;;  %v4965_v10 = vmul.f32 0.013064311, %v8594_v35 }
 0x142   : > { %v4870_v39 = vpop.permute.xlu1 %662  ;;  %v4872_v30 = vpop.permute.xlu0 %660  ;;  %8659 = vst [vmem:[#allocation19_spill] sm:$0xff] %v4946_v3  ;;  %v1104_v27 = vrot.slane %v4946_v3, 2 }
 0x143   : > { %8639 = vst [vmem:[#allocation149_spill] sm:$0xff] %v4870_v39  ;;  %8640 = vst [vmem:[#allocation150_spill] sm:$0xff] %v4872_v30 }
 0x144   : > { %1043 = vrot.lane.b32.xlu1 %v4859_v61, %s3844_s16  ;;  %1041 = vrot.lane.b32.xlu0 %v4862_v47, %s3844_s16  ;;  %v8652_v47 = vld [vmem:[#allocation16_spill] sm:$0xff]  ;;  %8662 = vst [vmem:[#allocation164_spill] sm:$0xff] %v4962_v5  ;;  %8663 = vst [vmem:[#allocation165_spill] sm:$0xff] %v4965_v10  ;;  %v4995_v3 = vsel %vm976_vm1, %v1104_v27, %v1105_v43  ;;  %v5017_v27 = vld [vmem:[%s3960_s29 + $0x38] sm:$0xff] }
 0x145   : > { %8669 = vst [vmem:[#allocation171_spill] sm:$0xff] %v4995_v3  ;;  %8677 = vst [vmem:[#allocation179_spill] sm:$0xff] %v5017_v27 }
 0x146   : > { %v4896_v42 = vpop.permute.xlu1 %666  ;;  %v4898_v1 = vpop.permute.xlu0 %664 }
 0x147   : > { %8647 = vst [vmem:[#allocation155_spill] sm:$0xff] %v4896_v42  ;;  %8648 = vst [vmem:[#allocation156_spill] sm:$0xff] %v4898_v1  ;;  %v4989_v1 = vsel %vm976_vm1, %v1105_v43, %v1107_v62  ;;  %v4998_v42 = vld [vmem:[%s3960_s29 + $0x20] sm:$0xff]  ;;  %v5007_v62 = vld [vmem:[%s3960_s29 + $0x18] sm:$0xff]  ;;  %v5020_v43 = vmul.f32 0.013064311, %v5017_v27 }
 0x148   : > { %1047 = vrot.lane.b32.xlu1 %v4890_v32, %s3844_s16  ;;  %1045 = vrot.lane.b32.xlu0 %v4893_v7, %s3844_s16  ;;  %v4917_v32 = vmul.f32 0.0029150418, %v4270_v63  ;;  %v4920_v7 = vmul.f32 0.0029150418, %v8652_v47  ;;  %8668 = vst [vmem:[#allocation170_spill] sm:$0xff] %v4989_v1  ;;  %8670 = vst [vmem:[#allocation172_spill] sm:$0xff] %v4998_v42 }
 0x149   : > { %v5001_v48 = vmul.f32 0.013064311, %v4998_v42  ;;  %8673 = vst [vmem:[#allocation175_spill] sm:$0xff] %v5007_v62  ;;  %8678 = vst [vmem:[#allocation180_spill] sm:$0xff] %v5020_v43 }
 0x14a   : > { %8651 = vst [vmem:[#allocation157_spill] sm:$0xff] %v4917_v32  ;;  %8653 = vst [vmem:[#allocation16_spill] sm:$0xff] %v4920_v7  ;;  %v4922_v11 = vpop.permute.xlu1 %670  ;;  %v4924_v61 = vpop.permute.xlu0 %668  ;;  %v1102_v47 = vrot.slane %v4917_v32, 2  ;;  %v1099_v58 = vrot.slane %v4920_v7, 2  ;;  %v4968_v7 = vld [vmem:[%s3960_s29] sm:$0xff] }
 0x14b   : > { %8654 = vst [vmem:[#allocation158_spill] sm:$0xff] %v4922_v11  ;;  %8655 = vst [vmem:[#allocation159_spill] sm:$0xff] %v4924_v61  ;;  %v4971_v55 = vmul.f32 0.013064311, %v4968_v7  ;;  %v5100_v20 = vmul.f32 0.021539407, %v4968_v7 }
 0x14c   : > { %1111 = vrot.lane.b32.xlu1 %v4905_v0, %s3845_s24  ;;  %1109 = vrot.lane.b32.xlu0 %v4911_v59, %s3845_s24  ;;  %8664 = vst [vmem:[#allocation166_spill] sm:$0xff] %v4968_v7  ;;  %v4974_v44 = vsel %vm976_vm1, %v1100_v12, %v1102_v47  ;;  %v4977_v32 = vsel %vm976_vm1, %v1099_v58, %v1100_v12  ;;  %v1166_v47 = vrot.slane %v4962_v5, 2  ;;  %v1168_v58 = vrot.slane %v4965_v10, 2 }
 0x14d   : > { %8665 = vst [vmem:[#allocation167_spill] sm:$0xff] %v4971_v55  ;;  %v1165_v12 = vrot.slane %v4971_v55, 2  ;;  %8671 = vst [vmem:[#allocation173_spill] sm:$0xff] %v5001_v48  ;;  %v5010_v5 = vmul.f32 0.013064311, %v5007_v62  ;;  %v1241_v7 = vrot.slane %v5100_v20, 2 }
 0x14e   : > { %v4948_v46 = vpop.permute.xlu1 %734  ;;  %v4950_v61 = vpop.permute.xlu0 %732  ;;  %8693 = vst [vmem:[#allocation195_spill] sm:$0xff] %v5100_v20  ;;  %v5145_v20 = vmul.f32 0.021539407, %v5039_v31 }
 0x14f   : > { %8660 = vst [vmem:[#allocation162_spill] sm:$0xff] %v4950_v61  ;;  %8674 = vst [vmem:[#allocation176_spill] sm:$0xff] %v5010_v5  ;;  %v1170_v13 = vrot.slane %v5010_v5, 2 }
 0x150   : > { %1115 = vrot.lane.b32.xlu1 %v4937_v50, %s3845_s24  ;;  %1113 = vrot.lane.b32.xlu0 %v4940_v26, %s3845_s24  ;;  %8700 = vst [vmem:[#allocation202_spill] sm:$0xff] %v5145_v20 }
 0x152   : > { %v4980_v52 = vpop.permute.xlu1 %738  ;;  %v4982_v11 = vpop.permute.xlu0 %736 }
 0x153   : > { %8666 = vst [vmem:[#allocation168_spill] sm:$0xff] %v4980_v52  ;;  %8667 = vst [vmem:[#allocation169_spill] sm:$0xff] %v4982_v11  ;;  %v5030_v11 = vsel %vm976_vm1, %v1166_v47, %v1168_v58  ;;  %v1173_v52 = vrot.slane %v5004_v57, 2  ;;  %v1176_v58 = vrot.slane %v5020_v43, 2  ;;  %v5061_v57 = vmul.f32 0.013064311, %v4303_v36 }
 0x154   : > { %1119 = vrot.lane.b32.xlu1 %v4974_v44, %s3845_s24  ;;  %1117 = vrot.lane.b32.xlu0 %v4977_v32, %s3845_s24 }
 0x155   : > { %8686 = vst [vmem:[#allocation188_spill] sm:$0xff] %v5061_v57 }
 0x156   : > { %v5012_v10 = vpop.permute.xlu1 %742  ;;  %v5014_v55 = vpop.permute.xlu0 %740 }
 0x157   : > { %8675 = vst [vmem:[#allocation177_spill] sm:$0xff] %v5012_v10  ;;  %8676 = vst [vmem:[#allocation178_spill] sm:$0xff] %v5014_v55  ;;  %v5033_v55 = vsel %vm976_vm1, %v1165_v12, %v1166_v47  ;;  %v1171_v10 = vrot.slane %v5001_v48, 2  ;;  %v1178_v47 = vrot.slane %v5023_v45, 2  ;;  %v5055_v12 = vld [vmem:[%s3960_s29 + $0x50] sm:$0xff]  ;;  %v5064_v48 = vld [vmem:[%s3960_s29 + $0x48] sm:$0xff] }
 0x158   : > { %1123 = vrot.lane.b32.xlu1 %v4989_v1, %s3845_s24  ;;  %1121 = vrot.lane.b32.xlu0 %v4995_v3, %s3845_s24  ;;  %v5042_v1 = vmul.f32 0.013064311, %v5039_v31  ;;  %8684 = vst [vmem:[#allocation186_spill] sm:$0xff] %v5055_v12  ;;  %v5058_v5 = vmul.f32 0.013064311, %v5055_v12  ;;  %8687 = vst [vmem:[#allocation189_spill] sm:$0xff] %v5064_v48 }
 0x159   : > { %v5067_v43 = vmul.f32 0.013064311, %v5064_v48  ;;  %v5070_v45 = vsel %vm976_vm1, %v1171_v10, %v1173_v52  ;;  %v5085_v39 = vsel %vm976_vm1, %v1176_v58, %v1178_v47 }
 0x15a   : > { %8681 = vst [vmem:[#allocation183_spill] sm:$0xff] %v5042_v1  ;;  %v5044_v16 = vpop.permute.xlu1 %746  ;;  %v5046_v3 = vpop.permute.xlu0 %744  ;;  %8685 = vst [vmem:[#allocation187_spill] sm:$0xff] %v5058_v5  ;;  %v1181_v52 = vrot.slane %v5058_v5, 2 }
 0x15b   : > { %8682 = vst [vmem:[#allocation184_spill] sm:$0xff] %v5044_v16  ;;  %8683 = vst [vmem:[#allocation185_spill] sm:$0xff] %v5046_v3  ;;  %v5073_v3 = vsel %vm976_vm1, %v1170_v13, %v1171_v10  ;;  %v1175_v16 = vrot.slane %v5042_v1, 2  ;;  %v1183_v13 = vrot.slane %v5061_v57, 2  ;;  %v1180_v10 = vrot.slane %v5067_v43, 2 }
 0x15c   : > { %1187 = vrot.lane.b32.xlu1 %v5030_v11, %s3846_s25  ;;  %1185 = vrot.lane.b32.xlu0 %v5033_v55, %s3846_s25  ;;  %8688 = vst [vmem:[#allocation190_spill] sm:$0xff] %v5067_v43  ;;  %v5107_v57 = vmul.f32 0.021539407, %v4998_v42  ;;  %v5110_v43 = vmul.f32 0.021539407, %v8601_v37 }
 0x15d   : > { %v5091_v1 = vsel %vm976_vm1, %v1175_v16, %v1176_v58  ;;  %v5120_v16 = vsel %vm976_vm1, %v1180_v10, %v1181_v52  ;;  %v5126_v37 = vmul.f32 0.021539407, %v5007_v62  ;;  %v5142_v10 = vmul.f32 0.021539407, %v4270_v63 }
 0x15e   : > { %v5076_v41 = vpop.permute.xlu1 %810  ;;  %v5078_v30 = vpop.permute.xlu0 %808  ;;  %8695 = vst [vmem:[#allocation197_spill] sm:$0xff] %v5107_v57  ;;  %8696 = vst [vmem:[#allocation198_spill] sm:$0xff] %v5110_v43 }
 0x15f   : > { %8689 = vst [vmem:[#allocation191_spill] sm:$0xff] %v5076_v41  ;;  %8690 = vst [vmem:[#allocation192_spill] sm:$0xff] %v5078_v30  ;;  %v5094_v30 = vmul.f32 0.021539407, %v4959_v4  ;;  %v5097_v41 = vmul.f32 0.021539407, %v8594_v35  ;;  %v5117_v35 = vsel %vm976_vm1, %v1181_v52, %v1183_v13 }
 0x160   : > { %1191 = vrot.lane.b32.xlu1 %v5070_v45, %s3846_s25  ;;  %1189 = vrot.lane.b32.xlu0 %v5073_v3, %s3846_s25  ;;  %8697 = vst [vmem:[#allocation199_spill] sm:$0xff] %v5126_v37  ;;  %v1249_v13 = vrot.slane %v5110_v43, 2  ;;  %v5139_v52 = vmul.f32 0.021539407, %v5017_v27  ;;  %8699 = vst [vmem:[#allocation201_spill] sm:$0xff] %v5142_v10  ;;  %v1246_v43 = vrot.slane %v5126_v37, 2 }
 0x161   : > { %8691 = vst [vmem:[#allocation193_spill] sm:$0xff] %v5094_v30  ;;  %8692 = vst [vmem:[#allocation194_spill] sm:$0xff] %v5097_v41  ;;  %v1242_v58 = vrot.slane %v5094_v30, 2  ;;  %v1244_v42 = vrot.slane %v5097_v41, 2  ;;  %v1254_v31 = vrot.slane %v5142_v10, 2 }
 0x162   : > { %v5102_v47 = vpop.permute.xlu1 %814  ;;  %v5104_v61 = vpop.permute.xlu0 %812  ;;  %8698 = vst [vmem:[#allocation200_spill] sm:$0xff] %v5139_v52  ;;  %v1252_v27 = vrot.slane %v5139_v52, 2  ;;  %v5165_v37 = vmul.f32 0.021539407, %v4303_v36 }
 0x163   : > { %8694 = vst [vmem:[#allocation196_spill] sm:$0xff] %v5104_v61  ;;  %v1247_v61 = vrot.slane %v5107_v57, 2  ;;  %v1245_v41 = vsel %vm976_vm1, %v1242_v58, %v1244_v42  ;;  %v1243_v57 = vsel %vm976_vm1, %v1241_v7, %v1242_v58  ;;  %v1251_v42 = vrot.slane %v5145_v20, 2 }
 0x164   : > { %1195 = vrot.lane.b32.xlu1 %v5085_v39, %s3846_s25  ;;  %1193 = vrot.lane.b32.xlu0 %v5091_v1, %s3846_s25  ;;  %v5162_v58 = vmul.f32 0.021539407, %v5055_v12  ;;  %8704 = vst [vmem:[#allocation206_spill] sm:$0xff] %v5165_v37  ;;  %v1255_v20 = vsel %vm976_vm1, %v1252_v27, %v1254_v31  ;;  %v1259_v36 = vrot.slane %v5165_v37, 2  ;;  %v8715_v12 = vld [vmem:[#allocation88_spill] sm:$0xff] }
 0x165   : > { %v1250_v63 = vsel %vm976_vm1, %v1247_v61, %v1249_v13  ;;  %v1248_v7 = vsel %vm976_vm1, %v1246_v43, %v1247_v61  ;;  %v1253_v61 = vsel %vm976_vm1, %v1251_v42, %v1252_v27 }
 0x166   : > { %v5128_v4 = vpop.permute.xlu1 %818  ;;  %v5130_v5 = vpop.permute.xlu0 %816  ;;  %8703 = vst [vmem:[#allocation205_spill] sm:$0xff] %v5162_v58  ;;  %v1257_v43 = vrot.slane %v5162_v58, 2 }
 0x168   : > { %1199 = vrot.lane.b32.xlu1 %v5117_v35, %s3846_s25  ;;  %1197 = vrot.lane.b32.xlu0 %v5120_v16, %s3846_s25 }
 0x16a   : > { %v5150_v30 = vpop.permute.xlu1 %822  ;;  %v5152_v62 = vpop.permute.xlu0 %820 }
 0x16b   : > { %8701 = vst [vmem:[#allocation203_spill] sm:$0xff] %v5150_v30  ;;  %8702 = vst [vmem:[#allocation204_spill] sm:$0xff] %v5152_v62  ;;  %v8719_v62 = vld [vmem:[#allocation105_spill] sm:$0xff] }
 0x16c   : > { %1263 = vrot.lane.b32.xlu1 %v1245_v41, %s3847_s27  ;;  %1261 = vrot.lane.b32.xlu0 %v1243_v57, %s3847_s27  ;;  %v5168_v41 = vmul.f32 0.021539407, %v5064_v48 }
 0x16e   : > { %8705 = vst [vmem:[#allocation207_spill] sm:$0xff] %v5168_v41  ;;  %v5170_v57 = vpop.permute.xlu1 %842  ;;  %v5172_v13 = vpop.permute.xlu0 %840  ;;  %v1256_v10 = vrot.slane %v5168_v41, 2 }
 0x170   : > { %1267 = vrot.lane.b32.xlu1 %v1250_v63, %s3847_s27  ;;  %1265 = vrot.lane.b32.xlu0 %v1248_v7, %s3847_s27  ;;  %v1260_v63 = vsel %vm976_vm1, %v1257_v43, %v1259_v36  ;;  %v1258_v31 = vsel %vm976_vm1, %v1256_v10, %v1257_v43  ;;  %v8711_v10 = vld [vmem:[#allocation55_spill] sm:$0xff] }
 0x172   : > { %v5181_v52 = vpop.permute.xlu1 %846  ;;  %v5183_v48 = vpop.permute.xlu0 %844 }
 0x174   : > { %1271 = vrot.lane.b32.xlu1 %v1255_v20, %s3847_s27  ;;  %1269 = vrot.lane.b32.xlu0 %v1253_v61, %s3847_s27  ;;  %v8710_v20 = vld [vmem:[#allocation46_spill] sm:$0xff] }
 0x175   : > { %v204_v61 = vadd.f32 %v8711_v10, %v8710_v20  ;;  %v8718_v20 = vld [vmem:[#allocation74_spill] sm:$0xff] }
 0x176   : > { %v5189_v7 = vpop.permute.xlu1 %850  ;;  %v5191_v27 = vpop.permute.xlu0 %848 }
 0x177   : > { %8706 = vst [vmem:[#allocation208_spill] sm:$0xff] %v5189_v7  ;;  %8707 = vst [vmem:[#allocation209_spill] sm:$0xff] %v5191_v27  ;;  %v8725_v7 = vld [vmem:[#allocation80_spill] sm:$0xff] }
 0x178   : > { %1275 = vrot.lane.b32.xlu1 %v1260_v63, %s3847_s27  ;;  %1273 = vrot.lane.b32.xlu0 %v1258_v31, %s3847_s27  ;;  %v8712_v63 = vld [vmem:[#allocation68_spill] sm:$0xff]  ;;  %v8713_v31 = vld [vmem:[#allocation47_spill] sm:$0xff] }
 0x179   : > { %v252_v37 = vadd.f32 %v8712_v63, %v204_v61  ;;  %v8720_v61 = vld [vmem:[#allocation49_spill] sm:$0xff]  ;;  %v8721_v63 = vld [vmem:[#allocation60_spill] sm:$0xff] }
 0x17a   : > { %v5195_v42 = vpop.permute.xlu1 %854  ;;  %v5197_v41 = vpop.permute.xlu0 %852  ;;  %v208_v27 = vadd.f32 %v8721_v63, %v8720_v61  ;;  %v8726_v63 = vld [vmem:[#allocation84_spill] sm:$0xff] }
 0x17b   : > { %8708 = vst [vmem:[#allocation210_spill] sm:$0xff] %v5195_v42  ;;  %8709 = vst [vmem:[#allocation211_spill] sm:$0xff] %v5197_v41 }
 0x17c   : > { %1295 = vrot.lane.b32.xlu1 %v5030_v11, %s3848_s28  ;;  %1293 = vrot.lane.b32.xlu0 %v5033_v55, %s3848_s28  ;;  %v8714_v11 = vld [vmem:[#allocation54_spill] sm:$0xff]  ;;  %v300_v55 = vadd.f32 %v8715_v12, %v252_v37 }
 0x17d   : > { %v206_v58 = vadd.f32 %v8714_v11, %v8713_v31  ;;  %v8724_v11 = vld [vmem:[#allocation92_spill] sm:$0xff] }
 0x17e   : > { %v5205_v43 = vpop.permute.xlu1 %874  ;;  %v5207_v36 = vpop.permute.xlu0 %872  ;;  %v348_v30 = vadd.f32 %v8719_v62, %v300_v55  ;;  %v8727_v62 = vld [vmem:[#allocation109_spill] sm:$0xff] }
 0x17f   : > { %v254_v42 = vadd.f32 %v8718_v20, %v206_v58  ;;  %v256_v58 = vadd.f32 %v8725_v7, %v208_v27 }
 0x180   : > { %1299 = vrot.lane.b32.xlu1 %v5070_v45, %s3848_s28  ;;  %1297 = vrot.lane.b32.xlu0 %v5073_v3, %s3848_s28  ;;  %v8722_v3 = vld [vmem:[#allocation56_spill] sm:$0xff]  ;;  %v380_v31 = vadd.f32 %v4623_v29, %v348_v30  ;;  %v8811_v29 = vld [vmem:[#allocation167_spill] sm:$0xff] }
 0x181   : > { %v8723_v45 = vld [vmem:[#allocation64_spill] sm:$0xff]  ;;  %v302_v12 = vadd.f32 %v8724_v11, %v254_v42 }
 0x182   : > { %v5217_v41 = vpop.permute.xlu1 %878  ;;  %v5219_v10 = vpop.permute.xlu0 %876  ;;  %v210_v37 = vadd.f32 %v8723_v45, %v8722_v3  ;;  %v8729_v30 = vld [vmem:[#allocation100_spill] sm:$0xff] }
 0x183   : > { %8716 = vst [vmem:[#allocation212_spill] sm:$0xff] %v5217_v41  ;;  %8717 = vst [vmem:[#allocation213_spill] sm:$0xff] %v5219_v10  ;;  %v412_v10 = vadd.f32 %v4652_v28, %v380_v31  ;;  %v8810_v28 = vld [vmem:[#allocation165_spill] sm:$0xff] }
 0x184   : > { %1303 = vrot.lane.b32.xlu1 %v5085_v39, %s3848_s28  ;;  %1301 = vrot.lane.b32.xlu0 %v5091_v1, %s3848_s28  ;;  %v258_v61 = vadd.f32 %v8726_v63, %v210_v37  ;;  %v350_v39 = vadd.f32 %v8727_v62, %v302_v12  ;;  %v8728_v1 = vld [vmem:[#allocation96_spill] sm:$0xff]  ;;  %v8730_v37 = vld [vmem:[#allocation113_spill] sm:$0xff]  ;;  %v1521_v11 = vrot.slane %v8810_v28, 3 }
 0x185   : > { %v304_v41 = vadd.f32 %v8728_v1, %v256_v58  ;;  %v444_v45 = vadd.f32 %v4676_v40, %v412_v10  ;;  %v8731_v58 = vld [vmem:[#allocation117_spill] sm:$0xff] }
 0x186   : > { %v5234_v20 = vpop.permute.xlu1 %882  ;;  %v5236_v55 = vpop.permute.xlu0 %880  ;;  %v306_v27 = vadd.f32 %v8729_v30, %v258_v61  ;;  %v382_v42 = vadd.f32 %v4632_v24, %v350_v39 }
 0x187   : > { %v352_v63 = vadd.f32 %v8730_v37, %v304_v41  ;;  %v484_v3 = vadd.f32 %v4718_v15, %v444_v45  ;;  %v5263_v41 = vld [vmem:[%s3960_s29 + $0x10] sm:$0xff] }
 0x188   : > { %1307 = vrot.lane.b32.xlu1 %v5117_v35, %s3848_s28  ;;  %1305 = vrot.lane.b32.xlu0 %v5120_v16, %s3848_s28  ;;  %v354_v1 = vadd.f32 %v8731_v58, %v306_v27  ;;  %v414_v35 = vadd.f32 %v4658_v19, %v382_v42  ;;  %v5266_v10 = vmul.f32 7.225666e-06, %v5263_v41  ;;  %v5276_v42 = vld [vmem:[%s3960_s29 + $0x28] sm:$0xff] }
 0x189   : > { %v384_v16 = vadd.f32 %v4638_v9, %v352_v63  ;;  %v529_v58 = vadd.f32 %v4769_v49, %v484_v3  ;;  %v604_v49 = vadd.f32 %v4782_v8, %v4731_v22  ;;  %v8735_v3 = vld [vmem:[#allocation23_spill] sm:$0xff]  ;;  %v8737_v9 = vld [vmem:[#allocation25_spill] sm:$0xff] }
 0x18a   : > { %v5250_v12 = vpop.permute.xlu1 %886  ;;  %v5252_v31 = vpop.permute.xlu0 %884  ;;  %8732 = vst [vmem:[#allocation214_spill] sm:$0xff] %v5266_v10  ;;  %v386_v61 = vadd.f32 %v4644_v34, %v354_v1  ;;  %v446_v39 = vadd.f32 %v4684_v14, %v414_v35  ;;  %v8734_v35 = vld [vmem:[#allocation22_spill] sm:$0xff]  ;;  %v980_v34 = vrot.slane %v5266_v10, 2  ;;  %v982_v14 = vrot.slane %v8737_v9, 2  ;;  %v8816_v9 = vld [vmem:[#allocation176_spill] sm:$0xff] }
 0x18b   : > { %v416_v27 = vadd.f32 %v4664_v17, %v384_v16  ;;  %v978_v16 = vrot.slane %v8734_v35, 2  ;;  %v680_v22 = vadd.f32 %v4846_v6, %v604_v49  ;;  %v8820_v35 = vld [vmem:[#allocation181_spill] sm:$0xff] }
 0x18c   : > { %1327 = vrot.lane.b32.xlu1 %v4905_v0, %s3849_s30  ;;  %1325 = vrot.lane.b32.xlu0 %v4911_v59, %s3849_s30  ;;  %v5279_v0 = vmul.f32 7.225666e-06, %v5276_v42  ;;  %v418_v59 = vadd.f32 %v4668_v33, %v386_v61  ;;  %v486_v30 = vadd.f32 %v4733_v21, %v446_v39  ;;  %v605_v61 = vadd.f32 %v4780_v23, %v529_v58 }
 0x18d   : > { %v448_v1 = vadd.f32 %v4694_v60, %v416_v27  ;;  %v977_v39 = vrot.slane %v8735_v3, 2  ;;  %v5313_v58 = vsel %vm976_vm1, %v978_v16, %v980_v34 }
 0x18e   : > { %v5271_v45 = vpop.permute.xlu1 %906  ;;  %v5273_v63 = vpop.permute.xlu0 %904  ;;  %8733 = vst [vmem:[#allocation215_spill] sm:$0xff] %v5279_v0  ;;  %v450_v17 = vadd.f32 %v4705_v54, %v418_v59  ;;  %v985_v21 = vrot.slane %v5279_v0, 2  ;;  %v531_v59 = vadd.f32 %v4785_v51, %v486_v30  ;;  %v681_v23 = vadd.f32 %v4844_v25, %v605_v61  ;;  %v8738_v30 = vld [vmem:[#allocation162_spill] sm:$0xff]  ;;  %v8739_v61 = vld [vmem:[#allocation136_spill] sm:$0xff]  ;;  %v8745_v54 = vld [vmem:[#allocation137_spill] sm:$0xff] }
 0x18f   : > { %v488_v27 = vadd.f32 %v4749_v38, %v448_v1  ;;  %v606_v51 = vadd.f32 %v4796_v53, %v4747_v2  ;;  %v756_v6 = vadd.f32 %v8738_v30, %v680_v22  ;;  %v8740_v2 = vld [vmem:[#allocation149_spill] sm:$0xff]  ;;  %v8741_v53 = vld [vmem:[#allocation150_spill] sm:$0xff]  ;;  %v1523_v0 = vrot.slane %v8816_v9, 3 }
 0x190   : > { %1331 = vrot.lane.b32.xlu1 %v4937_v50, %s3849_s30  ;;  %1329 = vrot.lane.b32.xlu0 %v4940_v26, %s3849_s30  ;;  %v8736_v26 = vld [vmem:[#allocation24_spill] sm:$0xff]  ;;  %v490_v8 = vadd.f32 %v4765_v56, %v450_v17  ;;  %v607_v1 = vadd.f32 %v4794_v18, %v531_v59  ;;  %v757_v25 = vadd.f32 %v4948_v46, %v681_v23  ;;  %v8742_v23 = vld [vmem:[#allocation191_spill] sm:$0xff]  ;;  %v1531_v9 = vrot.slane %v8820_v35, 3 }
 0x191   : > { %v983_v60 = vrot.slane %v8736_v26, 2  ;;  %v533_v17 = vadd.f32 %v8739_v61, %v488_v27  ;;  %v682_v59 = vadd.f32 %v8741_v53, %v606_v51  ;;  %v8743_v27 = vld [vmem:[#allocation192_spill] sm:$0xff]  ;;  %v8744_v61 = vld [vmem:[#allocation139_spill] sm:$0xff] }
 0x192   : > { %v5297_v33 = vpop.permute.xlu1 %910  ;;  %v5299_v50 = vpop.permute.xlu0 %908  ;;  %v683_v46 = vadd.f32 %v8740_v2, %v607_v1  ;;  %v833_v22 = vadd.f32 %v8742_v23, %v757_v25  ;;  %v832_v30 = vadd.f32 %v8743_v27, %v756_v6  ;;  %v535_v56 = vadd.f32 %v8744_v61, %v490_v8  ;;  %v8751_v51 = vld [vmem:[#allocation168_spill] sm:$0xff]  ;;  %v8752_v6 = vld [vmem:[#allocation169_spill] sm:$0xff]  ;;  %v8753_v2 = vld [vmem:[#allocation142_spill] sm:$0xff] }
 0x193   : > { %v5329_v34 = vsel %vm976_vm1, %v983_v60, %v985_v21  ;;  %v5332_v18 = vsel %vm976_vm1, %v982_v14, %v983_v60  ;;  %v609_v38 = vadd.f32 %v8745_v54, %v533_v17  ;;  %v8748_v21 = vld [vmem:[#allocation170_spill] sm:$0xff]  ;;  %v8749_v14 = vld [vmem:[#allocation171_spill] sm:$0xff]  ;;  %v5347_v60 = vld [vmem:[%s3960_s29 + $0x40] sm:$0xff]  ;;  %v758_v8 = vadd.f32 %v8752_v6, %v682_v59 }
 0x194   : > { %1335 = vrot.lane.b32.xlu1 %v4974_v44, %s3849_s30  ;;  %1333 = vrot.lane.b32.xlu0 %v4977_v32, %s3849_s30  ;;  %v5326_v32 = vsel %vm976_vm1, %v977_v39, %v978_v16  ;;  %v8746_v16 = vld [vmem:[#allocation50_spill] sm:$0xff]  ;;  %v5350_v1 = vmul.f32 7.225666e-06, %v5347_v60  ;;  %v759_v25 = vadd.f32 %v8751_v51, %v683_v46  ;;  %v865_v54 = vadd.f32 %v5170_v57, %v833_v22  ;;  %v8755_v27 = vld [vmem:[#allocation143_spill] sm:$0xff]  ;;  %v8758_v59 = vld [vmem:[#allocation196_spill] sm:$0xff] }
 0x195   : > { %v8747_v39 = vld [vmem:[#allocation138_spill] sm:$0xff]  ;;  %v864_v17 = vadd.f32 %v5172_v13, %v832_v30  ;;  %v611_v53 = vadd.f32 %v8753_v2, %v535_v56  ;;  %v834_v51 = vadd.f32 %v8758_v59, %v758_v8  ;;  %v8760_v30 = vld [vmem:[#allocation177_spill] sm:$0xff] }
 0x196   : > { %v5321_v49 = vpop.permute.xlu1 %914  ;;  %v5323_v44 = vpop.permute.xlu0 %912  ;;  %v608_v37 = vadd.f32 %v8747_v39, %v8746_v16  ;;  %8750 = vst [vmem:[#allocation162_spill] sm:$0xff] %v5350_v1  ;;  %v8754_v23 = vld [vmem:[#allocation134_spill] sm:$0xff]  ;;  %v8756_v16 = vld [vmem:[#allocation155_spill] sm:$0xff]  ;;  %v835_v46 = vadd.f32 %v5102_v47, %v759_v25  ;;  %v897_v57 = vadd.f32 %v5205_v43, %v865_v54 }
 0x197   : > { %v610_v61 = vadd.f32 %v8755_v27, %v8754_v23  ;;  %v685_v39 = vadd.f32 %v8756_v16, %v609_v38  ;;  %v896_v13 = vadd.f32 %v5207_v36, %v864_v17  ;;  %v8759_v56 = vld [vmem:[#allocation158_spill] sm:$0xff]  ;;  %v8763_v23 = vld [vmem:[#allocation141_spill] sm:$0xff]  ;;  %v866_v43 = vadd.f32 %v5183_v48, %v834_v51  ;;  %v8765_v54 = vld [vmem:[#allocation159_spill] sm:$0xff] }
 0x198   : > { %1339 = vrot.lane.b32.xlu1 %v8748_v21, %s3849_s30  ;;  %1337 = vrot.lane.b32.xlu0 %v8749_v14, %s3849_s30  ;;  %v8757_v21 = vld [vmem:[#allocation156_spill] sm:$0xff]  ;;  %v687_v22 = vadd.f32 %v8759_v56, %v611_v53  ;;  %v8761_v2 = vld [vmem:[#allocation178_spill] sm:$0xff]  ;;  %v867_v25 = vadd.f32 %v5181_v52, %v835_v46  ;;  %v929_v36 = vadd.f32 %v5271_v45, %v897_v57  ;;  %v8769_v51 = vld [vmem:[#allocation185_spill] sm:$0xff] }
 0x199   : > { %v684_v14 = vadd.f32 %v8757_v21, %v608_v37  ;;  %v761_v6 = vadd.f32 %v8760_v30, %v685_v39  ;;  %v8762_v37 = vld [vmem:[#allocation140_spill] sm:$0xff]  ;;  %v8764_v27 = vld [vmem:[#allocation26_spill] sm:$0xff]  ;;  %v928_v8 = vadd.f32 %v5273_v63, %v896_v13  ;;  %v686_v17 = vadd.f32 %v8765_v54, %v610_v61  ;;  %v8771_v61 = vld [vmem:[#allocation209_spill] sm:$0xff] }
 0x19a   : > { %v5361_v19 = vpop.permute.xlu1 %918  ;;  %v5363_v15 = vpop.permute.xlu0 %916  ;;  %v988_v47 = vrot.slane %v8764_v27, 2  ;;  %v8766_v53 = vld [vmem:[#allocation184_spill] sm:$0xff] }
 0x19b   : > { %v760_v38 = vadd.f32 %v8761_v2, %v684_v14  ;;  %v763_v16 = vadd.f32 %v8766_v53, %v687_v22  ;;  %v837_v39 = vadd.f32 %v5128_v4, %v761_v6  ;;  %v8767_v56 = vld [vmem:[#allocation212_spill] sm:$0xff]  ;;  %v8768_v2 = vld [vmem:[#allocation213_spill] sm:$0xff]  ;;  %v762_v45 = vadd.f32 %v8769_v51, %v686_v17  ;;  %v8776_v53 = vld [vmem:[#allocation27_spill] sm:$0xff] }
 0x19c   : > { %1359 = vrot.lane.b32.xlu1 %v8762_v37, %s3850_s2  ;;  %1357 = vrot.lane.b32.xlu0 %v8763_v23, %s3850_s2  ;;  %v899_v30 = vadd.f32 %v8767_v56, %v867_v25  ;;  %v898_v52 = vadd.f32 %v8768_v2, %v866_v43  ;;  %v8770_v63 = vld [vmem:[#allocation208_spill] sm:$0xff]  ;;  %v8773_v4 = vld [vmem:[#allocation145_spill] sm:$0xff]  ;;  %v8774_v25 = vld [vmem:[#allocation203_spill] sm:$0xff] }
 0x19d   : > { %v836_v21 = vadd.f32 %v5130_v5, %v760_v38  ;;  %v869_v57 = vadd.f32 %v8770_v63, %v837_v39  ;;  %v8772_v22 = vld [vmem:[#allocation144_spill] sm:$0xff]  ;;  %v990_v5 = vrot.slane %v5350_v1, 2  ;;  %v839_v43 = vadd.f32 %v8774_v25, %v763_v16  ;;  %v8780_v16 = vld [vmem:[#allocation211_spill] sm:$0xff] }
 0x19e   : > { %v939_v14 = vpop.permute.xlu1 %938  ;;  %v937_v59 = vpop.permute.xlu0 %936  ;;  %v931_v6 = vadd.f32 %v5297_v33, %v899_v30  ;;  %v930_v38 = vadd.f32 %v5299_v50, %v898_v52  ;;  %v987_v39 = vrot.slane %v8776_v53, 2  ;;  %v8779_v30 = vld [vmem:[#allocation210_spill] sm:$0xff] }
 0x19f   : > { %v961_v46 = vadd.f32 %v939_v14, %v929_v36  ;;  %v960_v48 = vadd.f32 %v937_v59, %v928_v8  ;;  %v868_v13 = vadd.f32 %v8771_v61, %v836_v21  ;;  %v8775_v36 = vld [vmem:[#allocation204_spill] sm:$0xff]  ;;  %v5407_v21 = vld [vmem:[%s3960_s29 + $0x58] sm:$0xff]  ;;  %v901_v50 = vadd.f32 %v5234_v20, %v869_v57 }
 0x1a0   : > { %1363 = vrot.lane.b32.xlu1 %v8772_v22, %s3850_s2  ;;  %1361 = vrot.lane.b32.xlu0 %v8773_v4, %s3850_s2  ;;  %v838_v8 = vadd.f32 %v8775_v36, %v762_v45  ;;  %8777 = vst [vmem:[#allocation136_spill] sm:$0xff] %v5407_v21  ;;  %v5410_v33 = vmul.f32 7.225666e-06, %v5407_v21  ;;  %v871_v2 = vadd.f32 %v8779_v30, %v839_v43  ;;  %v8783_v22 = vld [vmem:[#allocation28_spill] sm:$0xff]  ;;  %v8785_v36 = vld [vmem:[#allocation153_spill] sm:$0xff] }
 0x1a1   : > { %v5398_v37 = vadd.f32 %v5313_v58, %v961_v46  ;;  %v5401_v23 = vadd.f32 %v5326_v32, %v960_v48  ;;  %v900_v14 = vadd.f32 %v5236_v55, %v868_v13  ;;  %v8781_v46 = vld [vmem:[#allocation147_spill] sm:$0xff]  ;;  %v8782_v48 = vld [vmem:[#allocation148_spill] sm:$0xff]  ;;  %v991_v51 = vsel %vm976_vm1, %v988_v47, %v990_v5 }
 0x1a2   : > { %v943_v54 = vpop.permute.xlu1 %942  ;;  %v941_v17 = vpop.permute.xlu0 %940  ;;  %8778 = vst [vmem:[#allocation149_spill] sm:$0xff] %v5410_v33  ;;  %v870_v52 = vadd.f32 %v8780_v16, %v838_v8  ;;  %v933_v45 = vadd.f32 %v5321_v49, %v901_v50  ;;  %v989_v61 = vsel %vm976_vm1, %v987_v39, %v988_v47  ;;  %v993_v4 = vrot.slane %v8783_v22, 2  ;;  %v8786_v8 = vld [vmem:[#allocation154_spill] sm:$0xff] }
 0x1a3   : > { %v963_v59 = vadd.f32 %v943_v54, %v931_v6  ;;  %v962_v56 = vadd.f32 %v941_v17, %v930_v38  ;;  %v932_v20 = vadd.f32 %v5323_v44, %v900_v14  ;;  %v995_v6 = vrot.slane %v5410_v33, 2  ;;  %v8784_v38 = vld [vmem:[#allocation29_spill] sm:$0xff] }
 0x1a4   : > { %1367 = vrot.lane.b32.xlu1 %v8781_v46, %s3850_s2  ;;  %1365 = vrot.lane.b32.xlu0 %v8782_v48, %s3850_s2  ;;  %v992_v5 = vrot.slane %v8784_v38, 2  ;;  %v903_v49 = vadd.f32 %v5250_v12, %v871_v2  ;;  %v902_v44 = vadd.f32 %v5252_v31, %v870_v52  ;;  %v8789_v46 = vld [vmem:[#allocation90_spill] sm:$0xff]  ;;  %v1518_v38 = vrot.slane %v8811_v29, 3 }
 0x1a5   : > { %v5424_v55 = vadd.f32 %v5329_v34, %v963_v59  ;;  %v5427_v63 = vadd.f32 %v5332_v18, %v962_v56  ;;  %v996_v12 = vsel %vm976_vm1, %v993_v4, %v995_v6  ;;  %v1469_v48 = vrot.slane %v8789_v46, 3  ;;  %v8834_v46 = vld [vmem:[#allocation175_spill] sm:$0xff] }
 0x1a6   : > { %v947_v57 = vpop.permute.xlu1 %946  ;;  %v945_v13 = vpop.permute.xlu0 %944  ;;  %v935_v47 = vadd.f32 %v5361_v19, %v903_v49  ;;  %v934_v54 = vadd.f32 %v5363_v15, %v902_v44  ;;  %v994_v31 = vsel %vm976_vm1, %v992_v5, %v993_v4  ;;  %v8795_v5 = vld [vmem:[#allocation95_spill] sm:$0xff] }
 0x1a7   : > { %v965_v25 = vadd.f32 %v947_v57, %v933_v45  ;;  %v964_v43 = vadd.f32 %v945_v13, %v932_v20  ;;  %v8790_v45 = vld [vmem:[#allocation91_spill] sm:$0xff]  ;;  %v1471_v49 = vrot.slane %v8795_v5, 3 }
 0x1a8   : > { %1371 = vrot.lane.b32.xlu1 %v8785_v36, %s3850_s2  ;;  %1369 = vrot.lane.b32.xlu0 %v8786_v8, %s3850_s2  ;;  %v1466_v20 = vrot.slane %v8790_v45, 3  ;;  %v8799_v8 = vld [vmem:[#allocation97_spill] sm:$0xff]  ;;  %v5619_v45 = vmul.f32 0.05855018, %v5276_v42 }
 0x1a9   : > { %v5441_v17 = vadd.f32 %v991_v51, %v965_v25  ;;  %v5443_v39 = vadd.f32 %v989_v61, %v964_v43 }
 0x1aa   : > { %v951_v50 = vpop.permute.xlu1 %950  ;;  %v949_v14 = vpop.permute.xlu0 %948  ;;  %8833 = vst [vmem:[#allocation178_spill] sm:$0xff] %v5619_v45 }
 0x1ab   : > { %v967_v59 = vadd.f32 %v951_v50, %v935_v47  ;;  %v966_v56 = vadd.f32 %v949_v14, %v934_v54  ;;  %v1477_v47 = vrot.slane %v8799_v8, 3  ;;  %v8800_v54 = vld [vmem:[#allocation98_spill] sm:$0xff]  ;;  %v8801_v50 = vld [vmem:[#allocation99_spill] sm:$0xff] }
 0x1ac   : > { %1391 = vrot.lane.b32.xlu1 %v5313_v58, %s3851_s3  ;;  %1389 = vrot.lane.b32.xlu0 %v5326_v32, %s3851_s3  ;;  %v8788_v32 = vld [vmem:[#allocation89_spill] sm:$0xff] }
 0x1ad   : > { %v5451_v19 = vadd.f32 %v996_v12, %v967_v59  ;;  %v5453_v15 = vadd.f32 %v994_v31, %v966_v56  ;;  %v1467_v52 = vrot.slane %v8788_v32, 3  ;;  %v8802_v56 = vld [vmem:[#allocation102_spill] sm:$0xff]  ;;  %v5622_v32 = vmul.f32 0.05855018, %v8834_v46 }
 0x1ae   : > { %v5455_v30 = vpop.permute.xlu1 %1035  ;;  %v5457_v2 = vpop.permute.xlu0 %1033 }
 0x1af   : > { %8787 = vst [vmem:[#allocation150_spill] sm:$0xff] %v5453_v15  ;;  %v5484_v6 = vsel %vm1429_vm2, %v1466_v20, %v1467_v52  ;;  %8835 = vst [vmem:[#allocation140_spill] sm:$0xff] %v5622_v32 }
 0x1b0   : > { %1395 = vrot.lane.b32.xlu1 %v5329_v34, %s3851_s3  ;;  %1393 = vrot.lane.b32.xlu0 %v5332_v18, %s3851_s3  ;;  %v8791_v18 = vld [vmem:[#allocation93_spill] sm:$0xff]  ;;  %8794 = vst [vmem:[#allocation192_spill] sm:$0xff] %v5484_v6 }
 0x1b1   : > { %v1472_v13 = vrot.slane %v8791_v18, 3 }
 0x1b2   : > { %v5463_v16 = vpop.permute.xlu1 %1039  ;;  %v5465_v58 = vpop.permute.xlu0 %1037 }
 0x1b3   : > { %v5499_v36 = vsel %vm1429_vm2, %v1471_v49, %v1472_v13  ;;  %v8806_v49 = vld [vmem:[#allocation104_spill] sm:$0xff] }
 0x1b4   : > { %1399 = vrot.lane.b32.xlu1 %v991_v51, %s3851_s3  ;;  %1397 = vrot.lane.b32.xlu0 %v989_v61, %s3851_s3  ;;  %v8792_v51 = vld [vmem:[#allocation94_spill] sm:$0xff]  ;;  %v5481_v61 = vsel %vm1429_vm2, %v1467_v52, %v1469_v48  ;;  %8798 = vst [vmem:[#allocation50_spill] sm:$0xff] %v5499_v36  ;;  %v1482_v52 = vrot.slane %v8802_v56, 3  ;;  %v8803_v48 = vld [vmem:[#allocation103_spill] sm:$0xff]  ;;  %v1481_v24 = vrot.slane %v8806_v49, 3 }
 0x1b5   : > { %v1474_v4 = vrot.slane %v8792_v51, 3  ;;  %8793 = vst [vmem:[#allocation191_spill] sm:$0xff] %v5481_v61  ;;  %v1484_v20 = vrot.slane %v8803_v48, 3  ;;  %v8823_v48 = vld [vmem:[#allocation188_spill] sm:$0xff] }
 0x1b6   : > { %v5472_v57 = vpop.permute.xlu1 %1043  ;;  %v5474_v34 = vpop.permute.xlu0 %1041  ;;  %v1536_v56 = vrot.slane %v8823_v48, 3  ;;  %v8831_v51 = vld [vmem:[#allocation172_spill] sm:$0xff] }
 0x1b7   : > { %v5496_v43 = vsel %vm1429_vm2, %v1472_v13, %v1474_v4  ;;  %v5530_v62 = vsel %vm1429_vm2, %v1482_v52, %v1484_v20  ;;  %v8814_v20 = vld [vmem:[#allocation173_spill] sm:$0xff]  ;;  %v5616_v18 = vmul.f32 0.05855018, %v8831_v51 }
 0x1b8   : > { %1403 = vrot.lane.b32.xlu1 %v996_v12, %s3851_s3  ;;  %1401 = vrot.lane.b32.xlu0 %v994_v31, %s3851_s3  ;;  %8797 = vst [vmem:[#allocation137_spill] sm:$0xff] %v5496_v43  ;;  %v1479_v12 = vrot.slane %v8800_v54, 3  ;;  %v1476_v31 = vrot.slane %v8801_v50, 3  ;;  %8807 = vst [vmem:[#allocation171_spill] sm:$0xff] %v5530_v62  ;;  %v1524_v53 = vrot.slane %v8814_v20, 3 }
 0x1b9   : > { %8832 = vst [vmem:[#allocation177_spill] sm:$0xff] %v5616_v18 }
 0x1ba   : > { %v5487_v44 = vpop.permute.xlu1 %1047  ;;  %v5489_v25 = vpop.permute.xlu0 %1045  ;;  %v5515_v13 = vsel %vm1429_vm2, %v1477_v47, %v1479_v12  ;;  %v5518_v4 = vsel %vm1429_vm2, %v1476_v31, %v1477_v47  ;;  %v5533_v12 = vsel %vm1429_vm2, %v1481_v24, %v1482_v52  ;;  %v8809_v47 = vld [vmem:[#allocation164_spill] sm:$0xff]  ;;  %v8815_v24 = vld [vmem:[#allocation174_spill] sm:$0xff] }
 0x1bb   : > { %8796 = vst [vmem:[#allocation139_spill] sm:$0xff] %v5489_v25  ;;  %8804 = vst [vmem:[#allocation138_spill] sm:$0xff] %v5515_v13  ;;  %v1519_v31 = vrot.slane %v8809_v47, 3  ;;  %v1526_v52 = vrot.slane %v8815_v24, 3  ;;  %v8821_v24 = vld [vmem:[#allocation183_spill] sm:$0xff] }
 0x1bc   : > { %1488 = vrot.lane.b32.xlu1 %v5481_v61, %s3844_s16  ;;  %1486 = vrot.lane.b32.xlu0 %v5484_v6, %s3844_s16  ;;  %8805 = vst [vmem:[#allocation170_spill] sm:$0xff] %v5518_v4  ;;  %8808 = vst [vmem:[#allocation168_spill] sm:$0xff] %v5533_v12  ;;  %v1528_v20 = vrot.slane %v8821_v24, 3  ;;  %v8822_v47 = vld [vmem:[#allocation187_spill] sm:$0xff]  ;;  %v8827_v24 = vld [vmem:[#allocation166_spill] sm:$0xff] }
 0x1bd   : > { %v5549_v1 = vsel %vm1429_vm2, %v1519_v31, %v1521_v11  ;;  %v5552_v27 = vsel %vm1429_vm2, %v1518_v38, %v1519_v31  ;;  %v5564_v10 = vsel %vm1429_vm2, %v1524_v53, %v1526_v52  ;;  %v5567_v11 = vsel %vm1429_vm2, %v1523_v0, %v1524_v53  ;;  %v8819_v38 = vld [vmem:[#allocation180_spill] sm:$0xff]  ;;  %v8824_v0 = vld [vmem:[#allocation163_spill] sm:$0xff] }
 0x1be   : > { %v5504_v14 = vpop.permute.xlu1 %1111  ;;  %v5506_v59 = vpop.permute.xlu0 %1109  ;;  %v1529_v31 = vrot.slane %v8819_v38, 3  ;;  %v1534_v49 = vrot.slane %v8822_v47, 3  ;;  %v5583_v53 = vmul.f32 0.05855018, %v8824_v0  ;;  %v5586_v52 = vmul.f32 0.05855018, %v5263_v41 }
 0x1bf   : > { %v5589_v35 = vmul.f32 0.05855018, %v8827_v24  ;;  %v8829_v47 = vld [vmem:[#allocation190_spill] sm:$0xff] }
 0x1c0   : > { %1492 = vrot.lane.b32.xlu1 %v5496_v43, %s3844_s16  ;;  %1490 = vrot.lane.b32.xlu0 %v5499_v36, %s3844_s16  ;;  %8825 = vst [vmem:[#allocation155_spill] sm:$0xff] %v5583_v53  ;;  %8826 = vst [vmem:[#allocation156_spill] sm:$0xff] %v5586_v52  ;;  %v5592_v38 = vsel %vm1429_vm2, %v1529_v31, %v1531_v9  ;;  %v5595_v48 = vsel %vm1429_vm2, %v1528_v20, %v1529_v31  ;;  %v1533_v50 = vrot.slane %v8829_v47, 3  ;;  %v8841_v36 = vld [vmem:[#allocation182_spill] sm:$0xff] }
 0x1c1   : > { %8828 = vst [vmem:[#allocation196_spill] sm:$0xff] %v5589_v35  ;;  %v5607_v5 = vsel %vm1429_vm2, %v1534_v49, %v1536_v56  ;;  %v1595_v9 = vrot.slane %v5583_v53, 3  ;;  %v1597_v20 = vrot.slane %v5586_v52, 3  ;;  %v1594_v31 = vrot.slane %v5589_v35, 3  ;;  %v8838_v53 = vld [vmem:[#allocation179_spill] sm:$0xff] }
 0x1c2   : > { %v5521_v40 = vpop.permute.xlu1 %1115  ;;  %v5523_v7 = vpop.permute.xlu0 %1113  ;;  %v5613_v47 = vsel %vm1429_vm2, %v1533_v50, %v1534_v49  ;;  %v5629_v52 = vmul.f32 0.05855018, %v8838_v53  ;;  %v5632_v35 = vmul.f32 0.05855018, %v5347_v60  ;;  %v5648_v43 = vmul.f32 0.05855018, %v8841_v36 }
 0x1c3   : > { %v5639_v50 = vsel %vm1429_vm2, %v1595_v9, %v1597_v20  ;;  %v5642_v49 = vsel %vm1429_vm2, %v1594_v31, %v1595_v9  ;;  %v8845_v9 = vld [vmem:[#allocation186_spill] sm:$0xff] }
 0x1c4   : > { %1496 = vrot.lane.b32.xlu1 %v5515_v13, %s3844_s16  ;;  %1494 = vrot.lane.b32.xlu0 %v5518_v4, %s3844_s16  ;;  %8839 = vst [vmem:[#allocation184_spill] sm:$0xff] %v5629_v52  ;;  %8840 = vst [vmem:[#allocation212_spill] sm:$0xff] %v5632_v35  ;;  %v1602_v4 = vrot.slane %v5619_v45, 3  ;;  %v1599_v13 = vrot.slane %v5622_v32, 3  ;;  %v1607_v20 = vrot.slane %v5632_v35, 3  ;;  %v8848_v45 = vld [vmem:[#allocation189_spill] sm:$0xff] }
 0x1c5   : > { %8842 = vst [vmem:[#allocation213_spill] sm:$0xff] %v5648_v43  ;;  %v5661_v31 = vmul.f32 0.05855018, %v8845_v9  ;;  %v5664_v32 = vmul.f32 0.05855018, %v5407_v21 }
 0x1c6   : > { %v5538_v33 = vpop.permute.xlu1 %1119  ;;  %v5540_v22 = vpop.permute.xlu0 %1117 }
 0x1c7   : > { %8812 = vst [vmem:[#allocation169_spill] sm:$0xff] %v5538_v33  ;;  %8813 = vst [vmem:[#allocation142_spill] sm:$0xff] %v5540_v22  ;;  %v5697_v22 = vmul.f32 0.096532926, %v5263_v41  ;;  %v5700_v33 = vmul.f32 0.096532926, %v8827_v24 }
 0x1c8   : > { %1500 = vrot.lane.b32.xlu1 %v5530_v62, %s3844_s16  ;;  %1498 = vrot.lane.b32.xlu0 %v5533_v12, %s3844_s16  ;;  %v1600_v62 = vrot.slane %v5616_v18, 3  ;;  %8846 = vst [vmem:[#allocation209_spill] sm:$0xff] %v5661_v31  ;;  %8847 = vst [vmem:[#allocation144_spill] sm:$0xff] %v5664_v32  ;;  %v5667_v18 = vmul.f32 0.05855018, %v8848_v45 }
 0x1c9   : > { %8851 = vst [vmem:[#allocation204_spill] sm:$0xff] %v5697_v22  ;;  %8852 = vst [vmem:[#allocation210_spill] sm:$0xff] %v5700_v33 }
 0x1ca   : > { %v5555_v26 = vpop.permute.xlu1 %1123  ;;  %v5557_v3 = vpop.permute.xlu0 %1121  ;;  %8849 = vst [vmem:[#allocation145_spill] sm:$0xff] %v5667_v18  ;;  %v5673_v35 = vsel %vm1429_vm2, %v1599_v13, %v1600_v62  ;;  %v1609_v13 = vrot.slane %v5667_v18, 3  ;;  %v5710_v18 = vmul.f32 0.096532926, %v5276_v42 }
 0x1cb   : > { %8817 = vst [vmem:[#allocation134_spill] sm:$0xff] %v5555_v26  ;;  %8818 = vst [vmem:[#allocation143_spill] sm:$0xff] %v5557_v3  ;;  %v5694_v26 = vmul.f32 0.096532926, %v8824_v0 }
 0x1cc   : > { %1540 = vrot.lane.b32.xlu1 %v5549_v1, %s3845_s24  ;;  %1538 = vrot.lane.b32.xlu0 %v5552_v27, %s3845_s24  ;;  %8856 = vst [vmem:[#allocation153_spill] sm:$0xff] %v5710_v18 }
 0x1cd   : > { %8850 = vst [vmem:[#allocation203_spill] sm:$0xff] %v5694_v26  ;;  %v1671_v0 = vrot.slane %v5694_v26, 3 }
 0x1ce   : > { %v5572_v29 = vpop.permute.xlu1 %1187  ;;  %v5574_v28 = vpop.permute.xlu0 %1185 }
 0x1d0   : > { %1544 = vrot.lane.b32.xlu1 %v5564_v10, %s3845_s24  ;;  %1542 = vrot.lane.b32.xlu0 %v5567_v11, %s3845_s24 }
 0x1d2   : > { %v5598_v54 = vpop.permute.xlu1 %1191  ;;  %v5600_v8 = vpop.permute.xlu0 %1189 }
 0x1d3   : > { %8830 = vst [vmem:[#allocation158_spill] sm:$0xff] %v5600_v8  ;;  %v1678_v8 = vrot.slane %v5710_v18, 3 }
 0x1d4   : > { %1548 = vrot.lane.b32.xlu1 %v5592_v38, %s3845_s24  ;;  %1546 = vrot.lane.b32.xlu0 %v5595_v48, %s3845_s24 }
 0x1d6   : > { %v5624_v56 = vpop.permute.xlu1 %1195  ;;  %v5626_v12 = vpop.permute.xlu0 %1193 }
 0x1d7   : > { %8836 = vst [vmem:[#allocation141_spill] sm:$0xff] %v5624_v56  ;;  %8837 = vst [vmem:[#allocation159_spill] sm:$0xff] %v5626_v12  ;;  %v1605_v12 = vrot.slane %v5629_v52, 3  ;;  %v1604_v52 = vrot.slane %v5648_v43, 3 }
 0x1d8   : > { %1552 = vrot.lane.b32.xlu1 %v5607_v5, %s3845_s24  ;;  %1550 = vrot.lane.b32.xlu0 %v5613_v47, %s3845_s24 }
 0x1d9   : > { %v5685_v3 = vsel %vm1429_vm2, %v1605_v12, %v1607_v20  ;;  %v5691_v43 = vsel %vm1429_vm2, %v1604_v52, %v1605_v12  ;;  %v1673_v52 = vrot.slane %v5697_v22, 3 }
 0x1da   : > { %v5650_v6 = vpop.permute.xlu1 %1199  ;;  %v5652_v61 = vpop.permute.xlu0 %1197 }
 0x1db   : > { %8843 = vst [vmem:[#allocation185_spill] sm:$0xff] %v5650_v6  ;;  %8844 = vst [vmem:[#allocation208_spill] sm:$0xff] %v5652_v61  ;;  %v5670_v61 = vsel %vm1429_vm2, %v1600_v62, %v1602_v4  ;;  %v1610_v4 = vrot.slane %v5661_v31, 3  ;;  %v1612_v62 = vrot.slane %v5664_v32, 3  ;;  %v5707_v32 = vmul.f32 0.096532926, %v8831_v51 }
 0x1dc   : > { %1616 = vrot.lane.b32.xlu1 %v5639_v50, %s3846_s25  ;;  %1614 = vrot.lane.b32.xlu0 %v5642_v49, %s3846_s25  ;;  %v1670_v51 = vrot.slane %v5700_v33, 3  ;;  %v5722_v31 = vmul.f32 0.096532926, %v8834_v46  ;;  %v5739_v46 = vmul.f32 0.096532926, %v8841_v36 }
 0x1dd   : > { %8855 = vst [vmem:[#allocation148_spill] sm:$0xff] %v5707_v32  ;;  %v1613_v12 = vsel %vm1429_vm2, %v1610_v4, %v1612_v62  ;;  %v1611_v24 = vsel %vm1429_vm2, %v1609_v13, %v1610_v4  ;;  %v1676_v15 = vrot.slane %v5707_v32, 3  ;;  %v5733_v4 = vmul.f32 0.096532926, %v8838_v53 }
 0x1de   : > { %v5676_v6 = vpop.permute.xlu1 %1263  ;;  %v5678_v56 = vpop.permute.xlu0 %1261  ;;  %8857 = vst [vmem:[#allocation154_spill] sm:$0xff] %v5722_v31  ;;  %v5736_v62 = vmul.f32 0.096532926, %v5347_v60  ;;  %8860 = vst [vmem:[#allocation172_spill] sm:$0xff] %v5739_v46  ;;  %v1674_v13 = vsel %vm1429_vm2, %v1671_v0, %v1673_v52  ;;  %v1672_v33 = vsel %vm1429_vm2, %v1670_v51, %v1671_v0  ;;  %v1675_v32 = vrot.slane %v5722_v31, 3 }
 0x1df   : > { %8858 = vst [vmem:[#allocation163_spill] sm:$0xff] %v5733_v4  ;;  %v1679_v53 = vsel %vm1429_vm2, %v1676_v15, %v1678_v8  ;;  %v1681_v26 = vrot.slane %v5733_v4, 3  ;;  %v1680_v52 = vrot.slane %v5739_v46, 3  ;;  %v5756_v51 = vmul.f32 0.096532926, %v8845_v9 }
 0x1e0   : > { %1620 = vrot.lane.b32.xlu1 %v5670_v61, %s3846_s25  ;;  %1618 = vrot.lane.b32.xlu0 %v5673_v35, %s3846_s25  ;;  %8859 = vst [vmem:[#allocation166_spill] sm:$0xff] %v5736_v62  ;;  %v1683_v36 = vrot.slane %v5736_v62, 3  ;;  %v1677_v0 = vsel %vm1429_vm2, %v1675_v32, %v1676_v15  ;;  %v5759_v31 = vmul.f32 0.096532926, %v5407_v21  ;;  %v8881_v21 = vld [vmem:[#allocation42_spill] sm:$0xff] }
 0x1e1   : > { %8862 = vst [vmem:[#allocation179_spill] sm:$0xff] %v5756_v51  ;;  %v1682_v15 = vsel %vm1429_vm2, %v1680_v52, %v1681_v26  ;;  %v1686_v32 = vrot.slane %v5756_v51, 3 }
 0x1e2   : > { %v5702_v20 = vpop.permute.xlu1 %1267  ;;  %v5704_v25 = vpop.permute.xlu0 %1265  ;;  %8863 = vst [vmem:[#allocation182_spill] sm:$0xff] %v5759_v31  ;;  %v1684_v46 = vsel %vm1429_vm2, %v1681_v26, %v1683_v36  ;;  %v1688_v9 = vrot.slane %v5759_v31, 3  ;;  %v1057_v31 = vadd.f32 %v5457_v2, %v5401_v23 }
 0x1e3   : > { %8853 = vst [vmem:[#allocation211_spill] sm:$0xff] %v5702_v20  ;;  %8854 = vst [vmem:[#allocation147_spill] sm:$0xff] %v5704_v25 }
 0x1e4   : > { %1624 = vrot.lane.b32.xlu1 %v5685_v3, %s3846_s25  ;;  %1622 = vrot.lane.b32.xlu0 %v5691_v43, %s3846_s25  ;;  %v1133_v23 = vadd.f32 %v5506_v59, %v1057_v31  ;;  %v1059_v59 = vadd.f32 %v5465_v58, %v5427_v63 }
 0x1e6   : > { %v5724_v25 = vpop.permute.xlu1 %1271  ;;  %v5726_v20 = vpop.permute.xlu0 %1269 }
 0x1e8   : > { %1628 = vrot.lane.b32.xlu1 %v1613_v12, %s3846_s25  ;;  %1626 = vrot.lane.b32.xlu0 %v1611_v24, %s3846_s25 }
 0x1ea   : > { %v5744_v18 = vpop.permute.xlu1 %1275  ;;  %v5746_v22 = vpop.permute.xlu0 %1273 }
 0x1eb   : > { %8861 = vst [vmem:[#allocation175_spill] sm:$0xff] %v5746_v22 }
 0x1ec   : > { %1692 = vrot.lane.b32.xlu1 %v1674_v13, %s3847_s27  ;;  %1690 = vrot.lane.b32.xlu0 %v1672_v33, %s3847_s27  ;;  %v5762_v13 = vmul.f32 0.096532926, %v8848_v45 }
 0x1ee   : > { %8864 = vst [vmem:[#allocation186_spill] sm:$0xff] %v5762_v13  ;;  %v5764_v33 = vpop.permute.xlu1 %1295  ;;  %v5766_v8 = vpop.permute.xlu0 %1293  ;;  %v1685_v62 = vrot.slane %v5762_v13, 3 }
 0x1f0   : > { %1696 = vrot.lane.b32.xlu1 %v1679_v53, %s3847_s27  ;;  %1694 = vrot.lane.b32.xlu0 %v1677_v0, %s3847_s27  ;;  %v1689_v53 = vsel %vm1429_vm2, %v1686_v32, %v1688_v9  ;;  %v1687_v36 = vsel %vm1429_vm2, %v1685_v62, %v1686_v32 }
 0x1f2   : > { %v5775_v45 = vpop.permute.xlu1 %1299  ;;  %v5777_v4 = vpop.permute.xlu0 %1297 }
 0x1f4   : > { %1700 = vrot.lane.b32.xlu1 %v1684_v46, %s3847_s27  ;;  %1698 = vrot.lane.b32.xlu0 %v1682_v15, %s3847_s27 }
 0x1f6   : > { %v5783_v0 = vpop.permute.xlu1 %1303  ;;  %v5785_v26 = vpop.permute.xlu0 %1301 }
 0x1f8   : > { %1704 = vrot.lane.b32.xlu1 %v1689_v53, %s3847_s27  ;;  %1702 = vrot.lane.b32.xlu0 %v1687_v36, %s3847_s27  ;;  %v8874_v53 = vld [vmem:[#allocation38_spill] sm:$0xff]  ;;  %v1058_v36 = vadd.f32 %v5455_v30, %v5398_v37  ;;  %v8880_v30 = vld [vmem:[#allocation41_spill] sm:$0xff] }
 0x1f9   : > { %v1864_v2 = vrot.slane %v8880_v30, 4  ;;  %v8916_v30 = vld [vmem:[#allocation36_spill] sm:$0xff] }
 0x1fa   : > { %v5789_v52 = vpop.permute.xlu1 %1307  ;;  %v5791_v13 = vpop.permute.xlu0 %1305  ;;  %v1134_v37 = vadd.f32 %v5504_v14, %v1058_v36  ;;  %v1060_v14 = vadd.f32 %v5463_v16, %v5424_v55  ;;  %v1209_v36 = vadd.f32 %v5574_v28, %v1133_v23  ;;  %v8883_v55 = vld [vmem:[#allocation34_spill] sm:$0xff] }
 0x1fb   : > { %8865 = vst [vmem:[#allocation189_spill] sm:$0xff] %v5789_v52  ;;  %8866 = vst [vmem:[#allocation216_spill] sm:$0xff] %v5791_v13  ;;  %v8877_v13 = vld [vmem:[#allocation33_spill] sm:$0xff]  ;;  %v8878_v52 = vld [vmem:[#allocation39_spill] sm:$0xff]  ;;  %v1441_v16 = vrot.slane %v8883_v55, 3 }
 0x1fc   : > { %1724 = vrot.lane.b32.xlu1 %v5639_v50, %s3848_s28  ;;  %1722 = vrot.lane.b32.xlu0 %v5642_v49, %s3848_s28  ;;  %v1210_v31 = vadd.f32 %v5572_v29, %v1134_v37  ;;  %v1136_v63 = vadd.f32 %v5521_v40, %v1060_v14  ;;  %v1135_v29 = vadd.f32 %v5523_v7, %v1059_v59  ;;  %v8889_v37 = vld [vmem:[#allocation134_spill] sm:$0xff] }
 0x1fd   : > { %v1285_v58 = vadd.f32 %v5678_v56, %v1209_v36 }
 0x1fe   : > { %v5797_v46 = vpop.permute.xlu1 %1327  ;;  %v5799_v62 = vpop.permute.xlu0 %1325  ;;  %v1286_v28 = vadd.f32 %v5676_v6, %v1210_v31  ;;  %v1212_v7 = vadd.f32 %v5598_v54, %v1136_v63  ;;  %v8884_v6 = vld [vmem:[#allocation158_spill] sm:$0xff]  ;;  %v8890_v54 = vld [vmem:[#allocation211_spill] sm:$0xff] }
 0x1ff   : > { %v1211_v56 = vadd.f32 %v8884_v6, %v1135_v29  ;;  %v8891_v31 = vld [vmem:[#allocation147_spill] sm:$0xff]  ;;  %v8896_v6 = vld [vmem:[#allocation192_spill] sm:$0xff] }
 0x200   : > { %1728 = vrot.lane.b32.xlu1 %v5670_v61, %s3848_s28  ;;  %1726 = vrot.lane.b32.xlu0 %v5673_v35, %s3848_s28  ;;  %v1288_v59 = vadd.f32 %v8890_v54, %v1212_v7  ;;  %v8892_v63 = vld [vmem:[#allocation143_spill] sm:$0xff]  ;;  %v8900_v54 = vld [vmem:[#allocation50_spill] sm:$0xff] }
 0x201   : > { %v1287_v36 = vadd.f32 %v8891_v31, %v1211_v56 }
 0x202   : > { %v5805_v15 = vpop.permute.xlu1 %1331  ;;  %v5807_v32 = vpop.permute.xlu0 %1329  ;;  %v1320_v7 = vadd.f32 %v5775_v45, %v1288_v59  ;;  %v8902_v59 = vrot.slane %v8874_v53, 4 }
 0x203   : > { %v1319_v56 = vadd.f32 %v5777_v4, %v1287_v36 }
 0x204   : > { %1732 = vrot.lane.b32.xlu1 %v5685_v3, %s3848_s28  ;;  %1730 = vrot.lane.b32.xlu0 %v5691_v43, %s3848_s28  ;;  %v5828_v3 = vmul.f32 3.238319e-05, %v5263_v41  ;;  %v5870_v41 = vmul.f32 3.238319e-05, %v5347_v60 }
 0x205   : > { %v1351_v45 = vadd.f32 %v5807_v32, %v1319_v56  ;;  %v8910_v56 = vld [vmem:[#allocation43_spill] sm:$0xff] }
 0x206   : > { %v5813_v50 = vpop.permute.xlu1 %1335  ;;  %v5815_v49 = vpop.permute.xlu0 %1333  ;;  %8871 = vst [vmem:[#allocation221_spill] sm:$0xff] %v5828_v3  ;;  %8882 = vst [vmem:[#allocation38_spill] sm:$0xff] %v5870_v41  ;;  %v1443_v40 = vrot.slane %v5870_v41, 3 }
 0x207   : > { %8867 = vst [vmem:[#allocation217_spill] sm:$0xff] %v5813_v50  ;;  %8868 = vst [vmem:[#allocation218_spill] sm:$0xff] %v5815_v49  ;;  %v8879_v49 = vld [vmem:[#allocation40_spill] sm:$0xff] }
 0x208   : > { %1736 = vrot.lane.b32.xlu1 %v1613_v12, %s3848_s28  ;;  %1734 = vrot.lane.b32.xlu0 %v1611_v24, %s3848_s28  ;;  %v5835_v12 = vmul.f32 3.238319e-05, %v5276_v42  ;;  %v8408_v50 = vrot.slane %v8879_v49, 4 }
 0x20a   : > { %v5819_v61 = vpop.permute.xlu1 %1339  ;;  %v5821_v35 = vpop.permute.xlu0 %1337  ;;  %8872 = vst [vmem:[#allocation222_spill] sm:$0xff] %v5835_v12 }
 0x20b   : > { %8869 = vst [vmem:[#allocation219_spill] sm:$0xff] %v5819_v61  ;;  %8870 = vst [vmem:[#allocation220_spill] sm:$0xff] %v5821_v35  ;;  %v8876_v61 = vld [vmem:[#allocation32_spill] sm:$0xff] }
 0x20c   : > { %1756 = vrot.lane.b32.xlu1 %v5549_v1, %s3849_s30  ;;  %1754 = vrot.lane.b32.xlu0 %v5552_v27, %s3849_s30  ;;  %v8873_v1 = vld [vmem:[#allocation30_spill] sm:$0xff]  ;;  %v1433_v27 = vrot.slane %v5828_v3, 3  ;;  %v1435_v3 = vrot.slane %v8877_v13, 3 }
 0x20d   : > { %v1431_v24 = vrot.slane %v8873_v1, 3  ;;  %v1438_v1 = vrot.slane %v5835_v12, 3 }
 0x20e   : > { %v5830_v43 = vpop.permute.xlu1 %1359  ;;  %v5832_v9 = vpop.permute.xlu0 %1357 }
 0x20f   : > { %v5867_v13 = vsel %vm1429_vm2, %v1431_v24, %v1433_v27 }
 0x210   : > { %1760 = vrot.lane.b32.xlu1 %v5564_v10, %s3849_s30  ;;  %1758 = vrot.lane.b32.xlu0 %v5567_v11, %s3849_s30  ;;  %v8875_v10 = vld [vmem:[#allocation31_spill] sm:$0xff]  ;;  %v1436_v11 = vrot.slane %v8876_v61, 3 }
 0x211   : > { %v1430_v35 = vrot.slane %v8875_v10, 3 }
 0x212   : > { %v5848_v42 = vpop.permute.xlu1 %1363  ;;  %v5850_v51 = vpop.permute.xlu0 %1361  ;;  %v5886_v60 = vsel %vm1429_vm2, %v1436_v11, %v1438_v1  ;;  %v5889_v27 = vsel %vm1429_vm2, %v1435_v3, %v1436_v11  ;;  %v1061_v1 = vadd.f32 %v5474_v34, %v5443_v39  ;;  %v1064_v3 = vadd.f32 %v5487_v44, %v5451_v19  ;;  %v8885_v39 = vld [vmem:[#allocation150_spill] sm:$0xff]  ;;  %v8886_v34 = vld [vmem:[#allocation139_spill] sm:$0xff]  ;;  %v8887_v19 = vld [vmem:[#allocation169_spill] sm:$0xff] }
 0x213   : > { %v8888_v11 = vld [vmem:[#allocation142_spill] sm:$0xff] }
 0x214   : > { %1764 = vrot.lane.b32.xlu1 %v5592_v38, %s3849_s30  ;;  %1762 = vrot.lane.b32.xlu0 %v5595_v48, %s3849_s30  ;;  %v5883_v48 = vsel %vm1429_vm2, %v1430_v35, %v1431_v24  ;;  %v1062_v35 = vadd.f32 %v5472_v57, %v5441_v17  ;;  %v1318_v17 = vadd.f32 %v5764_v33, %v1286_v28  ;;  %v8893_v28 = vld [vmem:[#allocation141_spill] sm:$0xff] }
 0x215   : > { %v1317_v57 = vadd.f32 %v5766_v8, %v1285_v58  ;;  %v1063_v24 = vadd.f32 %v8886_v34, %v8885_v39  ;;  %v1140_v23 = vadd.f32 %v8889_v37, %v1064_v3  ;;  %v8895_v3 = vld [vmem:[#allocation191_spill] sm:$0xff]  ;;  %v8898_v39 = vld [vmem:[#allocation208_spill] sm:$0xff] }
 0x216   : > { %v5878_v38 = vpop.permute.xlu1 %1367  ;;  %v5880_v22 = vpop.permute.xlu0 %1365  ;;  %v1138_v44 = vadd.f32 %v8887_v19, %v1062_v35  ;;  %v1350_v33 = vadd.f32 %v5797_v46, %v1318_v17  ;;  %v8894_v35 = vld [vmem:[#allocation159_spill] sm:$0xff]  ;;  %v8897_v17 = vld [vmem:[#allocation185_spill] sm:$0xff] }
 0x217   : > { %v1349_v8 = vadd.f32 %v5799_v62, %v1317_v57  ;;  %v1139_v29 = vadd.f32 %v8892_v63, %v1063_v24  ;;  %v1216_v57 = vadd.f32 %v8897_v17, %v1140_v23  ;;  %v8899_v23 = vld [vmem:[#allocation137_spill] sm:$0xff]  ;;  %v8912_v17 = vld [vmem:[#allocation216_spill] sm:$0xff] }
 0x218   : > { %1768 = vrot.lane.b32.xlu1 %v5607_v5, %s3849_s30  ;;  %1766 = vrot.lane.b32.xlu0 %v5613_v47, %s3849_s30  ;;  %v1137_v5 = vadd.f32 %v8888_v11, %v1061_v1  ;;  %v1214_v58 = vadd.f32 %v8893_v28, %v1138_v44  ;;  %v1382_v46 = vadd.f32 %v5830_v43, %v1350_v33 }
 0x219   : > { %v1381_v62 = vadd.f32 %v5832_v9, %v1349_v8  ;;  %v1215_v34 = vadd.f32 %v8898_v39, %v1139_v29  ;;  %v1292_v33 = vadd.f32 %v5744_v18, %v1216_v57  ;;  %v8905_v8 = vld [vmem:[#allocation175_spill] sm:$0xff]  ;;  %v8911_v18 = vld [vmem:[#allocation189_spill] sm:$0xff]  ;;  %v8913_v39 = vld [vmem:[#allocation138_spill] sm:$0xff] }
 0x21a   : > { %v5916_v47 = vpop.permute.xlu1 %1371  ;;  %v5918_v14 = vpop.permute.xlu0 %1369  ;;  %v1213_v1 = vadd.f32 %v8894_v35, %v1137_v5  ;;  %v1290_v24 = vadd.f32 %v5724_v25, %v1214_v58  ;;  %v1352_v5 = vadd.f32 %v5805_v15, %v1320_v7  ;;  %v8901_v25 = vld [vmem:[#allocation35_spill] sm:$0xff]  ;;  %v8903_v15 = vrot.slane %v8878_v52, 4  ;;  %v8906_v58 = vld [vmem:[#allocation136_spill] sm:$0xff] }
 0x21b   : > { %v1291_v63 = vadd.f32 %v8905_v8, %v1215_v34  ;;  %v1444_v52 = vsel %vm1429_vm2, %v1441_v16, %v1443_v40  ;;  %v8914_v40 = vld [vmem:[#allocation170_spill] sm:$0xff]  ;;  %v5985_v34 = vsel %vm1858_vm3, %v1864_v2, %v8408_v50 }
 0x21c   : > { %1788 = vrot.lane.b32.xlu1 %v8895_v3, %s3850_s2  ;;  %1786 = vrot.lane.b32.xlu0 %v8896_v6, %s3850_s2  ;;  %v1289_v19 = vadd.f32 %v5726_v20, %v1213_v1  ;;  %v1322_v43 = vadd.f32 %v5783_v0, %v1290_v24  ;;  %v1440_v20 = vrot.slane %v8901_v25, 3  ;;  %v5953_v32 = vsel %vm1858_vm3, %v8903_v15, %v8902_v59  ;;  %v8909_v1 = vld [vmem:[#allocation218_spill] sm:$0xff] }
 0x21d   : > { %8904 = vst [vmem:[#allocation39_spill] sm:$0xff] %v5953_v32  ;;  %v1384_v31 = vadd.f32 %v5848_v42, %v1352_v5  ;;  %v1383_v0 = vadd.f32 %v5850_v51, %v1351_v45  ;;  %v5969_v42 = vmul.f32 3.238319e-05, %v8906_v58  ;;  %v8908_v51 = vld [vmem:[#allocation217_spill] sm:$0xff]  ;;  %v1323_v57 = vadd.f32 %v8912_v17, %v1291_v63  ;;  %8915 = vst [vmem:[#allocation41_spill] sm:$0xff] %v5985_v34  ;;  %v8922_v63 = vld [vmem:[#allocation171_spill] sm:$0xff] }
 0x21e   : > { %v1392_v44 = vpop.permute.xlu1 %1391  ;;  %v1390_v11 = vpop.permute.xlu0 %1389  ;;  %v1321_v9 = vadd.f32 %v5785_v26, %v1289_v19  ;;  %v1354_v35 = vadd.f32 %v8908_v51, %v1322_v43  ;;  %v1442_v45 = vsel %vm1429_vm2, %v1440_v20, %v1441_v16  ;;  %v8917_v43 = vld [vmem:[#allocation37_spill] sm:$0xff]  ;;  %v8923_v16 = vld [vmem:[#allocation168_spill] sm:$0xff]  ;;  %v8924_v20 = vrot.slane %v8881_v21, 4 }
 0x21f   : > { %v1414_v37 = vadd.f32 %v1392_v44, %v1382_v46  ;;  %v1413_v4 = vadd.f32 %v1390_v11, %v1381_v62  ;;  %8907 = vst [vmem:[#allocation40_spill] sm:$0xff] %v5969_v42  ;;  %v1869_v46 = vrot.slane %v8910_v56, 4  ;;  %v1324_v62 = vadd.f32 %v8911_v18, %v1292_v33  ;;  %v8921_v33 = vld [vmem:[#allocation45_spill] sm:$0xff] }
 0x220   : > { %1792 = vrot.lane.b32.xlu1 %v8899_v23, %s3850_s2  ;;  %1790 = vrot.lane.b32.xlu0 %v8900_v54, %s3850_s2  ;;  %v1353_v3 = vadd.f32 %v8909_v1, %v1321_v9  ;;  %v1386_v24 = vadd.f32 %v5878_v38, %v1354_v35  ;;  %v1448_v2 = vrot.slane %v5969_v42, 3  ;;  %v1445_v38 = vrot.slane %v8917_v43, 3  ;;  %v8918_v9 = vld [vmem:[#allocation219_spill] sm:$0xff]  ;;  %v8919_v23 = vld [vmem:[#allocation220_spill] sm:$0xff]  ;;  %v3731_v32 = vld [vmem:[%s3960_s29 + $0x8] sm:$0xff] }
 0x221   : > { %v5958_v26 = vadd.f32 %v5867_v13, %v1414_v37  ;;  %v5961_v36 = vadd.f32 %v5883_v48, %v1413_v4  ;;  %v1446_v4 = vrot.slane %v8916_v30, 3  ;;  %v1355_v54 = vadd.f32 %v8919_v23, %v1323_v57  ;;  %v8928_v57 = vld [vmem:[#allocation106_spill] sm:$0xff]  ;;  %v8965_v43 = vld [vmem:[#allocation207_spill] sm:$0xff] }
 0x222   : > { %v1396_v29 = vpop.permute.xlu1 %1395  ;;  %v1394_v28 = vpop.permute.xlu0 %1393  ;;  %v1385_v19 = vadd.f32 %v5880_v22, %v1353_v3  ;;  %v1356_v22 = vadd.f32 %v8918_v9, %v1324_v62  ;;  %v1874_v8 = vrot.slane %v8921_v33, 4  ;;  %v8935_v9 = vld [vmem:[#allocation112_spill] sm:$0xff]  ;;  %v8939_v33 = vld [vmem:[#allocation115_spill] sm:$0xff]  ;;  %v1962_v42 = vrot.slane %v8965_v43, 4  ;;  %v8968_v43 = vld [vmem:[#allocation210_spill] sm:$0xff] }
 0x223   : > { %v1416_v6 = vadd.f32 %v1396_v29, %v1384_v31  ;;  %v1415_v7 = vadd.f32 %v1394_v28, %v1383_v0  ;;  %v8920_v31 = vld [vmem:[#allocation44_spill] sm:$0xff]  ;;  %v6012_v29 = vsel %vm1858_vm3, %v1869_v46, %v8924_v20  ;;  %v1387_v58 = vadd.f32 %v5918_v14, %v1355_v54 }
 0x224   : > { %1796 = vrot.lane.b32.xlu1 %v8913_v39, %s3850_s2  ;;  %1794 = vrot.lane.b32.xlu0 %v8914_v40, %s3850_s2  ;;  %v8407_v0 = vrot.slane %v8920_v31, 4  ;;  %8925 = vst [vmem:[#allocation158_spill] sm:$0xff] %v6012_v29  ;;  %v1388_v28 = vadd.f32 %v5916_v47, %v1356_v22  ;;  %v1449_v1 = vsel %vm1429_vm2, %v1446_v4, %v1448_v2  ;;  %v1896_v39 = vrot.slane %v8928_v57, 4  ;;  %v8929_v40 = vld [vmem:[#allocation107_spill] sm:$0xff]  ;;  %v8942_v20 = vld [vmem:[#allocation116_spill] sm:$0xff] }
 0x225   : > { %v5990_v44 = vadd.f32 %v5886_v60, %v1416_v6  ;;  %v5993_v11 = vadd.f32 %v5889_v27, %v1415_v7  ;;  %v1447_v6 = vsel %vm1429_vm2, %v1445_v38, %v1446_v4  ;;  %v8934_v2 = vld [vmem:[#allocation111_spill] sm:$0xff]  ;;  %v1900_v22 = vrot.slane %v8935_v9, 4 }
 0x226   : > { %v1400_v5 = vpop.permute.xlu1 %1399  ;;  %v1398_v37 = vpop.permute.xlu0 %1397  ;;  %v6029_v47 = vsel %vm1858_vm3, %v1874_v8, %v8407_v0  ;;  %v1903_v38 = vrot.slane %v8934_v2, 4  ;;  %v1908_v8 = vrot.slane %v8939_v33, 4  ;;  %v8957_v2 = vld [vmem:[#allocation199_spill] sm:$0xff]  ;;  %v1999_v55 = vrot.slane %v8968_v43, 4 }
 0x227   : > { %v1418_v59 = vadd.f32 %v1400_v5, %v1386_v24  ;;  %v1417_v15 = vadd.f32 %v1398_v37, %v1385_v19  ;;  %8926 = vst [vmem:[#allocation150_spill] sm:$0xff] %v6029_v47  ;;  %v1898_v24 = vrot.slane %v8929_v40, 4  ;;  %v8930_v19 = vld [vmem:[#allocation108_spill] sm:$0xff] }
 0x228   : > { %1800 = vrot.lane.b32.xlu1 %v8922_v63, %s3850_s2  ;;  %1798 = vrot.lane.b32.xlu0 %v8923_v16, %s3850_s2  ;;  %v1895_v5 = vrot.slane %v8930_v19, 4 }
 0x229   : > { %v6016_v51 = vadd.f32 %v1444_v52, %v1418_v59  ;;  %v6018_v35 = vadd.f32 %v1442_v45, %v1417_v15  ;;  %v8938_v59 = vld [vmem:[#allocation114_spill] sm:$0xff] }
 0x22a   : > { %v1404_v3 = vpop.permute.xlu1 %1403  ;;  %v1402_v7 = vpop.permute.xlu0 %1401  ;;  %v1906_v15 = vrot.slane %v8938_v59, 4  ;;  %v8956_v59 = vld [vmem:[#allocation198_spill] sm:$0xff] }
 0x22b   : > { %v1420_v56 = vadd.f32 %v1404_v3, %v1388_v28  ;;  %v1419_v18 = vadd.f32 %v1402_v7, %v1387_v58  ;;  %v1905_v28 = vrot.slane %v8942_v20, 4  ;;  %v8945_v7 = vld [vmem:[#allocation118_spill] sm:$0xff]  ;;  %v1955_v9 = vrot.slane %v8956_v59, 4 }
 0x22c   : > { %1820 = vrot.lane.b32.xlu1 %v5867_v13, %s3851_s3  ;;  %1818 = vrot.lane.b32.xlu0 %v5883_v48, %s3851_s3  ;;  %v6093_v3 = vsel %vm1858_vm3, %v1906_v15, %v1908_v8 }
 0x22d   : > { %v6031_v14 = vadd.f32 %v1449_v1, %v1420_v56  ;;  %v6033_v46 = vadd.f32 %v1447_v6, %v1419_v18  ;;  %8943 = vst [vmem:[#allocation141_spill] sm:$0xff] %v6093_v3  ;;  %v1911_v56 = vrot.slane %v8945_v7, 4  ;;  %v8946_v18 = vld [vmem:[#allocation119_spill] sm:$0xff] }
 0x22e   : > { %v6035_v62 = vpop.permute.xlu1 %1488  ;;  %v6037_v17 = vpop.permute.xlu0 %1486 }
 0x22f   : > { %8927 = vst [vmem:[#allocation139_spill] sm:$0xff] %v6033_v46 }
 0x230   : > { %1824 = vrot.lane.b32.xlu1 %v5886_v60, %s3851_s3  ;;  %1822 = vrot.lane.b32.xlu0 %v5889_v27, %s3851_s3  ;;  %v6059_v27 = vsel %vm1858_vm3, %v1896_v39, %v1898_v24  ;;  %v8947_v24 = vld [vmem:[#allocation120_spill] sm:$0xff] }
 0x231   : > { %8931 = vst [vmem:[#allocation169_spill] sm:$0xff] %v6059_v27 }
 0x232   : > { %v6043_v13 = vpop.permute.xlu1 %1492  ;;  %v6045_v48 = vpop.permute.xlu0 %1490 }
 0x234   : > { %1828 = vrot.lane.b32.xlu1 %v1444_v52, %s3851_s3  ;;  %1826 = vrot.lane.b32.xlu0 %v1442_v45, %s3851_s3  ;;  %v6062_v52 = vsel %vm1858_vm3, %v1895_v5, %v1896_v39  ;;  %v8933_v45 = vld [vmem:[#allocation110_spill] sm:$0xff]  ;;  %v1913_v39 = vrot.slane %v8946_v18, 4  ;;  %v1910_v5 = vrot.slane %v8947_v24, 4  ;;  %v8952_v24 = vld [vmem:[#allocation195_spill] sm:$0xff] }
 0x235   : > { %8932 = vst [vmem:[#allocation142_spill] sm:$0xff] %v6062_v52  ;;  %v1901_v4 = vrot.slane %v8933_v45, 4  ;;  %v1947_v18 = vrot.slane %v8952_v24, 4  ;;  %v1952_v45 = vrot.slane %v8957_v2, 4  ;;  %v8962_v2 = vld [vmem:[#allocation202_spill] sm:$0xff] }
 0x236   : > { %v6052_v37 = vpop.permute.xlu1 %1496  ;;  %v6054_v60 = vpop.permute.xlu0 %1494  ;;  %v6112_v0 = vsel %vm1858_vm3, %v1911_v56, %v1913_v39  ;;  %v6115_v50 = vsel %vm1858_vm3, %v1910_v5, %v1911_v56  ;;  %v8955_v56 = vld [vmem:[#allocation197_spill] sm:$0xff]  ;;  %v1957_v24 = vrot.slane %v8962_v2, 4 }
 0x237   : > { %v6078_v63 = vsel %vm1858_vm3, %v1901_v4, %v1903_v38  ;;  %v6081_v16 = vsel %vm1858_vm3, %v1900_v22, %v1901_v4  ;;  %v8948_v22 = vld [vmem:[#allocation193_spill] sm:$0xff]  ;;  %8950 = vst [vmem:[#allocation191_spill] sm:$0xff] %v6112_v0  ;;  %8951 = vst [vmem:[#allocation192_spill] sm:$0xff] %v6115_v50  ;;  %v1953_v5 = vrot.slane %v8955_v56, 4 }
 0x238   : > { %1832 = vrot.lane.b32.xlu1 %v1449_v1, %s3851_s3  ;;  %1830 = vrot.lane.b32.xlu0 %v1447_v6, %s3851_s3  ;;  %8940 = vst [vmem:[#allocation147_spill] sm:$0xff] %v6078_v63  ;;  %8941 = vst [vmem:[#allocation143_spill] sm:$0xff] %v6081_v16  ;;  %v6096_v6 = vsel %vm1858_vm3, %v1905_v28, %v1906_v15  ;;  %v1948_v8 = vrot.slane %v8948_v22, 4  ;;  %v8949_v15 = vld [vmem:[#allocation194_spill] sm:$0xff] }
 0x239   : > { %8944 = vst [vmem:[#allocation159_spill] sm:$0xff] %v6096_v6  ;;  %v1950_v28 = vrot.slane %v8949_v15, 4  ;;  %v6146_v56 = vsel %vm1858_vm3, %v1953_v5, %v1955_v9  ;;  %v6149_v59 = vsel %vm1858_vm3, %v1952_v45, %v1953_v5  ;;  %v8963_v45 = vld [vmem:[#allocation205_spill] sm:$0xff] }
 0x23a   : > { %v6067_v23 = vpop.permute.xlu1 %1500  ;;  %v6069_v54 = vpop.permute.xlu0 %1498  ;;  %v6130_v39 = vsel %vm1858_vm3, %v1947_v18, %v1948_v8  ;;  %v8961_v18 = vld [vmem:[#allocation201_spill] sm:$0xff]  ;;  %v1963_v5 = vrot.slane %v8963_v45, 4 }
 0x23b   : > { %8936 = vst [vmem:[#allocation134_spill] sm:$0xff] %v6067_v23  ;;  %8937 = vst [vmem:[#allocation211_spill] sm:$0xff] %v6069_v54  ;;  %v6127_v33 = vsel %vm1858_vm3, %v1948_v8, %v1950_v28  ;;  %v8960_v28 = vld [vmem:[#allocation200_spill] sm:$0xff]  ;;  %v1960_v8 = vrot.slane %v8961_v18, 4  ;;  %v6289_v23 = vld [vmem:[%s3960_s29 + $0x58] sm:$0xff] }
 0x23c   : > { %1917 = vrot.lane.b32.xlu1 %v6059_v27, %s3844_s16  ;;  %1915 = vrot.lane.b32.xlu0 %v6062_v52, %s3844_s16  ;;  %v1958_v57 = vrot.slane %v8960_v28, 4  ;;  %v8964_v28 = vld [vmem:[#allocation206_spill] sm:$0xff]  ;;  %v6249_v27 = vld [vmem:[%s3960_s29 + $0x28] sm:$0xff] }
 0x23d   : > { %v1965_v2 = vrot.slane %v8964_v28, 4  ;;  %v6183_v28 = vsel %vm1858_vm3, %v1962_v42, %v1963_v5  ;;  %v8971_v42 = vld [vmem:[#allocation148_spill] sm:$0xff] }
 0x23e   : > { %v6084_v58 = vpop.permute.xlu1 %1540  ;;  %v6086_v1 = vpop.permute.xlu0 %1538  ;;  %v6161_v18 = vsel %vm1858_vm3, %v1958_v57, %v1960_v8  ;;  %v6164_v9 = vsel %vm1858_vm3, %v1957_v24, %v1958_v57  ;;  %v8966_v8 = vld [vmem:[#allocation203_spill] sm:$0xff]  ;;  %v8967_v57 = vld [vmem:[#allocation204_spill] sm:$0xff] }
 0x23f   : > { %v2000_v41 = vrot.slane %v8966_v8, 4  ;;  %v2002_v24 = vrot.slane %v8967_v57, 4  ;;  %v6180_v45 = vsel %vm1858_vm3, %v1963_v5, %v1965_v2  ;;  %v2005_v5 = vrot.slane %v8971_v42, 4  ;;  %v8972_v57 = vld [vmem:[#allocation153_spill] sm:$0xff]  ;;  %v8973_v8 = vld [vmem:[#allocation154_spill] sm:$0xff] }
 0x240   : > { %1921 = vrot.lane.b32.xlu1 %v6078_v63, %s3844_s16  ;;  %1919 = vrot.lane.b32.xlu0 %v6081_v16, %s3844_s16  ;;  %v2007_v43 = vrot.slane %v8972_v57, 4  ;;  %v2004_v47 = vrot.slane %v8973_v8, 4  ;;  %v2052_v16 = vmul.f32 0.15915589, %v3731_v32  ;;  %v6239_v63 = vld [vmem:[%s3960_s29 + $0x10] sm:$0xff] }
 0x241   : > { %v6195_v10 = vsel %vm1858_vm3, %v2000_v41, %v2002_v24  ;;  %v6198_v2 = vsel %vm1858_vm3, %v1999_v55, %v2000_v41  ;;  %v8976_v24 = vld [vmem:[#allocation163_spill] sm:$0xff]  ;;  %v8977_v55 = vld [vmem:[#allocation166_spill] sm:$0xff] }
 0x242   : > { %v6101_v4 = vpop.permute.xlu1 %1544  ;;  %v6103_v38 = vpop.permute.xlu0 %1542  ;;  %v2010_v41 = vrot.slane %v8976_v24, 4  ;;  %v2012_v42 = vrot.slane %v8977_v55, 4  ;;  %v6214_v57 = vsel %vm1858_vm3, %v2005_v5, %v2007_v43  ;;  %v6217_v8 = vsel %vm1858_vm3, %v2004_v47, %v2005_v5  ;;  %v8979_v55 = vld [vmem:[#allocation179_spill] sm:$0xff]  ;;  %v8980_v5 = vld [vmem:[#allocation182_spill] sm:$0xff] }
 0x243   : > { %v2015_v47 = vrot.slane %v8979_v55, 4  ;;  %v2017_v24 = vrot.slane %v8980_v5, 4  ;;  %v3734_v55 = vld [vmem:[%s3960_s29 + $0x20] sm:$0xff] }
 0x244   : > { %1925 = vrot.lane.b32.xlu1 %v6093_v3, %s3844_s16  ;;  %1923 = vrot.lane.b32.xlu0 %v6096_v6, %s3844_s16  ;;  %v6229_v43 = vsel %vm1858_vm3, %v2010_v41, %v2012_v42  ;;  %v2055_v5 = vmul.f32 0.15915589, %v3734_v55 }
 0x245   : > { %v6257_v32 = vsel %vm1858_vm3, %v2015_v47, %v2017_v24 }
 0x246   : > { %v6118_v7 = vpop.permute.xlu1 %1548  ;;  %v6120_v20 = vpop.permute.xlu0 %1546 }
 0x247   : > { %8953 = vst [vmem:[#allocation185_spill] sm:$0xff] %v6118_v7  ;;  %8954 = vst [vmem:[#allocation208_spill] sm:$0xff] %v6120_v20 }
 0x248   : > { %1929 = vrot.lane.b32.xlu1 %v6112_v0, %s3844_s16  ;;  %1927 = vrot.lane.b32.xlu0 %v6115_v50, %s3844_s16  ;;  %v8978_v50 = vld [vmem:[#allocation172_spill] sm:$0xff] }
 0x249   : > { %v2009_v0 = vrot.slane %v8978_v50, 4  ;;  %v8981_v50 = vld [vmem:[#allocation186_spill] sm:$0xff] }
 0x24a   : > { %v6135_v19 = vpop.permute.xlu1 %1552  ;;  %v6137_v40 = vpop.permute.xlu0 %1550  ;;  %v2014_v6 = vrot.slane %v8981_v50, 4 }
 0x24b   : > { %8958 = vst [vmem:[#allocation137_spill] sm:$0xff] %v6135_v19  ;;  %8959 = vst [vmem:[#allocation50_spill] sm:$0xff] %v6137_v40  ;;  %v6235_v3 = vsel %vm1858_vm3, %v2009_v0, %v2010_v41  ;;  %v2056_v0 = vmul.f32 0.15915589, %v6249_v27  ;;  %v2076_v41 = vrot.slane %v2052_v16, 4 }
 0x24c   : > { %1969 = vrot.lane.b32.xlu1 %v6127_v33, %s3845_s24  ;;  %1967 = vrot.lane.b32.xlu0 %v6130_v39, %s3845_s24 }
 0x24d   : > { %v2083_v20 = vrot.slane %v2056_v0, 4 }
 0x24e   : > { %v6152_v15 = vpop.permute.xlu1 %1616  ;;  %v6154_v22 = vpop.permute.xlu0 %1614 }
 0x250   : > { %1973 = vrot.lane.b32.xlu1 %v6146_v56, %s3845_s24  ;;  %1971 = vrot.lane.b32.xlu0 %v6149_v59, %s3845_s24 }
 0x252   : > { %v6169_v30 = vpop.permute.xlu1 %1620  ;;  %v6171_v25 = vpop.permute.xlu0 %1618 }
 0x254   : > { %1977 = vrot.lane.b32.xlu1 %v6161_v18, %s3845_s24  ;;  %1975 = vrot.lane.b32.xlu0 %v6164_v9, %s3845_s24 }
 0x256   : > { %v6186_v12 = vpop.permute.xlu1 %1624  ;;  %v6188_v61 = vpop.permute.xlu0 %1622 }
 0x257   : > { %8969 = vst [vmem:[#allocation175_spill] sm:$0xff] %v6186_v12  ;;  %8970 = vst [vmem:[#allocation136_spill] sm:$0xff] %v6188_v61  ;;  %v3736_v61 = vld [vmem:[%s3960_s29 + $0x18] sm:$0xff] }
 0x258   : > { %1981 = vrot.lane.b32.xlu1 %v6180_v45, %s3845_s24  ;;  %1979 = vrot.lane.b32.xlu0 %v6183_v28, %s3845_s24  ;;  %v2054_v12 = vmul.f32 0.15915589, %v3736_v61  ;;  %v3739_v61 = vld [vmem:[%s3960_s29 + $0x30] sm:$0xff] }
 0x25a   : > { %v6203_v31 = vpop.permute.xlu1 %1628  ;;  %v6205_v29 = vpop.permute.xlu0 %1626  ;;  %v2080_v0 = vrot.slane %v2054_v12, 4  ;;  %v3742_v12 = vld [vmem:[%s3960_s29 + $0x48] sm:$0xff] }
 0x25b   : > { %8974 = vst [vmem:[#allocation217_spill] sm:$0xff] %v6203_v31  ;;  %8975 = vst [vmem:[#allocation218_spill] sm:$0xff] %v6205_v29  ;;  %v2053_v29 = vmul.f32 0.15915589, %v6239_v63  ;;  %v3733_v31 = vld [vmem:[%s3960_s29] sm:$0xff] }
 0x25c   : > { %2021 = vrot.lane.b32.xlu1 %v6195_v10, %s3846_s25  ;;  %2019 = vrot.lane.b32.xlu0 %v6198_v2, %s3846_s25  ;;  %v2051_v40 = vmul.f32 0.15915589, %v3733_v31  ;;  %v6260_v31 = vsel %vm1858_vm3, %v2014_v6, %v2015_v47  ;;  %v3737_v6 = vld [vmem:[%s3960_s29 + $0x38] sm:$0xff]  ;;  %v6273_v47 = vld [vmem:[%s3960_s29 + $0x40] sm:$0xff] }
 0x25d   : > { %v2078_v55 = vrot.slane %v2053_v29, 4  ;;  %v2058_v24 = vmul.f32 0.15915589, %v3737_v6  ;;  %8986 = vst [vmem:[#allocation170_spill] sm:$0xff] %v6273_v47  ;;  %v2059_v29 = vmul.f32 0.15915589, %v6273_v47 }
 0x25e   : > { %v6220_v21 = vpop.permute.xlu1 %1692  ;;  %v6222_v34 = vpop.permute.xlu0 %1690  ;;  %v2075_v50 = vrot.slane %v2051_v40, 4  ;;  %v2057_v40 = vmul.f32 0.15915589, %v3739_v61 }
 0x25f   : > { %v2079_v16 = vsel %vm1858_vm3, %v2076_v41, %v2078_v55  ;;  %v2086_v47 = vrot.slane %v2058_v24, 4  ;;  %v2088_v7 = vrot.slane %v2059_v29, 4  ;;  %v3740_v55 = vld [vmem:[%s3960_s29 + $0x50] sm:$0xff] }
 0x260   : > { %2025 = vrot.lane.b32.xlu1 %v6214_v57, %s3846_s25  ;;  %2023 = vrot.lane.b32.xlu0 %v6217_v8, %s3846_s25  ;;  %v2085_v54 = vrot.slane %v2057_v40, 4  ;;  %v2061_v46 = vmul.f32 0.15915589, %v3740_v55 }
 0x262   : > { %v6243_v42 = vpop.permute.xlu1 %1696  ;;  %v6245_v52 = vpop.permute.xlu0 %1694  ;;  %v2091_v24 = vrot.slane %v2061_v46, 4 }
 0x263   : > { %8982 = vst [vmem:[#allocation43_spill] sm:$0xff] %v6243_v42  ;;  %8983 = vst [vmem:[#allocation189_spill] sm:$0xff] %v6245_v52  ;;  %v2081_v42 = vrot.slane %v2055_v5, 4  ;;  %v2077_v5 = vsel %vm1858_vm3, %v2075_v50, %v2076_v41  ;;  %v2062_v50 = vmul.f32 0.15915589, %v6289_v23 }
 0x264   : > { %2029 = vrot.lane.b32.xlu1 %v6229_v43, %s3846_s25  ;;  %2027 = vrot.lane.b32.xlu0 %v6235_v3, %s3846_s25  ;;  %v2060_v41 = vmul.f32 0.15915589, %v3742_v12 }
 0x265   : > { %v2084_v6 = vsel %vm1858_vm3, %v2081_v42, %v2083_v20  ;;  %v2082_v61 = vsel %vm1858_vm3, %v2080_v0, %v2081_v42  ;;  %v2089_v20 = vsel %vm1858_vm3, %v2086_v47, %v2088_v7  ;;  %v2087_v42 = vsel %vm1858_vm3, %v2085_v54, %v2086_v47 }
 0x266   : > { %v6263_v19 = vpop.permute.xlu1 %1700  ;;  %v6265_v52 = vpop.permute.xlu0 %1698  ;;  %v2093_v29 = vrot.slane %v2062_v50, 4  ;;  %v2090_v40 = vrot.slane %v2060_v41, 4 }
 0x267   : > { %8984 = vst [vmem:[#allocation216_spill] sm:$0xff] %v6263_v19  ;;  %8985 = vst [vmem:[#allocation138_spill] sm:$0xff] %v6265_v52 }
 0x268   : > { %2033 = vrot.lane.b32.xlu1 %v6257_v32, %s3846_s25  ;;  %2031 = vrot.lane.b32.xlu0 %v6260_v31, %s3846_s25  ;;  %v2094_v55 = vsel %vm1858_vm3, %v2091_v24, %v2093_v29 }
 0x26a   : > { %v6279_v52 = vpop.permute.xlu1 %1704  ;;  %v6281_v19 = vpop.permute.xlu0 %1702 }
 0x26b   : > { %8987 = vst [vmem:[#allocation219_spill] sm:$0xff] %v6281_v19 }
 0x26c   : > { %2097 = vrot.lane.b32.xlu1 %v2079_v16, %s3847_s27  ;;  %2095 = vrot.lane.b32.xlu0 %v2077_v5, %s3847_s27 }
 0x26e   : > { %v6293_v19 = vpop.permute.xlu1 %1724  ;;  %v6295_v16 = vpop.permute.xlu0 %1722 }
 0x270   : > { %2101 = vrot.lane.b32.xlu1 %v2084_v6, %s3847_s27  ;;  %2099 = vrot.lane.b32.xlu0 %v2082_v61, %s3847_s27  ;;  %v2092_v6 = vsel %vm1858_vm3, %v2090_v40, %v2091_v24 }
 0x272   : > { %v6301_v5 = vpop.permute.xlu1 %1728  ;;  %v6303_v0 = vpop.permute.xlu0 %1726 }
 0x274   : > { %2105 = vrot.lane.b32.xlu1 %v2089_v20, %s3847_s27  ;;  %2103 = vrot.lane.b32.xlu0 %v2087_v42, %s3847_s27  ;;  %v6352_v20 = vmul.f32 5.3390853e-05, %v6239_v63 }
 0x276   : > { %v6309_v61 = vpop.permute.xlu1 %1732  ;;  %v6311_v7 = vpop.permute.xlu0 %1730  ;;  %8988 = vst [vmem:[#allocation220_spill] sm:$0xff] %v6352_v20  ;;  %v1862_v63 = vrot.slane %v6352_v20, 4 }
 0x278   : > { %2109 = vrot.lane.b32.xlu1 %v2094_v55, %s3847_s27  ;;  %2107 = vrot.lane.b32.xlu0 %v2092_v6, %s3847_s27 }
 0x27a   : > { %v6315_v46 = vpop.permute.xlu1 %1736  ;;  %v6317_v54 = vpop.permute.xlu0 %1734 }
 0x27c   : > { %2129 = vrot.lane.b32.xlu1 %v6195_v10, %s3848_s28  ;;  %2127 = vrot.lane.b32.xlu0 %v6198_v2, %s3848_s28 }
 0x27e   : > { %v1757_v47 = vpop.permute.xlu1 %1756  ;;  %v1755_v50 = vpop.permute.xlu0 %1754 }
 0x280   : > { %2133 = vrot.lane.b32.xlu1 %v6214_v57, %s3848_s28  ;;  %2131 = vrot.lane.b32.xlu0 %v6217_v8, %s3848_s28 }
 0x282   : > { %v6327_v12 = vpop.permute.xlu1 %1760  ;;  %v6329_v41 = vpop.permute.xlu0 %1758 }
 0x284   : > { %2137 = vrot.lane.b32.xlu1 %v6229_v43, %s3848_s28  ;;  %2135 = vrot.lane.b32.xlu0 %v6235_v3, %s3848_s28 }
 0x286   : > { %v6335_v10 = vpop.permute.xlu1 %1764  ;;  %v6337_v2 = vpop.permute.xlu0 %1762 }
 0x288   : > { %2141 = vrot.lane.b32.xlu1 %v6257_v32, %s3848_s28  ;;  %2139 = vrot.lane.b32.xlu0 %v6260_v31, %s3848_s28  ;;  %v6359_v32 = vmul.f32 5.3390853e-05, %v6249_v27 }
 0x28a   : > { %v6343_v8 = vpop.permute.xlu1 %1768  ;;  %v6345_v57 = vpop.permute.xlu0 %1766  ;;  %8989 = vst [vmem:[#allocation45_spill] sm:$0xff] %v6359_v32 }
 0x28c   : > { %2161 = vrot.lane.b32.xlu1 %v6127_v33, %s3849_s30  ;;  %2159 = vrot.lane.b32.xlu0 %v6130_v39, %s3849_s30  ;;  %v1511_v33 = vadd.f32 %v6035_v62, %v5958_v26  ;;  %v1510_v39 = vadd.f32 %v6037_v17, %v5961_v36  ;;  %v1867_v26 = vrot.slane %v6359_v32, 4  ;;  %v1513_v36 = vadd.f32 %v6043_v13, %v5990_v44 }
 0x28d   : > { %v1512_v62 = vadd.f32 %v6045_v48, %v5993_v11  ;;  %v1515_v48 = vadd.f32 %v6052_v37, %v6016_v51 }
 0x28e   : > { %v1789_v3 = vpop.permute.xlu1 %1788  ;;  %v1787_v43 = vpop.permute.xlu0 %1786  ;;  %v1562_v24 = vadd.f32 %v6086_v1, %v1510_v39  ;;  %v8990_v1 = vrot.slane %v8874_v53, 4  ;;  %v8991_v53 = vrot.slane %v8879_v49, 4  ;;  %v8996_v49 = vld [vmem:[#allocation208_spill] sm:$0xff] }
 0x28f   : > { %v1564_v44 = vadd.f32 %v6103_v38, %v1512_v62  ;;  %v8993_v38 = vld [vmem:[#allocation139_spill] sm:$0xff]  ;;  %v9002_v62 = vld [vmem:[#allocation169_spill] sm:$0xff] }
 0x290   : > { %2165 = vrot.lane.b32.xlu1 %v6146_v56, %s3849_s30  ;;  %2163 = vrot.lane.b32.xlu0 %v6149_v59, %s3849_s30  ;;  %v1563_v56 = vadd.f32 %v6084_v58, %v1511_v33  ;;  %v1638_v27 = vadd.f32 %v6154_v22, %v1562_v24  ;;  %v1514_v22 = vadd.f32 %v6054_v60, %v6018_v35  ;;  %v8992_v35 = vld [vmem:[#allocation134_spill] sm:$0xff]  ;;  %v8998_v33 = vld [vmem:[#allocation189_spill] sm:$0xff] }
 0x291   : > { %v1517_v60 = vadd.f32 %v8992_v35, %v6031_v14  ;;  %v9000_v14 = vld [vmem:[#allocation175_spill] sm:$0xff] }
 0x292   : > { %v6365_v31 = vpop.permute.xlu1 %1792  ;;  %v6367_v42 = vpop.permute.xlu0 %1790  ;;  %v1639_v17 = vadd.f32 %v6152_v15, %v1563_v56  ;;  %v1714_v11 = vadd.f32 %v6222_v34, %v1638_v27  ;;  %v1640_v34 = vadd.f32 %v6171_v25, %v1564_v44  ;;  %v8994_v15 = vld [vmem:[#allocation211_spill] sm:$0xff]  ;;  %v1566_v40 = vadd.f32 %v8996_v49, %v1514_v22  ;;  %v9004_v27 = vld [vmem:[#allocation170_spill] sm:$0xff] }
 0x294   : > { %2169 = vrot.lane.b32.xlu1 %v6161_v18, %s3849_s30  ;;  %2167 = vrot.lane.b32.xlu0 %v6164_v9, %s3849_s30  ;;  %v6390_v18 = vsel %vm1858_vm3, %v8990_v1, %v1862_v63  ;;  %v1565_v9 = vadd.f32 %v6101_v4, %v1513_v36  ;;  %v1715_v13 = vadd.f32 %v6220_v21, %v1639_v17  ;;  %v8999_v63 = vld [vmem:[#allocation137_spill] sm:$0xff]  ;;  %v9003_v17 = vld [vmem:[#allocation142_spill] sm:$0xff]  ;;  %v6433_v1 = vmul.f32 5.3390853e-05, %v9004_v27 }
 0x295   : > { %v6407_v4 = vsel %vm1858_vm3, %v8991_v53, %v1867_v26  ;;  %v1746_v37 = vadd.f32 %v6295_v16, %v1714_v11  ;;  %v1569_v56 = vadd.f32 %v8999_v63, %v1517_v60  ;;  %v9001_v26 = vld [vmem:[#allocation136_spill] sm:$0xff] }
 0x296   : > { %v6383_v59 = vpop.permute.xlu1 %1796  ;;  %v6385_v58 = vpop.permute.xlu0 %1794  ;;  %v1641_v21 = vadd.f32 %v6169_v30, %v1565_v9  ;;  %v1747_v51 = vadd.f32 %v6293_v19, %v1715_v13  ;;  %v8997_v30 = vld [vmem:[#allocation43_spill] sm:$0xff]  ;;  %v1716_v19 = vadd.f32 %v8998_v33, %v1640_v34  ;;  %v1642_v36 = vadd.f32 %v9001_v26, %v1566_v40  ;;  %9005 = vst [vmem:[#allocation171_spill] sm:$0xff] %v6433_v1  ;;  %v9006_v13 = vld [vmem:[#allocation50_spill] sm:$0xff]  ;;  %v9008_v53 = vld [vmem:[#allocation216_spill] sm:$0xff] }
 0x297   : > { %v1778_v16 = vadd.f32 %v1755_v50, %v1746_v37  ;;  %v9009_v34 = vld [vmem:[#allocation138_spill] sm:$0xff]  ;;  %v9013_v40 = vld [vmem:[#allocation39_spill] sm:$0xff] }
 0x298   : > { %2173 = vrot.lane.b32.xlu1 %v6180_v45, %s3849_s30  ;;  %2171 = vrot.lane.b32.xlu0 %v6183_v28, %s3849_s30  ;;  %v1516_v45 = vadd.f32 %v8994_v15, %v8993_v38  ;;  %v8995_v28 = vld [vmem:[#allocation185_spill] sm:$0xff]  ;;  %v1717_v25 = vadd.f32 %v8997_v30, %v1641_v21  ;;  %v1779_v39 = vadd.f32 %v1757_v47, %v1747_v51  ;;  %v9017_v26 = vld [vmem:[#allocation159_spill] sm:$0xff] }
 0x299   : > { %v1567_v29 = vadd.f32 %v8995_v28, %v1515_v48  ;;  %v1748_v47 = vadd.f32 %v6303_v0, %v1716_v19  ;;  %v1810_v44 = vadd.f32 %v1787_v43, %v1778_v16  ;;  %v9007_v48 = vld [vmem:[#allocation217_spill] sm:$0xff]  ;;  %v1718_v51 = vadd.f32 %v9009_v34, %v1642_v36  ;;  %v9010_v28 = vld [vmem:[#allocation218_spill] sm:$0xff] }
 0x29a   : > { %v6419_v55 = vpop.permute.xlu1 %1800  ;;  %v6421_v6 = vpop.permute.xlu0 %1798  ;;  %v1749_v9 = vadd.f32 %v6301_v5, %v1717_v25  ;;  %v1811_v50 = vadd.f32 %v1789_v3, %v1779_v39  ;;  %v1568_v11 = vadd.f32 %v9006_v13, %v1516_v45  ;;  %v1645_v22 = vadd.f32 %v9007_v48, %v1569_v56  ;;  %v9011_v45 = vld [vmem:[#allocation147_spill] sm:$0xff] }
 0x29b   : > { %v1643_v24 = vadd.f32 %v9000_v14, %v1567_v29  ;;  %v1780_v38 = vadd.f32 %v6329_v41, %v1748_v47  ;;  %v1750_v43 = vadd.f32 %v6311_v7, %v1718_v51  ;;  %v9012_v29 = vld [vmem:[#allocation143_spill] sm:$0xff]  ;;  %v1872_v39 = vrot.slane %v6433_v1, 4 }
 0x29c   : > { %2193 = vrot.lane.b32.xlu1 %v9002_v62, %s3850_s2  ;;  %2191 = vrot.lane.b32.xlu0 %v9003_v17, %s3850_s2  ;;  %v1781_v60 = vadd.f32 %v6327_v12, %v1749_v9  ;;  %v1644_v0 = vadd.f32 %v9010_v28, %v1568_v11  ;;  %v9014_v25 = vld [vmem:[#allocation219_spill] sm:$0xff]  ;;  %v6462_v16 = vmul.f32 5.3390853e-05, %v6289_v23  ;;  %v9019_v17 = vld [vmem:[#allocation42_spill] sm:$0xff]  ;;  %v9022_v11 = vld [vmem:[#allocation192_spill] sm:$0xff] }
 0x29d   : > { %v1719_v21 = vadd.f32 %v9008_v53, %v1643_v24  ;;  %v1812_v12 = vadd.f32 %v6367_v42, %v1780_v38  ;;  %v1782_v42 = vadd.f32 %v6337_v2, %v1750_v43  ;;  %v9018_v2 = vld [vmem:[#allocation41_spill] sm:$0xff]  ;;  %v9021_v13 = vld [vmem:[#allocation191_spill] sm:$0xff] }
 0x29e   : > { %v1821_v37 = vpop.permute.xlu1 %1820  ;;  %v1819_v35 = vpop.permute.xlu0 %1818  ;;  %v1813_v49 = vadd.f32 %v6365_v31, %v1781_v60  ;;  %v1720_v7 = vadd.f32 %v9014_v25, %v1644_v0  ;;  %9015 = vst [vmem:[#allocation168_spill] sm:$0xff] %v6462_v16  ;;  %v1877_v47 = vrot.slane %v6462_v16, 4  ;;  %v9056_v16 = vld [vmem:[#allocation183_spill] sm:$0xff] }
 0x29f   : > { %v1843_v15 = vadd.f32 %v1821_v37, %v1811_v50  ;;  %v1842_v5 = vadd.f32 %v1819_v35, %v1810_v44  ;;  %v1751_v3 = vadd.f32 %v6309_v61, %v1719_v21  ;;  %v1721_v61 = vadd.f32 %v6279_v52, %v1645_v22  ;;  %v9016_v52 = vld [vmem:[#allocation141_spill] sm:$0xff]  ;;  %v9023_v21 = vld [vmem:[#allocation158_spill] sm:$0xff] }
 0x2a0   : > { %2197 = vrot.lane.b32.xlu1 %v9011_v45, %s3850_s2  ;;  %2195 = vrot.lane.b32.xlu0 %v9012_v29, %s3850_s2  ;;  %v1752_v24 = vadd.f32 %v6317_v54, %v1720_v7  ;;  %v1814_v23 = vadd.f32 %v6385_v58, %v1782_v42  ;;  %v9028_v45 = vld [vmem:[#allocation90_spill] sm:$0xff]  ;;  %v9032_v7 = vld [vmem:[#allocation93_spill] sm:$0xff]  ;;  %v2354_v20 = vrot.slane %v9056_v16, 5  ;;  %v9067_v16 = vld [vmem:[#allocation140_spill] sm:$0xff] }
 0x2a1   : > { %v6453_v41 = vadd.f32 %v6390_v18, %v1843_v15  ;;  %v6456_v30 = vadd.f32 %v9013_v40, %v1842_v5  ;;  %v1783_v31 = vadd.f32 %v6335_v10, %v1751_v3  ;;  %v1753_v14 = vadd.f32 %v6315_v46, %v1721_v61  ;;  %v9027_v3 = vld [vmem:[#allocation89_spill] sm:$0xff] }
 0x2a2   : > { %v1825_v33 = vpop.permute.xlu1 %1824  ;;  %v1823_v19 = vpop.permute.xlu0 %1822  ;;  %v9020_v46 = vrot.slane %v9019_v17, 4  ;;  %v2293_v43 = vrot.slane %v9027_v3, 5  ;;  %v2295_v29 = vrot.slane %v9028_v45, 5  ;;  %v9062_v3 = vld [vmem:[#allocation196_spill] sm:$0xff] }
 0x2a3   : > { %v1845_v63 = vadd.f32 %v1825_v33, %v1813_v49  ;;  %v1844_v56 = vadd.f32 %v1823_v19, %v1812_v12  ;;  %v1815_v36 = vadd.f32 %v6383_v59, %v1783_v31  ;;  %v1785_v50 = vadd.f32 %v6343_v8, %v1753_v14  ;;  %v9024_v8 = vld [vmem:[#allocation44_spill] sm:$0xff]  ;;  %v9029_v49 = vld [vmem:[#allocation91_spill] sm:$0xff]  ;;  %v9033_v19 = vld [vmem:[#allocation94_spill] sm:$0xff] }
 0x2a4   : > { %2201 = vrot.lane.b32.xlu1 %v9016_v52, %s3850_s2  ;;  %2199 = vrot.lane.b32.xlu0 %v9017_v26, %s3850_s2  ;;  %v1873_v54 = vsel %vm1858_vm3, %v9020_v46, %v1872_v39  ;;  %v1784_v59 = vadd.f32 %v6345_v57, %v1752_v24  ;;  %v9025_v51 = vrot.slane %v9024_v8, 4  ;;  %v2292_v12 = vrot.slane %v9029_v49, 5  ;;  %v9034_v31 = vld [vmem:[#allocation95_spill] sm:$0xff]  ;;  %v9035_v14 = vld [vmem:[#allocation97_spill] sm:$0xff]  ;;  %v9036_v52 = vld [vmem:[#allocation98_spill] sm:$0xff] }
 0x2a5   : > { %v6475_v10 = vadd.f32 %v6407_v4, %v1845_v63  ;;  %v6478_v62 = vadd.f32 %v9018_v2, %v1844_v56  ;;  %v1817_v48 = vadd.f32 %v6419_v55, %v1785_v50  ;;  %v6535_v61 = vsel %vm2255_vm4, %v2293_v43, %v2295_v29  ;;  %v9046_v8 = vld [vmem:[#allocation165_spill] sm:$0xff] }
 0x2a6   : > { %v1829_v27 = vpop.permute.xlu1 %1828  ;;  %v1827_v9 = vpop.permute.xlu0 %1826  ;;  %v1816_v22 = vadd.f32 %v6421_v6, %v1784_v59  ;;  %v1878_v57 = vsel %vm1858_vm3, %v9025_v51, %v1877_v47  ;;  %v9026_v6 = vld [vmem:[#allocation150_spill] sm:$0xff]  ;;  %9030 = vst [vmem:[#allocation134_spill] sm:$0xff] %v6535_v61  ;;  %v6538_v25 = vsel %vm2255_vm4, %v2292_v12, %v2293_v43  ;;  %v2298_v33 = vrot.slane %v9032_v7, 5  ;;  %v9043_v59 = vld [vmem:[#allocation103_spill] sm:$0xff]  ;;  %v9050_v12 = vld [vmem:[#allocation173_spill] sm:$0xff] }
 0x2a7   : > { %v1847_v44 = vadd.f32 %v1829_v27, %v1815_v36  ;;  %v1846_v58 = vadd.f32 %v1827_v9, %v1814_v23  ;;  %9031 = vst [vmem:[#allocation139_spill] sm:$0xff] %v6538_v25  ;;  %v2300_v39 = vrot.slane %v9033_v19, 5  ;;  %v2297_v42 = vrot.slane %v9034_v31, 5  ;;  %v9042_v47 = vld [vmem:[#allocation102_spill] sm:$0xff] }
 0x2a8   : > { %2205 = vrot.lane.b32.xlu1 %v9021_v13, %s3850_s2  ;;  %2203 = vrot.lane.b32.xlu0 %v9022_v11, %s3850_s2  ;;  %v2303_v24 = vrot.slane %v9035_v14, 5  ;;  %v2305_v26 = vrot.slane %v9036_v52, 5  ;;  %v2308_v50 = vrot.slane %v9042_v47, 5  ;;  %v2347_v51 = vrot.slane %v9046_v8, 5  ;;  %v9058_v47 = vld [vmem:[#allocation188_spill] sm:$0xff]  ;;  %v9059_v52 = vld [vmem:[#allocation190_spill] sm:$0xff] }
 0x2a9   : > { %v6492_v53 = vadd.f32 %v1873_v54, %v1847_v44  ;;  %v6495_v34 = vadd.f32 %v9023_v21, %v1846_v58  ;;  %v6554_v36 = vsel %vm2255_vm4, %v2298_v33, %v2300_v39  ;;  %v6557_v23 = vsel %vm2255_vm4, %v2297_v42, %v2298_v33  ;;  %v9044_v58 = vld [vmem:[#allocation104_spill] sm:$0xff]  ;;  %v9051_v39 = vld [vmem:[#allocation174_spill] sm:$0xff] }
 0x2aa   : > { %v1833_v37 = vpop.permute.xlu1 %1832  ;;  %v1831_v35 = vpop.permute.xlu0 %1830  ;;  %9037 = vst [vmem:[#allocation211_spill] sm:$0xff] %v6554_v36  ;;  %9038 = vst [vmem:[#allocation185_spill] sm:$0xff] %v6557_v23  ;;  %v6569_v27 = vsel %vm2255_vm4, %v2303_v24, %v2305_v26  ;;  %v2310_v44 = vrot.slane %v9043_v59, 5  ;;  %v2307_v13 = vrot.slane %v9044_v58, 5  ;;  %v2350_v33 = vrot.slane %v9050_v12, 5 }
 0x2ab   : > { %v1849_v60 = vadd.f32 %v1833_v37, %v1817_v48  ;;  %v1848_v38 = vadd.f32 %v1831_v35, %v1816_v22  ;;  %9040 = vst [vmem:[#allocation208_spill] sm:$0xff] %v6569_v27  ;;  %v9045_v22 = vld [vmem:[#allocation164_spill] sm:$0xff]  ;;  %v9049_v35 = vld [vmem:[#allocation167_spill] sm:$0xff]  ;;  %v2352_v42 = vrot.slane %v9051_v39, 5  ;;  %v2359_v14 = vrot.slane %v9059_v52, 5 }
 0x2ac   : > { %2225 = vrot.lane.b32.xlu1 %v6390_v18, %s3851_s3  ;;  %2223 = vrot.lane.b32.xlu0 %v9013_v40, %s3851_s3  ;;  %v6591_v37 = vsel %vm2255_vm4, %v2307_v13, %v2308_v50  ;;  %v2396_v52 = vrot.slane %v9062_v3, 5 }
 0x2ad   : > { %v6504_v55 = vadd.f32 %v1878_v57, %v1849_v60  ;;  %v6507_v15 = vadd.f32 %v9026_v6, %v1848_v38  ;;  %9048 = vst [vmem:[#allocation137_spill] sm:$0xff] %v6591_v37  ;;  %v2344_v60 = vrot.slane %v9049_v35, 5 }
 0x2ae   : > { %v6509_v5 = vpop.permute.xlu1 %1917  ;;  %v6511_v28 = vpop.permute.xlu0 %1915 }
 0x2b0   : > { %2229 = vrot.lane.b32.xlu1 %v6407_v4, %s3851_s3  ;;  %2227 = vrot.lane.b32.xlu0 %v9018_v2, %s3851_s3  ;;  %v9039_v2 = vld [vmem:[#allocation99_spill] sm:$0xff] }
 0x2b1   : > { %v2302_v17 = vrot.slane %v9039_v2, 5  ;;  %v2362_v2 = vrot.slane %v9058_v47, 5 }
 0x2b2   : > { %v6517_v0 = vpop.permute.xlu1 %1921  ;;  %v6519_v18 = vpop.permute.xlu0 %1919 }
 0x2b3   : > { %v6572_v9 = vsel %vm2255_vm4, %v2302_v17, %v2303_v24  ;;  %v9052_v24 = vld [vmem:[#allocation176_spill] sm:$0xff] }
 0x2b4   : > { %2233 = vrot.lane.b32.xlu1 %v1873_v54, %s3851_s3  ;;  %2231 = vrot.lane.b32.xlu0 %v9023_v21, %s3851_s3  ;;  %9041 = vst [vmem:[#allocation43_spill] sm:$0xff] %v6572_v9  ;;  %v2345_v21 = vrot.slane %v9045_v22, 5  ;;  %v2349_v26 = vrot.slane %v9052_v24, 5 }
 0x2b6   : > { %v6527_v4 = vpop.permute.xlu1 %1925  ;;  %v6529_v40 = vpop.permute.xlu0 %1923  ;;  %v6603_v43 = vsel %vm2255_vm4, %v2345_v21, %v2347_v51  ;;  %v6606_v29 = vsel %vm2255_vm4, %v2344_v60, %v2345_v21  ;;  %v9055_v21 = vld [vmem:[#allocation181_spill] sm:$0xff]  ;;  %v6622_v60 = vsel %vm2255_vm4, %v2350_v33, %v2352_v42  ;;  %v6625_v1 = vsel %vm2255_vm4, %v2349_v26, %v2350_v33  ;;  %v9057_v33 = vld [vmem:[#allocation187_spill] sm:$0xff] }
 0x2b7   : > { %v2357_v51 = vrot.slane %v9055_v21, 5  ;;  %v2360_v26 = vrot.slane %v9057_v33, 5  ;;  %v2401_v21 = vrot.slane %v9067_v16, 5  ;;  %v9072_v16 = vld [vmem:[#allocation213_spill] sm:$0xff] }
 0x2b8   : > { %2237 = vrot.lane.b32.xlu1 %v1878_v57, %s3851_s3  ;;  %2235 = vrot.lane.b32.xlu0 %v9026_v6, %s3851_s3  ;;  %v6588_v57 = vsel %vm2255_vm4, %v2308_v50, %v2310_v44  ;;  %v9054_v44 = vld [vmem:[#allocation180_spill] sm:$0xff]  ;;  %v2406_v12 = vrot.slane %v9072_v16, 5 }
 0x2b9   : > { %9047 = vst [vmem:[#allocation189_spill] sm:$0xff] %v6588_v57  ;;  %v2355_v13 = vrot.slane %v9054_v44, 5  ;;  %v6656_v49 = vsel %vm2255_vm4, %v2360_v26, %v2362_v2  ;;  %v6659_v45 = vsel %vm2255_vm4, %v2359_v14, %v2360_v26  ;;  %v9065_v14 = vld [vmem:[#allocation177_spill] sm:$0xff] }
 0x2ba   : > { %v6543_v63 = vpop.permute.xlu1 %1929  ;;  %v6545_v56 = vpop.permute.xlu0 %1927  ;;  %v2402_v26 = vrot.slane %v9065_v14, 5 }
 0x2bb   : > { %v6637_v59 = vsel %vm2255_vm4, %v2355_v13, %v2357_v51  ;;  %v6640_v42 = vsel %vm2255_vm4, %v2354_v20, %v2355_v13  ;;  %v9060_v51 = vld [vmem:[#allocation155_spill] sm:$0xff]  ;;  %v9061_v20 = vld [vmem:[#allocation156_spill] sm:$0xff] }
 0x2bc   : > { %2314 = vrot.lane.b32.xlu1 %v6535_v61, %s3844_s16  ;;  %2312 = vrot.lane.b32.xlu0 %v6538_v25, %s3844_s16  ;;  %v2397_v7 = vrot.slane %v9060_v51, 5  ;;  %v2399_v13 = vrot.slane %v9061_v20, 5  ;;  %v9066_v20 = vld [vmem:[#allocation178_spill] sm:$0xff]  ;;  %v9082_v25 = vld [vmem:[#allocation153_spill] sm:$0xff] }
 0x2bd   : > { %v2404_v3 = vrot.slane %v9066_v20, 5  ;;  %v6693_v20 = vsel %vm2255_vm4, %v2401_v21, %v2402_v26  ;;  %v9074_v21 = vld [vmem:[#allocation144_spill] sm:$0xff]  ;;  %v9083_v61 = vld [vmem:[#allocation154_spill] sm:$0xff] }
 0x2be   : > { %v6560_v46 = vpop.permute.xlu1 %1969  ;;  %v6562_v54 = vpop.permute.xlu0 %1967  ;;  %v6671_v51 = vsel %vm2255_vm4, %v2397_v7, %v2399_v13  ;;  %v6674_v2 = vsel %vm2255_vm4, %v2396_v52, %v2397_v7  ;;  %v9070_v13 = vld [vmem:[#allocation184_spill] sm:$0xff] }
 0x2bf   : > { %v2407_v39 = vrot.slane %v9070_v13, 5  ;;  %v9071_v7 = vld [vmem:[#allocation212_spill] sm:$0xff]  ;;  %v6690_v14 = vsel %vm2255_vm4, %v2402_v26, %v2404_v3  ;;  %v2414_v26 = vrot.slane %v9074_v21, 5 }
 0x2c0   : > { %2318 = vrot.lane.b32.xlu1 %v6554_v36, %s3844_s16  ;;  %2316 = vrot.lane.b32.xlu0 %v6557_v23, %s3844_s16  ;;  %v2409_v52 = vrot.slane %v9071_v7, 5  ;;  %v9073_v7 = vld [vmem:[#allocation209_spill] sm:$0xff]  ;;  %v9077_v36 = vld [vmem:[#allocation204_spill] sm:$0xff] }
 0x2c1   : > { %v2408_v3 = vsel %vm2255_vm4, %v2406_v12, %v2407_v39  ;;  %v2412_v22 = vrot.slane %v9073_v7, 5  ;;  %v9078_v7 = vld [vmem:[#allocation210_spill] sm:$0xff] }
 0x2c2   : > { %v6577_v11 = vpop.permute.xlu1 %1973  ;;  %v6579_v48 = vpop.permute.xlu0 %1971  ;;  %v2410_v13 = vsel %vm2255_vm4, %v2407_v39, %v2409_v52  ;;  %v2451_v52 = vrot.slane %v9077_v36, 5  ;;  %v2448_v21 = vrot.slane %v9078_v7, 5 }
 0x2c3   : > { %v2415_v12 = vsel %vm2255_vm4, %v2412_v22, %v2414_v26  ;;  %v2456_v26 = vrot.slane %v9082_v25, 5 }
 0x2c4   : > { %2322 = vrot.lane.b32.xlu1 %v6569_v27, %s3844_s16  ;;  %2320 = vrot.lane.b32.xlu0 %v6572_v9, %s3844_s16  ;;  %v9076_v27 = vld [vmem:[#allocation203_spill] sm:$0xff] }
 0x2c5   : > { %v2449_v23 = vrot.slane %v9076_v27, 5 }
 0x2c6   : > { %v6594_v38 = vpop.permute.xlu1 %1977  ;;  %v6596_v6 = vpop.permute.xlu0 %1975 }
 0x2c7   : > { %v2450_v27 = vsel %vm2255_vm4, %v2448_v21, %v2449_v23  ;;  %v9088_v21 = vld [vmem:[#allocation172_spill] sm:$0xff] }
 0x2c8   : > { %2326 = vrot.lane.b32.xlu1 %v6588_v57, %s3844_s16  ;;  %2324 = vrot.lane.b32.xlu0 %v6591_v37, %s3844_s16  ;;  %v9075_v37 = vld [vmem:[#allocation145_spill] sm:$0xff]  ;;  %v2458_v25 = vrot.slane %v9088_v21, 5 }
 0x2c9   : > { %v2411_v16 = vrot.slane %v9075_v37, 5 }
 0x2ca   : > { %v6611_v17 = vpop.permute.xlu1 %1981  ;;  %v6613_v50 = vpop.permute.xlu0 %1979 }
 0x2cb   : > { %9053 = vst [vmem:[#allocation175_spill] sm:$0xff] %v6613_v50  ;;  %v2413_v39 = vsel %vm2255_vm4, %v2411_v16, %v2412_v22  ;;  %v9081_v50 = vld [vmem:[#allocation148_spill] sm:$0xff]  ;;  %v2453_v22 = vrot.slane %v9083_v61, 5 }
 0x2cc   : > { %2366 = vrot.lane.b32.xlu1 %v6603_v43, %s3845_s24  ;;  %2364 = vrot.lane.b32.xlu0 %v6606_v29, %s3845_s24  ;;  %v2454_v36 = vrot.slane %v9081_v50, 5 }
 0x2ce   : > { %v6628_v32 = vpop.permute.xlu1 %2021  ;;  %v6630_v58 = vpop.permute.xlu0 %2019  ;;  %v2455_v50 = vsel %vm2255_vm4, %v2453_v22, %v2454_v36 }
 0x2d0   : > { %2370 = vrot.lane.b32.xlu1 %v6622_v60, %s3845_s24  ;;  %2368 = vrot.lane.b32.xlu0 %v6625_v1, %s3845_s24 }
 0x2d2   : > { %v6645_v31 = vpop.permute.xlu1 %2025  ;;  %v6647_v19 = vpop.permute.xlu0 %2023 }
 0x2d4   : > { %2374 = vrot.lane.b32.xlu1 %v6637_v59, %s3845_s24  ;;  %2372 = vrot.lane.b32.xlu0 %v6640_v42, %s3845_s24 }
 0x2d6   : > { %v6662_v47 = vpop.permute.xlu1 %2029  ;;  %v6664_v33 = vpop.permute.xlu0 %2027 }
 0x2d7   : > { %9063 = vst [vmem:[#allocation136_spill] sm:$0xff] %v6662_v47  ;;  %9064 = vst [vmem:[#allocation169_spill] sm:$0xff] %v6664_v33  ;;  %v9087_v33 = vld [vmem:[#allocation166_spill] sm:$0xff] }
 0x2d8   : > { %2378 = vrot.lane.b32.xlu1 %v6656_v49, %s3845_s24  ;;  %2376 = vrot.lane.b32.xlu0 %v6659_v45, %s3845_s24 }
 0x2da   : > { %v6679_v44 = vpop.permute.xlu1 %2033  ;;  %v6681_v24 = vpop.permute.xlu0 %2031 }
 0x2db   : > { %9068 = vst [vmem:[#allocation142_spill] sm:$0xff] %v6679_v44  ;;  %9069 = vst [vmem:[#allocation170_spill] sm:$0xff] %v6681_v24  ;;  %v2452_v44 = vsel %vm2255_vm4, %v2449_v23, %v2451_v52  ;;  %v2461_v52 = vrot.slane %v9087_v33, 5  ;;  %v2457_v23 = vsel %vm2255_vm4, %v2454_v36, %v2456_v26 }
 0x2dc   : > { %2418 = vrot.lane.b32.xlu1 %v6671_v51, %s3846_s25  ;;  %2416 = vrot.lane.b32.xlu0 %v6674_v2, %s3846_s25 }
 0x2de   : > { %v6696_v35 = vpop.permute.xlu1 %2097  ;;  %v6698_v8 = vpop.permute.xlu0 %2095 }
 0x2e0   : > { %2422 = vrot.lane.b32.xlu1 %v6690_v14, %s3846_s25  ;;  %2420 = vrot.lane.b32.xlu0 %v6693_v20, %s3846_s25 }
 0x2e2   : > { %v6709_v57 = vpop.permute.xlu1 %2101  ;;  %v6711_v9 = vpop.permute.xlu0 %2099 }
 0x2e4   : > { %2426 = vrot.lane.b32.xlu1 %v2410_v13, %s3846_s25  ;;  %2424 = vrot.lane.b32.xlu0 %v2408_v3, %s3846_s25 }
 0x2e6   : > { %v6720_v24 = vpop.permute.xlu1 %2105  ;;  %v6722_v37 = vpop.permute.xlu0 %2103 }
 0x2e7   : > { %9079 = vst [vmem:[#allocation50_spill] sm:$0xff] %v6720_v24  ;;  %9080 = vst [vmem:[#allocation217_spill] sm:$0xff] %v6722_v37  ;;  %v9086_v37 = vld [vmem:[#allocation163_spill] sm:$0xff] }
 0x2e8   : > { %2430 = vrot.lane.b32.xlu1 %v2415_v12, %s3846_s25  ;;  %2428 = vrot.lane.b32.xlu0 %v2413_v39, %s3846_s25  ;;  %v2459_v24 = vrot.slane %v9086_v37, 5 }
 0x2ea   : > { %v6731_v16 = vpop.permute.xlu1 %2109  ;;  %v6733_v7 = vpop.permute.xlu0 %2107  ;;  %v2460_v37 = vsel %vm2255_vm4, %v2458_v25, %v2459_v24 }
 0x2eb   : > { %9084 = vst [vmem:[#allocation216_spill] sm:$0xff] %v6731_v16  ;;  %9085 = vst [vmem:[#allocation138_spill] sm:$0xff] %v6733_v7  ;;  %v9090_v7 = vld [vmem:[#allocation182_spill] sm:$0xff] }
 0x2ec   : > { %2470 = vrot.lane.b32.xlu1 %v2452_v44, %s3847_s27  ;;  %2468 = vrot.lane.b32.xlu0 %v2450_v27, %s3847_s27  ;;  %v2462_v44 = vsel %vm2255_vm4, %v2459_v24, %v2461_v52  ;;  %v9089_v27 = vld [vmem:[#allocation179_spill] sm:$0xff]  ;;  %v2466_v26 = vrot.slane %v9090_v7, 5  ;;  %v9091_v16 = vld [vmem:[#allocation186_spill] sm:$0xff] }
 0x2ed   : > { %v2464_v33 = vrot.slane %v9089_v27, 5  ;;  %v2463_v36 = vrot.slane %v9091_v16, 5 }
 0x2ee   : > { %v6742_v47 = vpop.permute.xlu1 %2129  ;;  %v6744_v61 = vpop.permute.xlu0 %2127 }
 0x2ef   : > { %v2465_v52 = vsel %vm2255_vm4, %v2463_v36, %v2464_v33  ;;  %v9094_v36 = vld [vmem:[#allocation221_spill] sm:$0xff] }
 0x2f0   : > { %2474 = vrot.lane.b32.xlu1 %v2457_v23, %s3847_s27  ;;  %2472 = vrot.lane.b32.xlu0 %v2455_v50, %s3847_s27  ;;  %v2467_v23 = vsel %vm2255_vm4, %v2464_v33, %v2466_v26  ;;  %v9093_v26 = vld [vmem:[#allocation30_spill] sm:$0xff] }
 0x2f2   : > { %v6753_v22 = vpop.permute.xlu1 %2133  ;;  %v6755_v21 = vpop.permute.xlu0 %2131 }
 0x2f4   : > { %2478 = vrot.lane.b32.xlu1 %v2462_v44, %s3847_s27  ;;  %2476 = vrot.lane.b32.xlu0 %v2460_v37, %s3847_s27 }
 0x2f6   : > { %v6761_v50 = vpop.permute.xlu1 %2137  ;;  %v6763_v24 = vpop.permute.xlu0 %2135 }
 0x2f8   : > { %2482 = vrot.lane.b32.xlu1 %v2467_v23, %s3847_s27  ;;  %2480 = vrot.lane.b32.xlu0 %v2465_v52, %s3847_s27  ;;  %v2259_v23 = vrot.slane %v9094_v36, 5  ;;  %v9095_v52 = vld [vmem:[#allocation31_spill] sm:$0xff] }
 0x2fa   : > { %v6767_v16 = vpop.permute.xlu1 %2141  ;;  %v6769_v7 = vpop.permute.xlu0 %2139 }
 0x2fc   : > { %2502 = vrot.lane.b32.xlu1 %v6671_v51, %s3848_s28  ;;  %2500 = vrot.lane.b32.xlu0 %v6674_v2, %s3848_s28 }
 0x2fe   : > { %v6775_v25 = vpop.permute.xlu1 %2161  ;;  %v6777_v44 = vpop.permute.xlu0 %2159 }
 0x300   : > { %2506 = vrot.lane.b32.xlu1 %v6690_v14, %s3848_s28  ;;  %2504 = vrot.lane.b32.xlu0 %v6693_v20, %s3848_s28 }
 0x302   : > { %v6783_v37 = vpop.permute.xlu1 %2165  ;;  %v6785_v27 = vpop.permute.xlu0 %2163 }
 0x304   : > { %2510 = vrot.lane.b32.xlu1 %v2410_v13, %s3848_s28  ;;  %2508 = vrot.lane.b32.xlu0 %v2408_v3, %s3848_s28  ;;  %v1940_v3 = vadd.f32 %v6509_v5, %v6453_v41  ;;  %v9096_v41 = vld [vmem:[#allocation32_spill] sm:$0xff]  ;;  %v9097_v5 = vld [vmem:[#allocation222_spill] sm:$0xff] }
 0x306   : > { %v6789_v51 = vpop.permute.xlu1 %2169  ;;  %v6791_v2 = vpop.permute.xlu0 %2167 }
 0x308   : > { %2514 = vrot.lane.b32.xlu1 %v2415_v12, %s3848_s28  ;;  %2512 = vrot.lane.b32.xlu0 %v2413_v39, %s3848_s28  ;;  %v1939_v12 = vadd.f32 %v6511_v28, %v6456_v30  ;;  %v2264_v28 = vrot.slane %v9097_v5, 5 }
 0x30a   : > { %v6795_v14 = vpop.permute.xlu1 %2173  ;;  %v6797_v33 = vpop.permute.xlu0 %2171 }
 0x30b   : > { %9092 = vst [vmem:[#allocation218_spill] sm:$0xff] %v6797_v33  ;;  %v2256_v33 = vrot.slane %v9095_v52, 5  ;;  %v1941_v52 = vadd.f32 %v6519_v18, %v6478_v62  ;;  %v1943_v18 = vadd.f32 %v6529_v40, %v6495_v34 }
 0x30c   : > { %2534 = vrot.lane.b32.xlu1 %v6603_v43, %s3849_s30  ;;  %2532 = vrot.lane.b32.xlu0 %v6606_v29, %s3849_s30  ;;  %v2257_v29 = vrot.slane %v9093_v26, 5  ;;  %v1942_v26 = vadd.f32 %v6517_v0, %v6475_v10  ;;  %v1944_v0 = vadd.f32 %v6527_v4, %v6492_v53 }
 0x30d   : > { %v1993_v10 = vadd.f32 %v6579_v48, %v1941_v52  ;;  %v9099_v48 = vld [vmem:[#allocation33_spill] sm:$0xff] }
 0x30e   : > { %v2194_v20 = vpop.permute.xlu1 %2193  ;;  %v2192_v13 = vpop.permute.xlu0 %2191  ;;  %v1994_v30 = vadd.f32 %v6577_v11, %v1942_v26  ;;  %v1996_v40 = vadd.f32 %v6594_v38, %v1944_v0  ;;  %v9106_v26 = vld [vmem:[#allocation142_spill] sm:$0xff] }
 0x30f   : > { %v2045_v53 = vadd.f32 %v6647_v19, %v1993_v10  ;;  %v9108_v10 = vld [vmem:[#allocation217_spill] sm:$0xff] }
 0x310   : > { %2538 = vrot.lane.b32.xlu1 %v6622_v60, %s3849_s30  ;;  %2536 = vrot.lane.b32.xlu0 %v6625_v1, %s3849_s30  ;;  %v1992_v60 = vadd.f32 %v6560_v46, %v1940_v3  ;;  %v1991_v1 = vadd.f32 %v6562_v54, %v1939_v12  ;;  %v6840_v12 = vsel %vm2255_vm4, %v2256_v33, %v2257_v29 }
 0x311   : > { %v1995_v33 = vadd.f32 %v6596_v6, %v1943_v18  ;;  %v9102_v6 = vld [vmem:[#allocation134_spill] sm:$0xff] }
 0x312   : > { %v6811_v39 = vpop.permute.xlu1 %2197  ;;  %v6813_v43 = vpop.permute.xlu0 %2195  ;;  %v2044_v46 = vadd.f32 %v6628_v32, %v1992_v60  ;;  %v2043_v54 = vadd.f32 %v6630_v58, %v1991_v1  ;;  %v9098_v58 = vrot.slane %v9096_v41, 5  ;;  %v9103_v60 = vld [vmem:[#allocation139_spill] sm:$0xff]  ;;  %v9104_v1 = vld [vmem:[#allocation34_spill] sm:$0xff] }
 0x314   : > { %2542 = vrot.lane.b32.xlu1 %v6637_v59, %s3849_s30  ;;  %2540 = vrot.lane.b32.xlu0 %v6640_v42, %s3849_s30  ;;  %v6837_v42 = vsel %vm2255_vm4, %v2257_v29, %v2259_v23  ;;  %v2120_v62 = vadd.f32 %v6696_v35, %v2044_v46  ;;  %v2119_v32 = vadd.f32 %v6698_v8, %v2043_v54  ;;  %v2261_v35 = vrot.slane %v9099_v48, 5  ;;  %v9107_v46 = vld [vmem:[#allocation50_spill] sm:$0xff] }
 0x315   : > { %v6857_v11 = vsel %vm2255_vm4, %v9098_v58, %v2264_v28  ;;  %v2046_v8 = vadd.f32 %v6645_v31, %v1994_v30  ;;  %v2121_v31 = vadd.f32 %v6711_v9, %v2045_v53  ;;  %v9105_v28 = vld [vmem:[#allocation175_spill] sm:$0xff] }
 0x316   : > { %v6832_v3 = vpop.permute.xlu1 %2201  ;;  %v6834_v59 = vpop.permute.xlu0 %2199  ;;  %v2152_v4 = vadd.f32 %v6742_v47, %v2120_v62  ;;  %v2151_v34 = vadd.f32 %v6744_v61, %v2119_v32  ;;  %v9110_v53 = vld [vmem:[#allocation211_spill] sm:$0xff] }
 0x317   : > { %v2122_v19 = vadd.f32 %v6709_v57, %v2046_v8  ;;  %v2267_v57 = vrot.slane %v9104_v1, 5  ;;  %v9109_v8 = vld [vmem:[#allocation170_spill] sm:$0xff]  ;;  %v9117_v1 = vld [vmem:[#allocation208_spill] sm:$0xff] }
 0x318   : > { %2546 = vrot.lane.b32.xlu1 %v6656_v49, %s3849_s30  ;;  %2544 = vrot.lane.b32.xlu0 %v6659_v45, %s3849_s30  ;;  %v1946_v49 = vadd.f32 %v6543_v63, %v6504_v55  ;;  %v1945_v45 = vadd.f32 %v6545_v56, %v6507_v15  ;;  %v2184_v47 = vadd.f32 %v6775_v25, %v2152_v4  ;;  %v9100_v63 = vld [vmem:[#allocation136_spill] sm:$0xff]  ;;  %v9101_v56 = vld [vmem:[#allocation169_spill] sm:$0xff] }
 0x319   : > { %v2183_v61 = vadd.f32 %v6777_v44, %v2151_v34  ;;  %v2048_v15 = vadd.f32 %v9100_v63, %v1996_v40  ;;  %v2047_v38 = vadd.f32 %v9101_v56, %v1995_v33  ;;  %v2154_v9 = vadd.f32 %v6753_v22, %v2122_v19  ;;  %v9111_v4 = vld [vmem:[#allocation185_spill] sm:$0xff]  ;;  %v9112_v34 = vld [vmem:[#allocation38_spill] sm:$0xff]  ;;  %v9116_v63 = vld [vmem:[#allocation35_spill] sm:$0xff] }
 0x31a   : > { %v6870_v29 = vpop.permute.xlu1 %2205  ;;  %v6872_v23 = vpop.permute.xlu0 %2203  ;;  %v1998_v55 = vadd.f32 %v6611_v17, %v1946_v49  ;;  %v2153_v25 = vadd.f32 %v6755_v21, %v2121_v31  ;;  %v2216_v30 = vadd.f32 %v2194_v20, %v2184_v47  ;;  %v1997_v17 = vadd.f32 %v9105_v28, %v1945_v45  ;;  %v9114_v33 = vld [vmem:[#allocation138_spill] sm:$0xff]  ;;  %v9120_v28 = vld [vmem:[#allocation40_spill] sm:$0xff] }
 0x31b   : > { %v2215_v44 = vadd.f32 %v2192_v13, %v2183_v61  ;;  %v2124_v54 = vadd.f32 %v9107_v46, %v2048_v15  ;;  %v2123_v62 = vadd.f32 %v9108_v10, %v2047_v38  ;;  %v2186_v18 = vadd.f32 %v6783_v37, %v2154_v9  ;;  %v9118_v9 = vld [vmem:[#allocation43_spill] sm:$0xff] }
 0x31c   : > { %2566 = vrot.lane.b32.xlu1 %v9102_v6, %s3850_s2  ;;  %2564 = vrot.lane.b32.xlu0 %v9103_v60, %s3850_s2  ;;  %v2050_v52 = vadd.f32 %v9106_v26, %v1998_v55  ;;  %v2185_v58 = vadd.f32 %v6785_v27, %v2153_v25  ;;  %v2049_v21 = vadd.f32 %v9109_v8, %v1997_v17  ;;  %v2269_v49 = vrot.slane %v9112_v34, 5 }
 0x31d   : > { %v2156_v20 = vadd.f32 %v6761_v50, %v2124_v54  ;;  %v2155_v13 = vadd.f32 %v6763_v24, %v2123_v62  ;;  %v2218_v37 = vadd.f32 %v6811_v39, %v2186_v18  ;;  %v9113_v50 = vld [vmem:[#allocation216_spill] sm:$0xff]  ;;  %v9115_v61 = vrot.slane %v9096_v41, 5 }
 0x31e   : > { %v2226_v32 = vpop.permute.xlu1 %2225  ;;  %v2224_v0 = vpop.permute.xlu0 %2223  ;;  %v2217_v27 = vadd.f32 %v6813_v43, %v2185_v58  ;;  %v2126_v24 = vadd.f32 %v9113_v50, %v2050_v52  ;;  %v2125_v19 = vadd.f32 %v9114_v33, %v2049_v21  ;;  %v2266_v39 = vrot.slane %v9116_v63, 5  ;;  %v9121_v52 = vld [vmem:[#allocation37_spill] sm:$0xff]  ;;  %v9131_v63 = vld [vmem:[#allocation76_spill] sm:$0xff] }
 0x31f   : > { %v2248_v48 = vadd.f32 %v2226_v32, %v2216_v30  ;;  %v2247_v22 = vadd.f32 %v2224_v0, %v2215_v44  ;;  %v2263_v55 = vsel %vm2255_vm4, %v2261_v35, %v9115_v61  ;;  %v2188_v43 = vadd.f32 %v6789_v51, %v2156_v20  ;;  %v9123_v32 = vld [vmem:[#allocation189_spill] sm:$0xff]  ;;  %v9130_v61 = vld [vmem:[#allocation75_spill] sm:$0xff] }
 0x320   : > { %2570 = vrot.lane.b32.xlu1 %v9110_v53, %s3850_s2  ;;  %2568 = vrot.lane.b32.xlu0 %v9111_v4, %s3850_s2  ;;  %v2187_v15 = vadd.f32 %v6791_v2, %v2155_v13  ;;  %v2158_v6 = vadd.f32 %v6767_v16, %v2126_v24  ;;  %v2157_v60 = vadd.f32 %v6769_v7, %v2125_v19  ;;  %v9119_v7 = vld [vmem:[#allocation36_spill] sm:$0xff]  ;;  %v2274_v17 = vrot.slane %v9120_v28, 5  ;;  %v9124_v0 = vld [vmem:[#allocation137_spill] sm:$0xff] }
 0x321   : > { %v6905_v45 = vadd.f32 %v6837_v42, %v2248_v48  ;;  %v6908_v40 = vadd.f32 %v6840_v12, %v2247_v22  ;;  %v2270_v41 = vsel %vm2255_vm4, %v2267_v57, %v2269_v49  ;;  %v2220_v35 = vadd.f32 %v6832_v3, %v2188_v43  ;;  %v9122_v3 = vld [vmem:[#allocation218_spill] sm:$0xff]  ;;  %v9127_v24 = vld [vmem:[#allocation73_spill] sm:$0xff]  ;;  %v9132_v43 = vld [vmem:[#allocation79_spill] sm:$0xff] }
 0x322   : > { %v2230_v31 = vpop.permute.xlu1 %2229  ;;  %v2228_v47 = vpop.permute.xlu0 %2227  ;;  %v2219_v51 = vadd.f32 %v6834_v59, %v2187_v15  ;;  %v2272_v44 = vrot.slane %v9119_v7, 5  ;;  %v2268_v26 = vsel %vm2255_vm4, %v2266_v39, %v2267_v57  ;;  %v2271_v46 = vrot.slane %v9121_v52, 5 }
 0x323   : > { %v2250_v56 = vadd.f32 %v2230_v31, %v2218_v37  ;;  %v2249_v38 = vadd.f32 %v2228_v47, %v2217_v27  ;;  %v2190_v54 = vadd.f32 %v6795_v14, %v2158_v6  ;;  %v2189_v10 = vadd.f32 %v9122_v3, %v2157_v60  ;;  %v9126_v27 = vld [vmem:[#allocation71_spill] sm:$0xff]  ;;  %v9133_v6 = vld [vmem:[#allocation81_spill] sm:$0xff] }
 0x324   : > { %2574 = vrot.lane.b32.xlu1 %v9117_v1, %s3850_s2  ;;  %2572 = vrot.lane.b32.xlu0 %v9118_v9, %s3850_s2  ;;  %v2275_v14 = vsel %vm2255_vm4, %v2272_v44, %v2274_v17  ;;  %v2273_v21 = vsel %vm2255_vm4, %v2271_v46, %v2272_v44  ;;  %v2668_v50 = vrot.slane %v9126_v27, 6  ;;  %v2665_v33 = vrot.slane %v9127_v24, 6  ;;  %v9134_v1 = vld [vmem:[#allocation82_spill] sm:$0xff]  ;;  %v9142_v3 = vld [vmem:[#allocation87_spill] sm:$0xff] }
 0x325   : > { %v6928_v2 = vadd.f32 %v6857_v11, %v2250_v56  ;;  %v6930_v25 = vadd.f32 %v2263_v55, %v2249_v38  ;;  %v2222_v18 = vadd.f32 %v6870_v29, %v2190_v54  ;;  %v2221_v58 = vadd.f32 %v6872_v23, %v2189_v10  ;;  %v9141_v46 = vld [vmem:[#allocation86_spill] sm:$0xff] }
 0x326   : > { %v2234_v16 = vpop.permute.xlu1 %2233  ;;  %v2232_v30 = vpop.permute.xlu0 %2231  ;;  %v2673_v39 = vrot.slane %v9131_v63, 6  ;;  %v2670_v15 = vrot.slane %v9132_v43, 6  ;;  %v2676_v60 = vrot.slane %v9133_v6, 6  ;;  %v2678_v9 = vrot.slane %v9134_v1, 6 }
 0x327   : > { %v2252_v59 = vadd.f32 %v2234_v16, %v2220_v35  ;;  %v2251_v62 = vadd.f32 %v2232_v30, %v2219_v51  ;;  %v9137_v51 = vld [vmem:[#allocation83_spill] sm:$0xff]  ;;  %v2683_v54 = vrot.slane %v9141_v46, 6  ;;  %v2680_v10 = vrot.slane %v9142_v3, 6 }
 0x328   : > { %2578 = vrot.lane.b32.xlu1 %v9123_v32, %s3850_s2  ;;  %2576 = vrot.lane.b32.xlu0 %v9124_v0, %s3850_s2  ;;  %v2675_v16 = vrot.slane %v9137_v51, 6  ;;  %v7015_v44 = vsel %vm2628_vm5, %v2676_v60, %v2678_v9  ;;  %v9143_v32 = vld [vmem:[#allocation12_spill] sm:$0xff] }
 0x329   : > { %v6944_v48 = vadd.f32 %v2270_v41, %v2252_v59  ;;  %v6946_v57 = vadd.f32 %v2268_v26, %v2251_v62  ;;  %9138 = vst [vmem:[#allocation141_spill] sm:$0xff] %v7015_v44  ;;  %v2718_v0 = vrot.slane %v9143_v32, 6  ;;  %v9153_v32 = vld [vmem:[#allocation157_spill] sm:$0xff]  ;;  %v9165_v51 = vld [vmem:[#allocation176_spill] sm:$0xff] }
 0x32a   : > { %v2238_v22 = vpop.permute.xlu1 %2237  ;;  %v2236_v8 = vpop.permute.xlu0 %2235  ;;  %v7018_v17 = vsel %vm2628_vm5, %v2675_v16, %v2676_v60  ;;  %v9150_v60 = vld [vmem:[#allocation152_spill] sm:$0xff]  ;;  %v2774_v1 = vrot.slane %v9165_v51, 6  ;;  %v9170_v51 = vld [vmem:[#allocation183_spill] sm:$0xff] }
 0x32b   : > { %v2254_v20 = vadd.f32 %v2238_v22, %v2222_v18  ;;  %v2253_v13 = vadd.f32 %v2236_v8, %v2221_v58  ;;  %9139 = vst [vmem:[#allocation159_spill] sm:$0xff] %v7018_v17  ;;  %v9144_v18 = vld [vmem:[#allocation146_spill] sm:$0xff]  ;;  %v9147_v8 = vld [vmem:[#allocation8_spill] sm:$0xff]  ;;  %v2722_v9 = vrot.slane %v9150_v60, 6 }
 0x32c   : > { %2598 = vrot.lane.b32.xlu1 %v6837_v42, %s3851_s3  ;;  %2596 = vrot.lane.b32.xlu0 %v6840_v12, %s3851_s3  ;;  %v9125_v42 = vld [vmem:[#allocation70_spill] sm:$0xff]  ;;  %v2720_v58 = vrot.slane %v9144_v18, 6 }
 0x32d   : > { %v6954_v29 = vadd.f32 %v2275_v14, %v2254_v20  ;;  %v6956_v23 = vadd.f32 %v2273_v21, %v2253_v13  ;;  %v2666_v12 = vrot.slane %v9125_v42, 6 }
 0x32e   : > { %v6958_v53 = vpop.permute.xlu1 %2314  ;;  %v6960_v4 = vpop.permute.xlu0 %2312 }
 0x32f   : > { %v6981_v31 = vsel %vm2628_vm5, %v2666_v12, %v2668_v50  ;;  %v6984_v47 = vsel %vm2628_vm5, %v2665_v33, %v2666_v12  ;;  %v7049_v12 = vsel %vm2628_vm5, %v2718_v0, %v2720_v58  ;;  %v9148_v33 = vld [vmem:[#allocation9_spill] sm:$0xff] }
 0x330   : > { %2602 = vrot.lane.b32.xlu1 %v6857_v11, %s3851_s3  ;;  %2600 = vrot.lane.b32.xlu0 %v2263_v55, %s3851_s3  ;;  %9128 = vst [vmem:[#allocation147_spill] sm:$0xff] %v6981_v31  ;;  %9129 = vst [vmem:[#allocation143_spill] sm:$0xff] %v6984_v47  ;;  %v2671_v55 = vrot.slane %v9130_v61, 6  ;;  %v2779_v61 = vrot.slane %v9170_v51, 6 }
 0x332   : > { %v6965_v49 = vpop.permute.xlu1 %2318  ;;  %v6967_v37 = vpop.permute.xlu0 %2316  ;;  %v7003_v35 = vsel %vm2628_vm5, %v2670_v15, %v2671_v55 }
 0x333   : > { %9136 = vst [vmem:[#allocation219_spill] sm:$0xff] %v7003_v35 }
 0x334   : > { %2606 = vrot.lane.b32.xlu1 %v2270_v41, %s3851_s3  ;;  %2604 = vrot.lane.b32.xlu0 %v2268_v26, %s3851_s3  ;;  %v7000_v41 = vsel %vm2628_vm5, %v2671_v55, %v2673_v39  ;;  %v9140_v26 = vld [vmem:[#allocation85_spill] sm:$0xff]  ;;  %v2723_v55 = vrot.slane %v9148_v33, 6  ;;  %v9149_v39 = vld [vmem:[#allocation151_spill] sm:$0xff] }
 0x335   : > { %9135 = vst [vmem:[#allocation39_spill] sm:$0xff] %v7000_v41  ;;  %v2681_v52 = vrot.slane %v9140_v26, 6  ;;  %v2725_v15 = vrot.slane %v9149_v39, 6 }
 0x336   : > { %v6974_v19 = vpop.permute.xlu1 %2322  ;;  %v6976_v11 = vpop.permute.xlu0 %2320  ;;  %v7071_v58 = vsel %vm2628_vm5, %v2722_v9, %v2723_v55 }
 0x337   : > { %v7037_v22 = vsel %vm2628_vm5, %v2680_v10, %v2681_v52  ;;  %v7068_v18 = vsel %vm2628_vm5, %v2723_v55, %v2725_v15  ;;  %v9155_v55 = vld [vmem:[#allocation160_spill] sm:$0xff] }
 0x338   : > { %2610 = vrot.lane.b32.xlu1 %v2275_v14, %s3851_s3  ;;  %2608 = vrot.lane.b32.xlu0 %v2273_v21, %s3851_s3  ;;  %v7034_v14 = vsel %vm2628_vm5, %v2681_v52, %v2683_v54  ;;  %9146 = vst [vmem:[#allocation42_spill] sm:$0xff] %v7037_v22  ;;  %v2717_v21 = vrot.slane %v9147_v8, 6  ;;  %v9152_v54 = vld [vmem:[#allocation15_spill] sm:$0xff]  ;;  %v9154_v8 = vld [vmem:[#allocation16_spill] sm:$0xff]  ;;  %v2733_v9 = vrot.slane %v9155_v55, 6 }
 0x339   : > { %9145 = vst [vmem:[#allocation41_spill] sm:$0xff] %v7034_v14  ;;  %v2728_v10 = vrot.slane %v9152_v54, 6  ;;  %v9156_v54 = vld [vmem:[#allocation161_spill] sm:$0xff] }
 0x33a   : > { %v6989_v56 = vpop.permute.xlu1 %2326  ;;  %v6991_v38 = vpop.permute.xlu0 %2324  ;;  %v7052_v50 = vsel %vm2628_vm5, %v2717_v21, %v2718_v0  ;;  %v2730_v0 = vrot.slane %v9153_v32, 6  ;;  %v2727_v21 = vrot.slane %v9154_v8, 6  ;;  %v2735_v32 = vrot.slane %v9156_v54, 6  ;;  %v9157_v8 = vld [vmem:[#allocation19_spill] sm:$0xff] }
 0x33b   : > { %v2732_v34 = vrot.slane %v9157_v8, 6  ;;  %v9160_v8 = vld [vmem:[#allocation167_spill] sm:$0xff] }
 0x33c   : > { %2687 = vrot.lane.b32.xlu1 %v6981_v31, %s3844_s16  ;;  %2685 = vrot.lane.b32.xlu0 %v6984_v47, %s3844_s16  ;;  %v7083_v60 = vsel %vm2628_vm5, %v2728_v10, %v2730_v0  ;;  %v7086_v15 = vsel %vm2628_vm5, %v2727_v21, %v2728_v10  ;;  %v9158_v0 = vld [vmem:[#allocation164_spill] sm:$0xff]  ;;  %v9159_v10 = vld [vmem:[#allocation165_spill] sm:$0xff]  ;;  %v7102_v55 = vsel %vm2628_vm5, %v2733_v9, %v2735_v32  ;;  %v2769_v3 = vrot.slane %v9160_v8, 6  ;;  %v9180_v47 = vld [vmem:[#allocation198_spill] sm:$0xff] }
 0x33d   : > { %v2770_v5 = vrot.slane %v9158_v0, 6  ;;  %v2772_v21 = vrot.slane %v9159_v10, 6  ;;  %v7105_v54 = vsel %vm2628_vm5, %v2732_v34, %v2733_v9  ;;  %v9163_v34 = vld [vmem:[#allocation173_spill] sm:$0xff]  ;;  %v9164_v10 = vld [vmem:[#allocation174_spill] sm:$0xff]  ;;  %v9181_v31 = vld [vmem:[#allocation199_spill] sm:$0xff] }
 0x33e   : > { %v7006_v30 = vpop.permute.xlu1 %2366  ;;  %v7008_v7 = vpop.permute.xlu0 %2364  ;;  %v2775_v9 = vrot.slane %v9163_v34, 6  ;;  %v2777_v8 = vrot.slane %v9164_v10, 6 }
 0x33f   : > { %v7117_v0 = vsel %vm2628_vm5, %v2770_v5, %v2772_v21  ;;  %v7120_v32 = vsel %vm2628_vm5, %v2769_v3, %v2770_v5  ;;  %v9168_v21 = vld [vmem:[#allocation180_spill] sm:$0xff]  ;;  %v9169_v5 = vld [vmem:[#allocation181_spill] sm:$0xff] }
 0x340   : > { %2691 = vrot.lane.b32.xlu1 %v7000_v41, %s3844_s16  ;;  %2689 = vrot.lane.b32.xlu0 %v7003_v35, %s3844_s16  ;;  %v2780_v63 = vrot.slane %v9168_v21, 6  ;;  %v2782_v3 = vrot.slane %v9169_v5, 6  ;;  %v7136_v34 = vsel %vm2628_vm5, %v2775_v9, %v2777_v8  ;;  %v7139_v10 = vsel %vm2628_vm5, %v2774_v1, %v2775_v9  ;;  %v9171_v5 = vld [vmem:[#allocation187_spill] sm:$0xff]  ;;  %v9172_v1 = vld [vmem:[#allocation188_spill] sm:$0xff]  ;;  %v9175_v41 = vld [vmem:[#allocation194_spill] sm:$0xff] }
 0x341   : > { %v2785_v42 = vrot.slane %v9171_v5, 6  ;;  %v2787_v9 = vrot.slane %v9172_v1, 6  ;;  %v9176_v5 = vld [vmem:[#allocation195_spill] sm:$0xff] }
 0x342   : > { %v7023_v59 = vpop.permute.xlu1 %2370  ;;  %v7025_v62 = vpop.permute.xlu0 %2368  ;;  %v2783_v21 = vsel %vm2628_vm5, %v2780_v63, %v2782_v3  ;;  %v2781_v8 = vsel %vm2628_vm5, %v2779_v61, %v2780_v63  ;;  %v2824_v3 = vrot.slane %v9175_v41, 6  ;;  %v2821_v1 = vrot.slane %v9176_v5, 6 }
 0x343   : > { %v2788_v61 = vsel %vm2628_vm5, %v2785_v42, %v2787_v9  ;;  %v2829_v9 = vrot.slane %v9180_v47, 6 }
 0x344   : > { %2695 = vrot.lane.b32.xlu1 %v7015_v44, %s3844_s16  ;;  %2693 = vrot.lane.b32.xlu0 %v7018_v17, %s3844_s16  ;;  %v9174_v44 = vld [vmem:[#allocation193_spill] sm:$0xff] }
 0x345   : > { %v2822_v35 = vrot.slane %v9174_v44, 6 }
 0x346   : > { %v7040_v20 = vpop.permute.xlu1 %2374  ;;  %v7042_v13 = vpop.permute.xlu0 %2372 }
 0x347   : > { %v2823_v44 = vsel %vm2628_vm5, %v2821_v1, %v2822_v35  ;;  %v9186_v1 = vld [vmem:[#allocation202_spill] sm:$0xff] }
 0x348   : > { %2699 = vrot.lane.b32.xlu1 %v7034_v14, %s3844_s16  ;;  %2697 = vrot.lane.b32.xlu0 %v7037_v22, %s3844_s16  ;;  %v9173_v22 = vld [vmem:[#allocation190_spill] sm:$0xff]  ;;  %v2831_v47 = vrot.slane %v9186_v1, 6 }
 0x349   : > { %v2784_v51 = vrot.slane %v9173_v22, 6 }
 0x34a   : > { %v7057_v16 = vpop.permute.xlu1 %2378  ;;  %v7059_v52 = vpop.permute.xlu0 %2376 }
 0x34b   : > { %9151 = vst [vmem:[#allocation191_spill] sm:$0xff] %v7059_v52  ;;  %v2786_v63 = vsel %vm2628_vm5, %v2784_v51, %v2785_v42  ;;  %v9179_v52 = vld [vmem:[#allocation197_spill] sm:$0xff]  ;;  %v2826_v42 = vrot.slane %v9181_v31, 6 }
 0x34c   : > { %2739 = vrot.lane.b32.xlu1 %v7049_v12, %s3845_s24  ;;  %2737 = vrot.lane.b32.xlu0 %v7052_v50, %s3845_s24  ;;  %v2827_v41 = vrot.slane %v9179_v52, 6 }
 0x34e   : > { %v7074_v33 = vpop.permute.xlu1 %2418  ;;  %v7076_v39 = vpop.permute.xlu0 %2416  ;;  %v2828_v52 = vsel %vm2628_vm5, %v2826_v42, %v2827_v41 }
 0x350   : > { %2743 = vrot.lane.b32.xlu1 %v7068_v18, %s3845_s24  ;;  %2741 = vrot.lane.b32.xlu0 %v7071_v58, %s3845_s24 }
 0x352   : > { %v7091_v28 = vpop.permute.xlu1 %2422  ;;  %v7093_v36 = vpop.permute.xlu0 %2420 }
 0x354   : > { %2747 = vrot.lane.b32.xlu1 %v7083_v60, %s3845_s24  ;;  %2745 = vrot.lane.b32.xlu0 %v7086_v15, %s3845_s24 }
 0x356   : > { %v7108_v46 = vpop.permute.xlu1 %2426  ;;  %v7110_v26 = vpop.permute.xlu0 %2424 }
 0x357   : > { %9161 = vst [vmem:[#allocation192_spill] sm:$0xff] %v7108_v46  ;;  %9162 = vst [vmem:[#allocation158_spill] sm:$0xff] %v7110_v26  ;;  %v9185_v26 = vld [vmem:[#allocation201_spill] sm:$0xff] }
 0x358   : > { %2751 = vrot.lane.b32.xlu1 %v7102_v55, %s3845_s24  ;;  %2749 = vrot.lane.b32.xlu0 %v7105_v54, %s3845_s24 }
 0x35a   : > { %v7125_v6 = vpop.permute.xlu1 %2430  ;;  %v7127_v43 = vpop.permute.xlu0 %2428 }
 0x35b   : > { %9166 = vst [vmem:[#allocation44_spill] sm:$0xff] %v7125_v6  ;;  %9167 = vst [vmem:[#allocation150_spill] sm:$0xff] %v7127_v43  ;;  %v2825_v6 = vsel %vm2628_vm5, %v2822_v35, %v2824_v3  ;;  %v2834_v3 = vrot.slane %v9185_v26, 6  ;;  %v2830_v35 = vsel %vm2628_vm5, %v2827_v41, %v2829_v9 }
 0x35c   : > { %2791 = vrot.lane.b32.xlu1 %v7117_v0, %s3846_s25  ;;  %2789 = vrot.lane.b32.xlu0 %v7120_v32, %s3846_s25 }
 0x35e   : > { %v7142_v24 = vpop.permute.xlu1 %2470  ;;  %v7144_v27 = vpop.permute.xlu0 %2468 }
 0x360   : > { %2795 = vrot.lane.b32.xlu1 %v7136_v34, %s3846_s25  ;;  %2793 = vrot.lane.b32.xlu0 %v7139_v10, %s3846_s25 }
 0x362   : > { %v7155_v14 = vpop.permute.xlu1 %2474  ;;  %v7157_v17 = vpop.permute.xlu0 %2472 }
 0x364   : > { %2799 = vrot.lane.b32.xlu1 %v2783_v21, %s3846_s25  ;;  %2797 = vrot.lane.b32.xlu0 %v2781_v8, %s3846_s25 }
 0x366   : > { %v7166_v43 = vpop.permute.xlu1 %2478  ;;  %v7168_v22 = vpop.permute.xlu0 %2476 }
 0x367   : > { %9177 = vst [vmem:[#allocation155_spill] sm:$0xff] %v7166_v43  ;;  %9178 = vst [vmem:[#allocation156_spill] sm:$0xff] %v7168_v22  ;;  %v9184_v22 = vld [vmem:[#allocation200_spill] sm:$0xff] }
 0x368   : > { %2803 = vrot.lane.b32.xlu1 %v2788_v61, %s3846_s25  ;;  %2801 = vrot.lane.b32.xlu0 %v2786_v63, %s3846_s25  ;;  %v2832_v43 = vrot.slane %v9184_v22, 6 }
 0x36a   : > { %v7177_v51 = vpop.permute.xlu1 %2482  ;;  %v7179_v5 = vpop.permute.xlu0 %2480  ;;  %v2833_v22 = vsel %vm2628_vm5, %v2831_v47, %v2832_v43 }
 0x36b   : > { %9182 = vst [vmem:[#allocation196_spill] sm:$0xff] %v7177_v51  ;;  %9183 = vst [vmem:[#allocation177_spill] sm:$0xff] %v7179_v5  ;;  %v9188_v5 = vld [vmem:[#allocation206_spill] sm:$0xff]  ;;  %v9189_v51 = vld [vmem:[#allocation207_spill] sm:$0xff] }
 0x36c   : > { %2843 = vrot.lane.b32.xlu1 %v2825_v6, %s3847_s27  ;;  %2841 = vrot.lane.b32.xlu0 %v2823_v44, %s3847_s27  ;;  %v2835_v6 = vsel %vm2628_vm5, %v2832_v43, %v2834_v3  ;;  %v9187_v44 = vld [vmem:[#allocation205_spill] sm:$0xff]  ;;  %v2839_v9 = vrot.slane %v9188_v5, 6  ;;  %v2836_v41 = vrot.slane %v9189_v51, 6 }
 0x36d   : > { %v2837_v26 = vrot.slane %v9187_v44, 6 }
 0x36e   : > { %v7188_v46 = vpop.permute.xlu1 %2502  ;;  %v7190_v31 = vpop.permute.xlu0 %2500 }
 0x36f   : > { %v2838_v3 = vsel %vm2628_vm5, %v2836_v41, %v2837_v26  ;;  %v9192_v41 = vld [vmem:[#allocation214_spill] sm:$0xff] }
 0x370   : > { %2847 = vrot.lane.b32.xlu1 %v2830_v35, %s3847_s27  ;;  %2845 = vrot.lane.b32.xlu0 %v2828_v52, %s3847_s27  ;;  %v2840_v35 = vsel %vm2628_vm5, %v2837_v26, %v2839_v9  ;;  %v9191_v9 = vld [vmem:[#allocation22_spill] sm:$0xff] }
 0x372   : > { %v7199_v42 = vpop.permute.xlu1 %2506  ;;  %v7201_v1 = vpop.permute.xlu0 %2504 }
 0x374   : > { %2851 = vrot.lane.b32.xlu1 %v2835_v6, %s3847_s27  ;;  %2849 = vrot.lane.b32.xlu0 %v2833_v22, %s3847_s27 }
 0x376   : > { %v7207_v52 = vpop.permute.xlu1 %2510  ;;  %v7209_v43 = vpop.permute.xlu0 %2508 }
 0x378   : > { %2855 = vrot.lane.b32.xlu1 %v2840_v35, %s3847_s27  ;;  %2853 = vrot.lane.b32.xlu0 %v2838_v3, %s3847_s27  ;;  %v2632_v35 = vrot.slane %v9192_v41, 6  ;;  %v9193_v3 = vld [vmem:[#allocation23_spill] sm:$0xff] }
 0x37a   : > { %v7213_v51 = vpop.permute.xlu1 %2514  ;;  %v7215_v5 = vpop.permute.xlu0 %2512 }
 0x37c   : > { %2875 = vrot.lane.b32.xlu1 %v7117_v0, %s3848_s28  ;;  %2873 = vrot.lane.b32.xlu0 %v7120_v32, %s3848_s28 }
 0x37e   : > { %v7221_v47 = vpop.permute.xlu1 %2534  ;;  %v7223_v6 = vpop.permute.xlu0 %2532 }
 0x380   : > { %2879 = vrot.lane.b32.xlu1 %v7136_v34, %s3848_s28  ;;  %2877 = vrot.lane.b32.xlu0 %v7139_v10, %s3848_s28 }
 0x382   : > { %v7229_v22 = vpop.permute.xlu1 %2538  ;;  %v7231_v44 = vpop.permute.xlu0 %2536 }
 0x384   : > { %2883 = vrot.lane.b32.xlu1 %v2783_v21, %s3848_s28  ;;  %2881 = vrot.lane.b32.xlu0 %v2781_v8, %s3848_s28  ;;  %v2337_v8 = vadd.f32 %v6958_v53, %v6905_v45  ;;  %v9194_v45 = vld [vmem:[#allocation24_spill] sm:$0xff]  ;;  %v9195_v53 = vld [vmem:[#allocation215_spill] sm:$0xff] }
 0x386   : > { %v7235_v0 = vpop.permute.xlu1 %2542  ;;  %v7237_v32 = vpop.permute.xlu0 %2540 }
 0x388   : > { %2887 = vrot.lane.b32.xlu1 %v2788_v61, %s3848_s28  ;;  %2885 = vrot.lane.b32.xlu0 %v2786_v63, %s3848_s28  ;;  %v2336_v61 = vadd.f32 %v6960_v4, %v6908_v40  ;;  %v2637_v4 = vrot.slane %v9195_v53, 6 }
 0x38a   : > { %v7241_v34 = vpop.permute.xlu1 %2546  ;;  %v7243_v26 = vpop.permute.xlu0 %2544 }
 0x38b   : > { %9190 = vst [vmem:[#allocation178_spill] sm:$0xff] %v7243_v26  ;;  %v2629_v26 = vrot.slane %v9193_v3, 6  ;;  %v2338_v3 = vadd.f32 %v6967_v37, %v6930_v25  ;;  %v2341_v37 = vadd.f32 %v6974_v19, %v6944_v48 }
 0x38c   : > { %2907 = vrot.lane.b32.xlu1 %v7049_v12, %s3849_s30  ;;  %2905 = vrot.lane.b32.xlu0 %v7052_v50, %s3849_s30  ;;  %v2630_v50 = vrot.slane %v9191_v9, 6  ;;  %v2339_v9 = vadd.f32 %v6965_v49, %v6928_v2 }
 0x38d   : > { %v2390_v2 = vadd.f32 %v7025_v62, %v2338_v3 }
 0x38e   : > { %v2567_v10 = vpop.permute.xlu1 %2566  ;;  %v2565_v21 = vpop.permute.xlu0 %2564  ;;  %v2391_v40 = vadd.f32 %v7023_v59, %v2339_v9  ;;  %v9196_v59 = vrot.slane %v9194_v45, 6  ;;  %v9204_v9 = vld [vmem:[#allocation44_spill] sm:$0xff] }
 0x38f   : > { %v2442_v48 = vadd.f32 %v7093_v36, %v2390_v2  ;;  %v9206_v2 = vld [vmem:[#allocation156_spill] sm:$0xff] }
 0x390   : > { %2911 = vrot.lane.b32.xlu1 %v7068_v18, %s3849_s30  ;;  %2909 = vrot.lane.b32.xlu0 %v7071_v58, %s3849_s30  ;;  %v2389_v18 = vadd.f32 %v7006_v30, %v2337_v8  ;;  %v2388_v58 = vadd.f32 %v7008_v7, %v2336_v61  ;;  %v7286_v61 = vsel %vm2628_vm5, %v2629_v26, %v2630_v50 }
 0x391   : > { %v7303_v62 = vsel %vm2628_vm5, %v9196_v59, %v2637_v4  ;;  %v9203_v4 = vld [vmem:[#allocation191_spill] sm:$0xff] }
 0x392   : > { %v7257_v63 = vpop.permute.xlu1 %2570  ;;  %v7259_v12 = vpop.permute.xlu0 %2568  ;;  %v2441_v30 = vadd.f32 %v7074_v33, %v2389_v18  ;;  %v2440_v7 = vadd.f32 %v7076_v39, %v2388_v58  ;;  %v2340_v33 = vadd.f32 %v6976_v11, %v6946_v57  ;;  %v2343_v11 = vadd.f32 %v6989_v56, %v6954_v29  ;;  %v9198_v56 = vld [vmem:[#allocation192_spill] sm:$0xff]  ;;  %v9201_v18 = vld [vmem:[#allocation143_spill] sm:$0xff]  ;;  %v9202_v58 = vld [vmem:[#allocation26_spill] sm:$0xff] }
 0x394   : > { %2915 = vrot.lane.b32.xlu1 %v7083_v60, %s3849_s30  ;;  %2913 = vrot.lane.b32.xlu0 %v7086_v15, %s3849_s30  ;;  %v7283_v15 = vsel %vm2628_vm5, %v2630_v50, %v2632_v35  ;;  %v2493_v25 = vadd.f32 %v7142_v24, %v2441_v30  ;;  %v2492_v49 = vadd.f32 %v7144_v27, %v2440_v7  ;;  %v9197_v24 = vld [vmem:[#allocation25_spill] sm:$0xff]  ;;  %v9205_v30 = vld [vmem:[#allocation155_spill] sm:$0xff] }
 0x395   : > { %v2634_v39 = vrot.slane %v9197_v24, 6  ;;  %v2443_v27 = vadd.f32 %v7091_v28, %v2391_v40  ;;  %v2392_v26 = vadd.f32 %v7042_v13, %v2340_v33  ;;  %v2494_v28 = vadd.f32 %v7157_v17, %v2442_v48  ;;  %v9200_v13 = vld [vmem:[#allocation147_spill] sm:$0xff] }
 0x396   : > { %v7278_v8 = vpop.permute.xlu1 %2574  ;;  %v7280_v60 = vpop.permute.xlu0 %2572  ;;  %v2525_v19 = vadd.f32 %v7188_v46, %v2493_v25  ;;  %v2524_v57 = vadd.f32 %v7190_v31, %v2492_v49  ;;  %v2395_v29 = vadd.f32 %v7057_v16, %v2343_v11  ;;  %v9208_v48 = vld [vmem:[#allocation39_spill] sm:$0xff] }
 0x397   : > { %v2495_v36 = vadd.f32 %v7155_v14, %v2443_v27  ;;  %v2640_v14 = vrot.slane %v9202_v58, 6  ;;  %v9207_v27 = vld [vmem:[#allocation150_spill] sm:$0xff]  ;;  %v9215_v58 = vld [vmem:[#allocation141_spill] sm:$0xff] }
 0x398   : > { %2919 = vrot.lane.b32.xlu1 %v7102_v55, %s3849_s30  ;;  %2917 = vrot.lane.b32.xlu0 %v7105_v54, %s3849_s30  ;;  %v2342_v55 = vadd.f32 %v6991_v38, %v6956_v23  ;;  %v2393_v54 = vadd.f32 %v7040_v20, %v2341_v37  ;;  %v2557_v46 = vadd.f32 %v7221_v47, %v2525_v19  ;;  %v9199_v38 = vld [vmem:[#allocation158_spill] sm:$0xff]  ;;  %v9209_v19 = vld [vmem:[#allocation219_spill] sm:$0xff] }
 0x399   : > { %v2556_v31 = vadd.f32 %v7223_v6, %v2524_v57  ;;  %v2444_v20 = vadd.f32 %v9199_v38, %v2392_v26  ;;  %v2527_v17 = vadd.f32 %v7199_v42, %v2495_v36  ;;  %v2526_v47 = vadd.f32 %v7201_v1, %v2494_v28  ;;  %v9210_v57 = vld [vmem:[#allocation162_spill] sm:$0xff]  ;;  %v9212_v26 = vld [vmem:[#allocation177_spill] sm:$0xff] }
 0x39a   : > { %v7316_v50 = vpop.permute.xlu1 %2578  ;;  %v7318_v35 = vpop.permute.xlu0 %2576  ;;  %v2445_v23 = vadd.f32 %v9198_v56, %v2393_v54  ;;  %v2589_v40 = vadd.f32 %v2567_v10, %v2557_v46  ;;  %v2394_v16 = vadd.f32 %v9203_v4, %v2342_v55  ;;  %v2447_v3 = vadd.f32 %v9204_v9, %v2395_v29  ;;  %v9214_v56 = vld [vmem:[#allocation27_spill] sm:$0xff] }
 0x39b   : > { %v2588_v6 = vadd.f32 %v2565_v21, %v2556_v31  ;;  %v2496_v25 = vadd.f32 %v9206_v2, %v2444_v20  ;;  %v2559_v33 = vadd.f32 %v7229_v22, %v2527_v17  ;;  %v2558_v59 = vadd.f32 %v7231_v44, %v2526_v47  ;;  %v9216_v17 = vld [vmem:[#allocation159_spill] sm:$0xff] }
 0x39c   : > { %2939 = vrot.lane.b32.xlu1 %v9200_v13, %s3850_s2  ;;  %2937 = vrot.lane.b32.xlu0 %v9201_v18, %s3850_s2  ;;  %v2497_v7 = vadd.f32 %v9205_v30, %v2445_v23  ;;  %v2446_v1 = vadd.f32 %v9207_v27, %v2394_v16  ;;  %v2642_v11 = vrot.slane %v9210_v57, 6  ;;  %v9213_v31 = vrot.slane %v9194_v45, 6  ;;  %v9218_v16 = vld [vmem:[#allocation149_spill] sm:$0xff] }
 0x39d   : > { %v2528_v21 = vadd.f32 %v7209_v43, %v2496_v25  ;;  %v2591_v22 = vadd.f32 %v7257_v63, %v2559_v33  ;;  %v2590_v44 = vadd.f32 %v7259_v12, %v2558_v59  ;;  %v2639_v63 = vrot.slane %v9214_v56, 6  ;;  %v9229_v56 = vld [vmem:[#allocation58_spill] sm:$0xff] }
 0x39e   : > { %v2599_v49 = vpop.permute.xlu1 %2598  ;;  %v2597_v37 = vpop.permute.xlu0 %2596  ;;  %v2529_v10 = vadd.f32 %v7207_v52, %v2497_v7  ;;  %v9211_v52 = vld [vmem:[#allocation196_spill] sm:$0xff]  ;;  %v2498_v36 = vadd.f32 %v9212_v26, %v2446_v1  ;;  %v2636_v29 = vsel %vm2628_vm5, %v2634_v39, %v9213_v31  ;;  %v2643_v45 = vsel %vm2628_vm5, %v2640_v14, %v2642_v11  ;;  %v9228_v31 = vld [vmem:[#allocation57_spill] sm:$0xff] }
 0x39f   : > { %v2621_v24 = vadd.f32 %v2599_v49, %v2589_v40  ;;  %v2620_v42 = vadd.f32 %v2597_v37, %v2588_v6  ;;  %v2499_v43 = vadd.f32 %v9211_v52, %v2447_v3  ;;  %v2560_v23 = vadd.f32 %v7237_v32, %v2528_v21  ;;  %v9217_v6 = vld [vmem:[#allocation28_spill] sm:$0xff]  ;;  %v9219_v3 = vld [vmem:[#allocation29_spill] sm:$0xff]  ;;  %v9222_v37 = vld [vmem:[#allocation42_spill] sm:$0xff] }
 0x3a0   : > { %2943 = vrot.lane.b32.xlu1 %v9208_v48, %s3850_s2  ;;  %2941 = vrot.lane.b32.xlu0 %v9209_v19, %s3850_s2  ;;  %v2561_v12 = vadd.f32 %v7235_v0, %v2529_v10  ;;  %v2530_v18 = vadd.f32 %v7215_v5, %v2498_v36  ;;  %v2641_v5 = vsel %vm2628_vm5, %v2639_v63, %v2640_v14  ;;  %v2645_v4 = vrot.slane %v9217_v6, 6  ;;  %v9221_v49 = vld [vmem:[#allocation41_spill] sm:$0xff] }
 0x3a1   : > { %v7351_v55 = vadd.f32 %v7283_v15, %v2621_v24  ;;  %v7354_v54 = vadd.f32 %v7286_v61, %v2620_v42  ;;  %v2531_v13 = vadd.f32 %v7213_v51, %v2499_v43  ;;  %v2592_v0 = vadd.f32 %v7280_v60, %v2560_v23  ;;  %v9225_v43 = vld [vmem:[#allocation53_spill] sm:$0xff] }
 0x3a2   : > { %v2603_v28 = vpop.permute.xlu1 %2602  ;;  %v2601_v46 = vpop.permute.xlu0 %2600  ;;  %v2593_v39 = vadd.f32 %v7278_v8, %v2561_v12  ;;  %v2647_v9 = vrot.slane %v9218_v16, 6  ;;  %v2644_v30 = vrot.slane %v9219_v3, 6  ;;  %v9220_v8 = vld [vmem:[#allocation178_spill] sm:$0xff]  ;;  %v3038_v26 = vrot.slane %v9225_v43, 7  ;;  %v9230_v12 = vld [vmem:[#allocation59_spill] sm:$0xff]  ;;  %v9247_v43 = vld [vmem:[#allocation76_spill] sm:$0xff] }
 0x3a3   : > { %v2623_v38 = vadd.f32 %v2603_v28, %v2591_v22  ;;  %v2622_v20 = vadd.f32 %v2601_v46, %v2590_v44  ;;  %v2563_v7 = vadd.f32 %v7241_v34, %v2531_v13  ;;  %v2562_v2 = vadd.f32 %v9220_v8, %v2530_v18  ;;  %v9224_v44 = vld [vmem:[#allocation52_spill] sm:$0xff]  ;;  %v9231_v13 = vld [vmem:[#allocation61_spill] sm:$0xff]  ;;  %v9240_v8 = vld [vmem:[#allocation67_spill] sm:$0xff] }
 0x3a4   : > { %2947 = vrot.lane.b32.xlu1 %v9215_v58, %s3850_s2  ;;  %2945 = vrot.lane.b32.xlu0 %v9216_v17, %s3850_s2  ;;  %v2648_v27 = vsel %vm2628_vm5, %v2645_v4, %v2647_v9  ;;  %v2646_v1 = vsel %vm2628_vm5, %v2644_v30, %v2645_v4  ;;  %v3041_v52 = vrot.slane %v9224_v44, 7  ;;  %v3046_v63 = vrot.slane %v9229_v56, 7  ;;  %v9232_v58 = vld [vmem:[#allocation62_spill] sm:$0xff]  ;;  %v9238_v9 = vld [vmem:[#allocation65_spill] sm:$0xff]  ;;  %v9246_v44 = vld [vmem:[#allocation75_spill] sm:$0xff] }
 0x3a5   : > { %v7374_v32 = vadd.f32 %v7303_v62, %v2623_v38  ;;  %v7376_v47 = vadd.f32 %v2636_v29, %v2622_v20  ;;  %v2595_v14 = vadd.f32 %v7316_v50, %v2563_v7  ;;  %v2594_v33 = vadd.f32 %v7318_v35, %v2562_v2  ;;  %v9239_v30 = vld [vmem:[#allocation66_spill] sm:$0xff] }
 0x3a6   : > { %v2607_v51 = vpop.permute.xlu1 %2606  ;;  %v2605_v40 = vpop.permute.xlu0 %2604  ;;  %v3043_v23 = vrot.slane %v9230_v12, 7  ;;  %v3049_v18 = vrot.slane %v9231_v13, 7  ;;  %v3051_v17 = vrot.slane %v9232_v58, 7  ;;  %v3054_v3 = vrot.slane %v9238_v9, 7  ;;  %v9250_v12 = vld [vmem:[#allocation81_spill] sm:$0xff]  ;;  %v9251_v13 = vld [vmem:[#allocation82_spill] sm:$0xff] }
 0x3a7   : > { %v2625_v60 = vadd.f32 %v2607_v51, %v2593_v39  ;;  %v2624_v25 = vadd.f32 %v2605_v40, %v2592_v0  ;;  %v9235_v0 = vld [vmem:[#allocation63_spill] sm:$0xff]  ;;  %v3056_v7 = vrot.slane %v9239_v30, 7  ;;  %v3053_v2 = vrot.slane %v9240_v8, 7  ;;  %v9253_v8 = vld [vmem:[#allocation85_spill] sm:$0xff] }
 0x3a8   : > { %2951 = vrot.lane.b32.xlu1 %v9221_v49, %s3850_s2  ;;  %2949 = vrot.lane.b32.xlu0 %v9222_v37, %s3850_s2  ;;  %v3048_v51 = vrot.slane %v9235_v0, 7  ;;  %v7461_v6 = vsel %vm3001_vm6, %v3049_v18, %v3051_v17  ;;  %v9241_v49 = vld [vmem:[#allocation70_spill] sm:$0xff]  ;;  %v9252_v0 = vld [vmem:[#allocation83_spill] sm:$0xff] }
 0x3a9   : > { %v7390_v59 = vadd.f32 %v2643_v45, %v2625_v60  ;;  %v7392_v24 = vadd.f32 %v2641_v5, %v2624_v25  ;;  %9236 = vst [vmem:[#allocation209_spill] sm:$0xff] %v7461_v6  ;;  %v3091_v37 = vrot.slane %v9241_v49, 7  ;;  %v9254_v49 = vld [vmem:[#allocation86_spill] sm:$0xff] }
 0x3aa   : > { %v2611_v42 = vpop.permute.xlu1 %2610  ;;  %v2609_v34 = vpop.permute.xlu0 %2608  ;;  %v7464_v4 = vsel %vm3001_vm6, %v3048_v51, %v3049_v18  ;;  %v3103_v18 = vrot.slane %v9251_v13, 7  ;;  %v3100_v51 = vrot.slane %v9252_v0, 7 }
 0x3ab   : > { %v2627_v10 = vadd.f32 %v2611_v42, %v2595_v14  ;;  %v2626_v21 = vadd.f32 %v2609_v34, %v2594_v33  ;;  %9237 = vst [vmem:[#allocation144_spill] sm:$0xff] %v7464_v4  ;;  %v9242_v14 = vld [vmem:[#allocation71_spill] sm:$0xff]  ;;  %v7480_v42 = vsel %vm3001_vm6, %v3054_v3, %v3056_v7  ;;  %v7483_v34 = vsel %vm3001_vm6, %v3053_v2, %v3054_v3 }
 0x3ac   : > { %2971 = vrot.lane.b32.xlu1 %v7283_v15, %s3851_s3  ;;  %2969 = vrot.lane.b32.xlu0 %v7286_v61, %s3851_s3  ;;  %v9223_v15 = vld [vmem:[#allocation51_spill] sm:$0xff]  ;;  %v3093_v33 = vrot.slane %v9242_v14, 7  ;;  %9243 = vst [vmem:[#allocation145_spill] sm:$0xff] %v7480_v42  ;;  %9244 = vst [vmem:[#allocation203_spill] sm:$0xff] %v7483_v34  ;;  %v3106_v2 = vrot.slane %v9253_v8, 7  ;;  %v9261_v8 = vld [vmem:[#allocation93_spill] sm:$0xff] }
 0x3ad   : > { %v7400_v50 = vadd.f32 %v2648_v27, %v2627_v10  ;;  %v7402_v35 = vadd.f32 %v2646_v1, %v2626_v21  ;;  %v3039_v61 = vrot.slane %v9223_v15, 7  ;;  %v9255_v14 = vld [vmem:[#allocation87_spill] sm:$0xff] }
 0x3ae   : > { %v7404_v48 = vpop.permute.xlu1 %2687  ;;  %v7406_v19 = vpop.permute.xlu0 %2685  ;;  %v7495_v15 = vsel %vm3001_vm6, %v3091_v37, %v3093_v33  ;;  %v3105_v33 = vrot.slane %v9255_v14, 7  ;;  %v9263_v14 = vld [vmem:[#allocation95_spill] sm:$0xff] }
 0x3af   : > { %v7427_v28 = vsel %vm3001_vm6, %v3039_v61, %v3041_v52  ;;  %v7430_v46 = vsel %vm3001_vm6, %v3038_v26, %v3039_v61  ;;  %v3096_v52 = vrot.slane %v9246_v44, 7  ;;  %v3098_v26 = vrot.slane %v9247_v43, 7  ;;  %v9256_v44 = vld [vmem:[#allocation89_spill] sm:$0xff]  ;;  %v9257_v43 = vld [vmem:[#allocation90_spill] sm:$0xff] }
 0x3b0   : > { %2975 = vrot.lane.b32.xlu1 %v7303_v62, %s3851_s3  ;;  %2973 = vrot.lane.b32.xlu0 %v2636_v29, %s3851_s3  ;;  %9226 = vst [vmem:[#allocation140_spill] sm:$0xff] %v7427_v28  ;;  %9227 = vst [vmem:[#allocation184_spill] sm:$0xff] %v7430_v46  ;;  %v3044_v29 = vrot.slane %v9228_v31, 7  ;;  %v9248_v31 = vld [vmem:[#allocation79_spill] sm:$0xff] }
 0x3b1   : > { %v7514_v58 = vsel %vm3001_vm6, %v3096_v52, %v3098_v26  ;;  %v3145_v26 = vrot.slane %v9257_v43, 7 }
 0x3b2   : > { %v7411_v11 = vpop.permute.xlu1 %2691  ;;  %v7413_v22 = vpop.permute.xlu0 %2689  ;;  %v7449_v39 = vsel %vm3001_vm6, %v3043_v23, %v3044_v29  ;;  %v3101_v23 = vrot.slane %v9250_v12, 7  ;;  %v9258_v12 = vld [vmem:[#allocation91_spill] sm:$0xff] }
 0x3b3   : > { %9234 = vst [vmem:[#allocation213_spill] sm:$0xff] %v7449_v39 }
 0x3b4   : > { %2979 = vrot.lane.b32.xlu1 %v2643_v45, %s3851_s3  ;;  %2977 = vrot.lane.b32.xlu0 %v2641_v5, %s3851_s3  ;;  %v7446_v45 = vsel %vm3001_vm6, %v3044_v29, %v3046_v63  ;;  %v3095_v29 = vrot.slane %v9248_v31, 7  ;;  %v7529_v30 = vsel %vm3001_vm6, %v3101_v23, %v3103_v18  ;;  %v7532_v7 = vsel %vm3001_vm6, %v3100_v51, %v3101_v23 }
 0x3b5   : > { %9233 = vst [vmem:[#allocation212_spill] sm:$0xff] %v7446_v45  ;;  %v3142_v23 = vrot.slane %v9258_v12, 7 }
 0x3b6   : > { %v7420_v36 = vpop.permute.xlu1 %2695  ;;  %v7422_v62 = vpop.permute.xlu0 %2693  ;;  %v7517_v17 = vsel %vm3001_vm6, %v3095_v29, %v3096_v52  ;;  %v3143_v52 = vrot.slane %v9256_v44, 7  ;;  %v7551_v29 = vsel %vm3001_vm6, %v3105_v33, %v3106_v2  ;;  %v3147_v33 = vrot.slane %v9263_v14, 7  ;;  %v9268_v14 = vld [vmem:[#allocation99_spill] sm:$0xff] }
 0x3b7   : > { %v3152_v57 = vrot.slane %v9268_v14, 7 }
 0x3b8   : > { %2983 = vrot.lane.b32.xlu1 %v2648_v27, %s3851_s3  ;;  %2981 = vrot.lane.b32.xlu0 %v2646_v1, %s3851_s3  ;;  %v9245_v27 = vld [vmem:[#allocation73_spill] sm:$0xff]  ;;  %v7563_v0 = vsel %vm3001_vm6, %v3143_v52, %v3145_v26  ;;  %v7566_v51 = vsel %vm3001_vm6, %v3142_v23, %v3143_v52  ;;  %v9267_v52 = vld [vmem:[#allocation98_spill] sm:$0xff] }
 0x3b9   : > { %v3090_v1 = vrot.slane %v9245_v27, 7  ;;  %v9266_v26 = vld [vmem:[#allocation97_spill] sm:$0xff]  ;;  %v3155_v23 = vrot.slane %v9267_v52, 7  ;;  %v9269_v52 = vld [vmem:[#allocation102_spill] sm:$0xff] }
 0x3ba   : > { %v7435_v38 = vpop.permute.xlu1 %2699  ;;  %v7437_v20 = vpop.permute.xlu0 %2697  ;;  %v3153_v12 = vrot.slane %v9266_v26, 7  ;;  %v3158_v53 = vrot.slane %v9269_v52, 7  ;;  %v9274_v52 = vld [vmem:[#allocation108_spill] sm:$0xff] }
 0x3bb   : > { %v7498_v61 = vsel %vm3001_vm6, %v3090_v1, %v3091_v37  ;;  %v3108_v37 = vrot.slane %v9254_v49, 7  ;;  %v9262_v49 = vld [vmem:[#allocation94_spill] sm:$0xff] }
 0x3bc   : > { %3060 = vrot.lane.b32.xlu1 %v7427_v28, %s3844_s16  ;;  %3058 = vrot.lane.b32.xlu0 %v7430_v46, %s3844_s16  ;;  %v3156_v26 = vsel %vm3001_vm6, %v3153_v12, %v3155_v23  ;;  %v9278_v46 = vld [vmem:[#allocation111_spill] sm:$0xff]  ;;  %v9279_v28 = vld [vmem:[#allocation112_spill] sm:$0xff] }
 0x3bd   : > { %v7548_v31 = vsel %vm3001_vm6, %v3106_v2, %v3108_v37  ;;  %v3148_v2 = vrot.slane %v9261_v8, 7  ;;  %v3150_v37 = vrot.slane %v9262_v49, 7 }
 0x3be   : > { %v7452_v40 = vpop.permute.xlu1 %2739  ;;  %v7454_v5 = vpop.permute.xlu0 %2737 }
 0x3bf   : > { %v7582_v8 = vsel %vm3001_vm6, %v3148_v2, %v3150_v37  ;;  %v7585_v49 = vsel %vm3001_vm6, %v3147_v33, %v3148_v2  ;;  %v3154_v37 = vsel %vm3001_vm6, %v3152_v57, %v3153_v12  ;;  %v9270_v2 = vld [vmem:[#allocation103_spill] sm:$0xff] }
 0x3c0   : > { %3064 = vrot.lane.b32.xlu1 %v7446_v45, %s3844_s16  ;;  %3062 = vrot.lane.b32.xlu0 %v7449_v39, %s3844_s16  ;;  %v3160_v33 = vrot.slane %v9270_v2, 7  ;;  %v9273_v45 = vld [vmem:[#allocation107_spill] sm:$0xff]  ;;  %v3194_v2 = vrot.slane %v9274_v52, 7 }
 0x3c1   : > { %v3197_v23 = vrot.slane %v9273_v45, 7 }
 0x3c2   : > { %v7469_v60 = vpop.permute.xlu1 %2743  ;;  %v7471_v25 = vpop.permute.xlu0 %2741  ;;  %v3161_v57 = vsel %vm3001_vm6, %v3158_v53, %v3160_v33  ;;  %v3202_v33 = vrot.slane %v9278_v46, 7 }
 0x3c4   : > { %3068 = vrot.lane.b32.xlu1 %v7461_v6, %s3844_s16  ;;  %3066 = vrot.lane.b32.xlu0 %v7464_v4, %s3844_s16  ;;  %v9272_v6 = vld [vmem:[#allocation106_spill] sm:$0xff] }
 0x3c5   : > { %v3195_v39 = vrot.slane %v9272_v6, 7 }
 0x3c6   : > { %v7486_v10 = vpop.permute.xlu1 %2747  ;;  %v7488_v21 = vpop.permute.xlu0 %2745 }
 0x3c7   : > { %v3196_v6 = vsel %vm3001_vm6, %v3194_v2, %v3195_v39  ;;  %v9284_v2 = vld [vmem:[#allocation116_spill] sm:$0xff] }
 0x3c8   : > { %3072 = vrot.lane.b32.xlu1 %v7480_v42, %s3844_s16  ;;  %3070 = vrot.lane.b32.xlu0 %v7483_v34, %s3844_s16  ;;  %v9271_v34 = vld [vmem:[#allocation104_spill] sm:$0xff]  ;;  %v3204_v46 = vrot.slane %v9284_v2, 7 }
 0x3c9   : > { %v3157_v14 = vrot.slane %v9271_v34, 7 }
 0x3ca   : > { %v7503_v56 = vpop.permute.xlu1 %2751  ;;  %v7505_v63 = vpop.permute.xlu0 %2749 }
 0x3cb   : > { %9249 = vst [vmem:[#allocation204_spill] sm:$0xff] %v7505_v63  ;;  %v3159_v12 = vsel %vm3001_vm6, %v3157_v14, %v3158_v53  ;;  %v9277_v63 = vld [vmem:[#allocation110_spill] sm:$0xff]  ;;  %v3199_v53 = vrot.slane %v9279_v28, 7 }
 0x3cc   : > { %3112 = vrot.lane.b32.xlu1 %v7495_v15, %s3845_s24  ;;  %3110 = vrot.lane.b32.xlu0 %v7498_v61, %s3845_s24  ;;  %v3200_v45 = vrot.slane %v9277_v63, 7 }
 0x3ce   : > { %v7520_v9 = vpop.permute.xlu1 %2791  ;;  %v7522_v3 = vpop.permute.xlu0 %2789  ;;  %v3201_v63 = vsel %vm3001_vm6, %v3199_v53, %v3200_v45 }
 0x3d0   : > { %3116 = vrot.lane.b32.xlu1 %v7514_v58, %s3845_s24  ;;  %3114 = vrot.lane.b32.xlu0 %v7517_v17, %s3845_s24 }
 0x3d2   : > { %v7537_v27 = vpop.permute.xlu1 %2795  ;;  %v7539_v1 = vpop.permute.xlu0 %2793 }
 0x3d4   : > { %3120 = vrot.lane.b32.xlu1 %v7529_v30, %s3845_s24  ;;  %3118 = vrot.lane.b32.xlu0 %v7532_v7, %s3845_s24 }
 0x3d6   : > { %v7554_v13 = vpop.permute.xlu1 %2799  ;;  %v7556_v18 = vpop.permute.xlu0 %2797 }
 0x3d7   : > { %9259 = vst [vmem:[#allocation210_spill] sm:$0xff] %v7554_v13  ;;  %9260 = vst [vmem:[#allocation148_spill] sm:$0xff] %v7556_v18  ;;  %v9283_v18 = vld [vmem:[#allocation115_spill] sm:$0xff] }
 0x3d8   : > { %3124 = vrot.lane.b32.xlu1 %v7548_v31, %s3845_s24  ;;  %3122 = vrot.lane.b32.xlu0 %v7551_v29, %s3845_s24 }
 0x3da   : > { %v7571_v44 = vpop.permute.xlu1 %2803  ;;  %v7573_v43 = vpop.permute.xlu0 %2801 }
 0x3db   : > { %9264 = vst [vmem:[#allocation153_spill] sm:$0xff] %v7571_v44  ;;  %9265 = vst [vmem:[#allocation154_spill] sm:$0xff] %v7573_v43  ;;  %v3198_v44 = vsel %vm3001_vm6, %v3195_v39, %v3197_v23  ;;  %v3207_v23 = vrot.slane %v9283_v18, 7  ;;  %v3203_v39 = vsel %vm3001_vm6, %v3200_v45, %v3202_v33 }
 0x3dc   : > { %3164 = vrot.lane.b32.xlu1 %v7563_v0, %s3846_s25  ;;  %3162 = vrot.lane.b32.xlu0 %v7566_v51, %s3846_s25 }
 0x3de   : > { %v7588_v16 = vpop.permute.xlu1 %2843  ;;  %v7590_v41 = vpop.permute.xlu0 %2841 }
 0x3e0   : > { %3168 = vrot.lane.b32.xlu1 %v7582_v8, %s3846_s25  ;;  %3166 = vrot.lane.b32.xlu0 %v7585_v49, %s3846_s25 }
 0x3e2   : > { %v7601_v42 = vpop.permute.xlu1 %2847  ;;  %v7603_v4 = vpop.permute.xlu0 %2845 }
 0x3e4   : > { %3172 = vrot.lane.b32.xlu1 %v3156_v26, %s3846_s25  ;;  %3170 = vrot.lane.b32.xlu0 %v3154_v37, %s3846_s25 }
 0x3e6   : > { %v7612_v43 = vpop.permute.xlu1 %2851  ;;  %v7614_v34 = vpop.permute.xlu0 %2849 }
 0x3e7   : > { %9275 = vst [vmem:[#allocation163_spill] sm:$0xff] %v7612_v43  ;;  %9276 = vst [vmem:[#allocation166_spill] sm:$0xff] %v7614_v34  ;;  %v9282_v34 = vld [vmem:[#allocation114_spill] sm:$0xff] }
 0x3e8   : > { %3176 = vrot.lane.b32.xlu1 %v3161_v57, %s3846_s25  ;;  %3174 = vrot.lane.b32.xlu0 %v3159_v12, %s3846_s25  ;;  %v3205_v43 = vrot.slane %v9282_v34, 7 }
 0x3ea   : > { %v7623_v14 = vpop.permute.xlu1 %2855  ;;  %v7625_v52 = vpop.permute.xlu0 %2853  ;;  %v3206_v34 = vsel %vm3001_vm6, %v3204_v46, %v3205_v43 }
 0x3eb   : > { %9280 = vst [vmem:[#allocation172_spill] sm:$0xff] %v7623_v14  ;;  %9281 = vst [vmem:[#allocation179_spill] sm:$0xff] %v7625_v52  ;;  %v9286_v52 = vld [vmem:[#allocation119_spill] sm:$0xff]  ;;  %v9287_v14 = vld [vmem:[#allocation120_spill] sm:$0xff] }
 0x3ec   : > { %3216 = vrot.lane.b32.xlu1 %v3198_v44, %s3847_s27  ;;  %3214 = vrot.lane.b32.xlu0 %v3196_v6, %s3847_s27  ;;  %v3208_v44 = vsel %vm3001_vm6, %v3205_v43, %v3207_v23  ;;  %v9285_v6 = vld [vmem:[#allocation118_spill] sm:$0xff]  ;;  %v3212_v33 = vrot.slane %v9286_v52, 7  ;;  %v3209_v45 = vrot.slane %v9287_v14, 7 }
 0x3ed   : > { %v3210_v18 = vrot.slane %v9285_v6, 7 }
 0x3ee   : > { %v7634_v13 = vpop.permute.xlu1 %2875  ;;  %v7636_v28 = vpop.permute.xlu0 %2873 }
 0x3ef   : > { %v3211_v23 = vsel %vm3001_vm6, %v3209_v45, %v3210_v18  ;;  %v9290_v45 = vld [vmem:[#allocation48_spill] sm:$0xff] }
 0x3f0   : > { %3220 = vrot.lane.b32.xlu1 %v3203_v39, %s3847_s27  ;;  %3218 = vrot.lane.b32.xlu0 %v3201_v63, %s3847_s27  ;;  %v3213_v39 = vsel %vm3001_vm6, %v3210_v18, %v3212_v33  ;;  %v9289_v33 = vld [vmem:[#allocation14_spill] sm:$0xff] }
 0x3f2   : > { %v7645_v53 = vpop.permute.xlu1 %2879  ;;  %v7647_v2 = vpop.permute.xlu0 %2877 }
 0x3f4   : > { %3224 = vrot.lane.b32.xlu1 %v3208_v44, %s3847_s27  ;;  %3222 = vrot.lane.b32.xlu0 %v3206_v34, %s3847_s27 }
 0x3f6   : > { %v7653_v63 = vpop.permute.xlu1 %2883  ;;  %v7655_v43 = vpop.permute.xlu0 %2881 }
 0x3f8   : > { %3228 = vrot.lane.b32.xlu1 %v3213_v39, %s3847_s27  ;;  %3226 = vrot.lane.b32.xlu0 %v3211_v23, %s3847_s27  ;;  %v3005_v39 = vrot.slane %v9290_v45, 7  ;;  %v9291_v23 = vld [vmem:[#allocation11_spill] sm:$0xff] }
 0x3fa   : > { %v7659_v14 = vpop.permute.xlu1 %2887  ;;  %v7661_v52 = vpop.permute.xlu0 %2885 }
 0x3fc   : > { %3248 = vrot.lane.b32.xlu1 %v7563_v0, %s3848_s28  ;;  %3246 = vrot.lane.b32.xlu0 %v7566_v51, %s3848_s28 }
 0x3fe   : > { %v7667_v46 = vpop.permute.xlu1 %2907  ;;  %v7669_v44 = vpop.permute.xlu0 %2905 }
 0x400   : > { %3252 = vrot.lane.b32.xlu1 %v7582_v8, %s3848_s28  ;;  %3250 = vrot.lane.b32.xlu0 %v7585_v49, %s3848_s28 }
 0x402   : > { %v7675_v34 = vpop.permute.xlu1 %2911  ;;  %v7677_v6 = vpop.permute.xlu0 %2909 }
 0x404   : > { %3256 = vrot.lane.b32.xlu1 %v3156_v26, %s3848_s28  ;;  %3254 = vrot.lane.b32.xlu0 %v3154_v37, %s3848_s28  ;;  %v2710_v37 = vadd.f32 %v7404_v48, %v7351_v55  ;;  %v9292_v55 = vld [vmem:[#allocation13_spill] sm:$0xff]  ;;  %v9293_v48 = vld [vmem:[#allocation72_spill] sm:$0xff] }
 0x406   : > { %v7681_v0 = vpop.permute.xlu1 %2915  ;;  %v7683_v51 = vpop.permute.xlu0 %2913 }
 0x408   : > { %3260 = vrot.lane.b32.xlu1 %v3161_v57, %s3848_s28  ;;  %3258 = vrot.lane.b32.xlu0 %v3159_v12, %s3848_s28  ;;  %v2709_v57 = vadd.f32 %v7406_v19, %v7354_v54  ;;  %v3010_v19 = vrot.slane %v9293_v48, 7 }
 0x40a   : > { %v7687_v8 = vpop.permute.xlu1 %2919  ;;  %v7689_v18 = vpop.permute.xlu0 %2917 }
 0x40b   : > { %9288 = vst [vmem:[#allocation182_spill] sm:$0xff] %v7689_v18  ;;  %v3002_v18 = vrot.slane %v9291_v23, 7  ;;  %v2711_v23 = vadd.f32 %v7413_v22, %v7376_v47  ;;  %v2714_v22 = vadd.f32 %v7420_v36, %v7390_v59 }
 0x40c   : > { %3280 = vrot.lane.b32.xlu1 %v7495_v15, %s3849_s30  ;;  %3278 = vrot.lane.b32.xlu0 %v7498_v61, %s3849_s30  ;;  %v3003_v61 = vrot.slane %v9289_v33, 7  ;;  %v2712_v33 = vadd.f32 %v7411_v11, %v7374_v32 }
 0x40d   : > { %v2763_v32 = vadd.f32 %v7471_v25, %v2711_v23 }
 0x40e   : > { %v2940_v49 = vpop.permute.xlu1 %2939  ;;  %v2938_v26 = vpop.permute.xlu0 %2937  ;;  %v2764_v54 = vadd.f32 %v7469_v60, %v2712_v33  ;;  %v9294_v60 = vrot.slane %v9292_v55, 7  ;;  %v9302_v33 = vld [vmem:[#allocation153_spill] sm:$0xff] }
 0x40f   : > { %v2815_v59 = vadd.f32 %v7539_v1, %v2763_v32  ;;  %v9304_v32 = vld [vmem:[#allocation166_spill] sm:$0xff] }
 0x410   : > { %3284 = vrot.lane.b32.xlu1 %v7514_v58, %s3849_s30  ;;  %3282 = vrot.lane.b32.xlu0 %v7517_v17, %s3849_s30  ;;  %v2762_v58 = vadd.f32 %v7452_v40, %v2710_v37  ;;  %v2761_v17 = vadd.f32 %v7454_v5, %v2709_v57  ;;  %v7732_v57 = vsel %vm3001_vm6, %v3002_v18, %v3003_v61 }
 0x411   : > { %v7749_v25 = vsel %vm3001_vm6, %v9294_v60, %v3010_v19  ;;  %v2867_v1 = vadd.f32 %v7603_v4, %v2815_v59  ;;  %v9301_v19 = vld [vmem:[#allocation204_spill] sm:$0xff] }
 0x412   : > { %v7703_v12 = vpop.permute.xlu1 %2943  ;;  %v7705_v15 = vpop.permute.xlu0 %2941  ;;  %v2814_v40 = vadd.f32 %v7520_v9, %v2762_v58  ;;  %v2813_v5 = vadd.f32 %v7522_v3, %v2761_v17  ;;  %v2713_v9 = vadd.f32 %v7422_v62, %v7392_v24  ;;  %v2716_v62 = vadd.f32 %v7435_v38, %v7400_v50  ;;  %v9296_v38 = vld [vmem:[#allocation210_spill] sm:$0xff]  ;;  %v9299_v58 = vld [vmem:[#allocation184_spill] sm:$0xff]  ;;  %v9300_v17 = vld [vmem:[#allocation17_spill] sm:$0xff] }
 0x413   : > { %v9306_v59 = vld [vmem:[#allocation212_spill] sm:$0xff] }
 0x414   : > { %3288 = vrot.lane.b32.xlu1 %v7529_v30, %s3849_s30  ;;  %3286 = vrot.lane.b32.xlu0 %v7532_v7, %s3849_s30  ;;  %v7729_v7 = vsel %vm3001_vm6, %v3003_v61, %v3005_v39  ;;  %v2866_v47 = vadd.f32 %v7588_v16, %v2814_v40  ;;  %v2865_v11 = vadd.f32 %v7590_v41, %v2813_v5  ;;  %v9295_v16 = vld [vmem:[#allocation10_spill] sm:$0xff]  ;;  %v9303_v40 = vld [vmem:[#allocation163_spill] sm:$0xff] }
 0x415   : > { %v3007_v3 = vrot.slane %v9295_v16, 7  ;;  %v2816_v41 = vadd.f32 %v7537_v27, %v2764_v54  ;;  %v2765_v18 = vadd.f32 %v7488_v21, %v2713_v9  ;;  %v2768_v50 = vadd.f32 %v7503_v56, %v2716_v62  ;;  %v9298_v21 = vld [vmem:[#allocation140_spill] sm:$0xff] }
 0x416   : > { %v7724_v37 = vpop.permute.xlu1 %2947  ;;  %v7726_v30 = vpop.permute.xlu0 %2945  ;;  %v2898_v36 = vadd.f32 %v7634_v13, %v2866_v47  ;;  %v2897_v24 = vadd.f32 %v7636_v28, %v2865_v11 }
 0x417   : > { %v2868_v27 = vadd.f32 %v7601_v42, %v2816_v41  ;;  %v3013_v42 = vrot.slane %v9300_v17, 7  ;;  %v2820_v23 = vadd.f32 %v9302_v33, %v2768_v50  ;;  %v9305_v41 = vld [vmem:[#allocation154_spill] sm:$0xff]  ;;  %v9313_v17 = vld [vmem:[#allocation209_spill] sm:$0xff] }
 0x418   : > { %3292 = vrot.lane.b32.xlu1 %v7548_v31, %s3849_s30  ;;  %3290 = vrot.lane.b32.xlu0 %v7551_v29, %s3849_s30  ;;  %v2715_v31 = vadd.f32 %v7437_v20, %v7402_v35  ;;  %v2766_v29 = vadd.f32 %v7486_v10, %v2714_v22  ;;  %v2930_v13 = vadd.f32 %v7667_v46, %v2898_v36  ;;  %v9297_v20 = vld [vmem:[#allocation148_spill] sm:$0xff]  ;;  %v9307_v36 = vld [vmem:[#allocation213_spill] sm:$0xff] }
 0x419   : > { %v2929_v28 = vadd.f32 %v7669_v44, %v2897_v24  ;;  %v2817_v10 = vadd.f32 %v9297_v20, %v2765_v18  ;;  %v2900_v4 = vadd.f32 %v7645_v53, %v2868_v27  ;;  %v2899_v46 = vadd.f32 %v7647_v2, %v2867_v1  ;;  %v9308_v24 = vld [vmem:[#allocation78_spill] sm:$0xff]  ;;  %v9309_v18 = vld [vmem:[#allocation172_spill] sm:$0xff]  ;;  %v9310_v27 = vld [vmem:[#allocation179_spill] sm:$0xff] }
 0x41a   : > { %v7762_v61 = vpop.permute.xlu1 %2951  ;;  %v7764_v39 = vpop.permute.xlu0 %2949  ;;  %v2818_v35 = vadd.f32 %v9296_v38, %v2766_v29  ;;  %v2962_v54 = vadd.f32 %v2940_v49, %v2930_v13  ;;  %v2767_v56 = vadd.f32 %v9301_v19, %v2715_v31  ;;  %v3015_v62 = vrot.slane %v9308_v24, 7  ;;  %v9312_v38 = vld [vmem:[#allocation18_spill] sm:$0xff] }
 0x41b   : > { %v2961_v44 = vadd.f32 %v2938_v26, %v2929_v28  ;;  %v2869_v47 = vadd.f32 %v9304_v32, %v2817_v10  ;;  %v2932_v9 = vadd.f32 %v7675_v34, %v2900_v4  ;;  %v2931_v60 = vadd.f32 %v7677_v6, %v2899_v46  ;;  %v9314_v4 = vld [vmem:[#allocation144_spill] sm:$0xff]  ;;  %v9318_v32 = vld [vmem:[#allocation182_spill] sm:$0xff] }
 0x41c   : > { %3312 = vrot.lane.b32.xlu1 %v9298_v21, %s3850_s2  ;;  %3310 = vrot.lane.b32.xlu0 %v9299_v58, %s3850_s2  ;;  %v2870_v5 = vadd.f32 %v9303_v40, %v2818_v35  ;;  %v2819_v2 = vadd.f32 %v9305_v41, %v2767_v56  ;;  %v9311_v28 = vrot.slane %v9292_v55, 7  ;;  %v3012_v35 = vrot.slane %v9312_v38, 7  ;;  %v9316_v56 = vld [vmem:[#allocation135_spill] sm:$0xff] }
 0x41d   : > { %v2901_v26 = vadd.f32 %v7655_v43, %v2869_v47  ;;  %v2964_v34 = vadd.f32 %v7703_v12, %v2932_v9  ;;  %v2963_v6 = vadd.f32 %v7705_v15, %v2931_v60  ;;  %v3016_v55 = vsel %vm3001_vm6, %v3013_v42, %v3015_v62 }
 0x41e   : > { %v2972_v11 = vpop.permute.xlu1 %2971  ;;  %v2970_v22 = vpop.permute.xlu0 %2969  ;;  %v2902_v49 = vadd.f32 %v7653_v63, %v2870_v5  ;;  %v2872_v63 = vadd.f32 %v9309_v18, %v2820_v23  ;;  %v2871_v43 = vadd.f32 %v9310_v27, %v2819_v2  ;;  %v3009_v50 = vsel %vm3001_vm6, %v3007_v3, %v9311_v28  ;;  %v9317_v23 = vld [vmem:[#allocation21_spill] sm:$0xff] }
 0x41f   : > { %v2994_v16 = vadd.f32 %v2972_v11, %v2962_v54  ;;  %v2993_v53 = vadd.f32 %v2970_v22, %v2961_v44  ;;  %v2933_v15 = vadd.f32 %v7683_v51, %v2901_v26  ;;  %v3020_v33 = vrot.slane %v9316_v56, 7  ;;  %v9320_v22 = vld [vmem:[#allocation203_spill] sm:$0xff] }
 0x420   : > { %3316 = vrot.lane.b32.xlu1 %v9306_v59, %s3850_s2  ;;  %3314 = vrot.lane.b32.xlu0 %v9307_v36, %s3850_s2  ;;  %v2934_v12 = vadd.f32 %v7681_v0, %v2902_v49  ;;  %v2904_v21 = vadd.f32 %v7659_v14, %v2872_v63  ;;  %v2903_v58 = vadd.f32 %v7661_v52, %v2871_v43  ;;  %v9315_v52 = vld [vmem:[#allocation20_spill] sm:$0xff]  ;;  %v3017_v40 = vrot.slane %v9317_v23, 7 }
 0x421   : > { %v3031_v31 = vadd.f32 %v7729_v7, %v2994_v16  ;;  %v3030_v29 = vadd.f32 %v7732_v57, %v2993_v53  ;;  %v2965_v0 = vadd.f32 %v7726_v30, %v2933_v15  ;;  %v3014_v14 = vsel %vm3001_vm6, %v3012_v35, %v3013_v42  ;;  %v9319_v30 = vld [vmem:[#allocation145_spill] sm:$0xff] }
 0x422   : > { %v2976_v1 = vpop.permute.xlu1 %2975  ;;  %v2974_v13 = vpop.permute.xlu0 %2973  ;;  %v2966_v3 = vadd.f32 %v7724_v37, %v2934_v12  ;;  %v3018_v19 = vrot.slane %v9315_v52, 7  ;;  %v2936_v5 = vadd.f32 %v7687_v8, %v2904_v21  ;;  %v2935_v47 = vadd.f32 %v9318_v32, %v2903_v58  ;;  %v9321_v21 = vld [vmem:[#allocation215_spill] sm:$0xff]  ;;  %v9322_v58 = vld [vmem:[#allocation214_spill] sm:$0xff]  ;;  %v9327_v32 = vld [vmem:[#allocation40_spill] sm:$0xff] }
 0x423   : > { %v2996_v20 = vadd.f32 %v2976_v1, %v2964_v34  ;;  %v2995_v10 = vadd.f32 %v2974_v13, %v2963_v6  ;;  %v9325_v52 = vld [vmem:[#allocation222_spill] sm:$0xff] }
 0x424   : > { %3320 = vrot.lane.b32.xlu1 %v9313_v17, %s3850_s2  ;;  %3318 = vrot.lane.b32.xlu0 %v9314_v4, %s3850_s2  ;;  %v2968_v42 = vadd.f32 %v7762_v61, %v2936_v5  ;;  %v2967_v9 = vadd.f32 %v7764_v39, %v2935_v47  ;;  %v3021_v8 = vsel %vm3001_vm6, %v3018_v19, %v3020_v33  ;;  %v9328_v47 = vld [vmem:[#allocation38_spill] sm:$0xff] }
 0x425   : > { %v3033_v51 = vadd.f32 %v7749_v25, %v2996_v20  ;;  %v3032_v46 = vadd.f32 %v3009_v50, %v2995_v10  ;;  %v3019_v2 = vsel %vm3001_vm6, %v3017_v40, %v3018_v19  ;;  %v9326_v19 = vld [vmem:[#allocation221_spill] sm:$0xff] }
 0x426   : > { %v2980_v54 = vpop.permute.xlu1 %2979  ;;  %v2978_v44 = vpop.permute.xlu0 %2977 }
 0x427   : > { %v2998_v37 = vadd.f32 %v2980_v54, %v2966_v3  ;;  %v2997_v11 = vadd.f32 %v2978_v44, %v2965_v0  ;;  %v9323_v0 = vld [vmem:[#allocation149_spill] sm:$0xff] }
 0x428   : > { %3324 = vrot.lane.b32.xlu1 %v9319_v30, %s3850_s2  ;;  %3322 = vrot.lane.b32.xlu0 %v9320_v22, %s3850_s2 }
 0x429   : > { %v3035_v60 = vadd.f32 %v3016_v55, %v2998_v37  ;;  %v3034_v16 = vadd.f32 %v3014_v14, %v2997_v11 }
 0x42a   : > { %v2984_v53 = vpop.permute.xlu1 %2983  ;;  %v2982_v41 = vpop.permute.xlu0 %2981 }
 0x42b   : > { %v3000_v49 = vadd.f32 %v2984_v53, %v2968_v42  ;;  %v2999_v26 = vadd.f32 %v2982_v41, %v2967_v9  ;;  %v9329_v42 = vld [vmem:[#allocation45_spill] sm:$0xff]  ;;  %v9330_v9 = vld [vmem:[#allocation220_spill] sm:$0xff] }
 0x42c   : > { %3344 = vrot.lane.b32.xlu1 %v7729_v7, %s3851_s3  ;;  %3342 = vrot.lane.b32.xlu0 %v7732_v57, %s3851_s3 }
 0x42d   : > { %v3037_v59 = vadd.f32 %v3021_v8, %v3000_v49  ;;  %v3036_v61 = vadd.f32 %v3019_v2, %v2999_v26 }
 0x42e   : > { %v3061_v36 = vpop.permute.xlu1 %3060  ;;  %v3059_v39 = vpop.permute.xlu0 %3058 }
 0x42f   : > { %v3083_v62 = vadd.f32 %v3061_v36, %v3031_v31  ;;  %v3082_v34 = vadd.f32 %v3059_v39, %v3030_v29 }
 0x430   : > { %3348 = vrot.lane.b32.xlu1 %v7749_v25, %s3851_s3  ;;  %3346 = vrot.lane.b32.xlu0 %v3009_v50, %s3851_s3 }
 0x432   : > { %v3065_v6 = vpop.permute.xlu1 %3064  ;;  %v3063_v18 = vpop.permute.xlu0 %3062 }
 0x433   : > { %v3085_v63 = vadd.f32 %v3065_v6, %v3033_v51  ;;  %v3084_v27 = vadd.f32 %v3063_v18, %v3032_v46  ;;  %v9324_v51 = vld [vmem:[#allocation162_spill] sm:$0xff] }
 0x434   : > { %3352 = vrot.lane.b32.xlu1 %v3016_v55, %s3851_s3  ;;  %3350 = vrot.lane.b32.xlu0 %v3014_v14, %s3851_s3 }
 0x436   : > { %v3069_v7 = vpop.permute.xlu1 %3068  ;;  %v3067_v57 = vpop.permute.xlu0 %3066 }
 0x437   : > { %v3087_v43 = vadd.f32 %v3069_v7, %v3035_v60  ;;  %v3086_v1 = vadd.f32 %v3067_v57, %v3034_v16 }
 0x438   : > { %3356 = vrot.lane.b32.xlu1 %v3021_v8, %s3851_s3  ;;  %3354 = vrot.lane.b32.xlu0 %v3019_v2, %s3851_s3  ;;  %v9331_v8 = vld [vmem:[#allocation168_spill] sm:$0xff]  ;;  %v9332_v2 = vld [vmem:[#allocation171_spill] sm:$0xff] }
 0x43a   : > { %v3073_v31 = vpop.permute.xlu1 %3072  ;;  %v3071_v25 = vpop.permute.xlu0 %3070 }
 0x43b   : > { %v3089_v29 = vadd.f32 %v3073_v31, %v3037_v59  ;;  %v3088_v13 = vadd.f32 %v3071_v25, %v3036_v61 }
 0x43c   : > { %3388 = vrot.lane.b32.xlu1 %v9293_v48, %s3844_s16  ;;  %3386 = vrot.lane.b32.xlu0 %v9290_v45, %s3844_s16 }
 0x43e   : > { %v3113_v28 = vpop.permute.xlu1 %3112  ;;  %v3111_v50 = vpop.permute.xlu0 %3110 }
 0x43f   : > { %v3135_v38 = vadd.f32 %v3113_v28, %v3083_v62  ;;  %v3134_v35 = vadd.f32 %v3111_v50, %v3082_v34  ;;  %v3744_v50 = vld [vmem:[%s3960_s29 + $0x10] sm:$0xff] }
 0x440   : > { %3392 = vrot.lane.b32.xlu1 %v9316_v56, %s3844_s16  ;;  %3390 = vrot.lane.b32.xlu0 %v9308_v24, %s3844_s16 }
 0x442   : > { %v3117_v12 = vpop.permute.xlu1 %3116  ;;  %v3115_v15 = vpop.permute.xlu0 %3114 }
 0x443   : > { %v3137_v20 = vadd.f32 %v3117_v12, %v3085_v63  ;;  %v3136_v10 = vadd.f32 %v3115_v15, %v3084_v27 }
 0x444   : > { %3408 = vrot.lane.b32.xlu1 %v9321_v21, %s3845_s24  ;;  %3406 = vrot.lane.b32.xlu0 %v9322_v58, %s3845_s24 }
 0x446   : > { %v3121_v17 = vpop.permute.xlu1 %3120  ;;  %v3119_v4 = vpop.permute.xlu0 %3118 }
 0x447   : > { %v3139_v55 = vadd.f32 %v3121_v17, %v3087_v43  ;;  %v3138_v3 = vadd.f32 %v3119_v4, %v3086_v1 }
 0x448   : > { %3412 = vrot.lane.b32.xlu1 %v9323_v0, %s3845_s24  ;;  %3410 = vrot.lane.b32.xlu0 %v9324_v51, %s3845_s24 }
 0x44a   : > { %v3125_v46 = vpop.permute.xlu1 %3124  ;;  %v3123_v54 = vpop.permute.xlu0 %3122 }
 0x44b   : > { %v3141_v44 = vadd.f32 %v3125_v46, %v3089_v29  ;;  %v3140_v14 = vadd.f32 %v3123_v54, %v3088_v13  ;;  %v3743_v13 = vld [vmem:[%s3960_s29 + $0x28] sm:$0xff] }
 0x44c   : > { %3428 = vrot.lane.b32.xlu1 %v9325_v52, %s3846_s25  ;;  %3426 = vrot.lane.b32.xlu0 %v9326_v19, %s3846_s25  ;;  %v7914_v28 = vmul.f32 1.7910637e-08, %v3743_v13 }
 0x44e   : > { %v3165_v33 = vpop.permute.xlu1 %3164  ;;  %v3163_v23 = vpop.permute.xlu0 %3162 }
 0x44f   : > { %v3187_v40 = vadd.f32 %v3165_v33, %v3135_v38  ;;  %v7861_v5 = vadd.f32 %v3163_v23, %v3134_v35  ;;  %v3374_v38 = vmul.f32 1.7910637e-08, %v3744_v50 }
 0x450   : > { %3432 = vrot.lane.b32.xlu1 %v9327_v32, %s3846_s25  ;;  %3430 = vrot.lane.b32.xlu0 %v9328_v47, %s3846_s25 }
 0x452   : > { %v3169_v37 = vpop.permute.xlu1 %3168  ;;  %v3167_v11 = vpop.permute.xlu0 %3166 }
 0x453   : > { %v3189_v30 = vadd.f32 %v3169_v37, %v3137_v20  ;;  %v7867_v22 = vadd.f32 %v3167_v11, %v3136_v10 }
 0x454   : > { %3448 = vrot.lane.b32.xlu1 %v9329_v42, %s3847_s27  ;;  %3446 = vrot.lane.b32.xlu0 %v9330_v9, %s3847_s27 }
 0x456   : > { %v3173_v60 = vpop.permute.xlu1 %3172  ;;  %v3171_v16 = vpop.permute.xlu0 %3170 }
 0x457   : > { %v3191_v53 = vadd.f32 %v3173_v60, %v3139_v55  ;;  %v7873_v41 = vadd.f32 %v3171_v16, %v3138_v3 }
 0x458   : > { %3452 = vrot.lane.b32.xlu1 %v9331_v8, %s3847_s27  ;;  %3450 = vrot.lane.b32.xlu0 %v9332_v2, %s3847_s27 }
 0x45a   : > { %v3177_v49 = vpop.permute.xlu1 %3176  ;;  %v3175_v26 = vpop.permute.xlu0 %3174 }
 0x45b   : > { %v3193_v59 = vadd.f32 %v3177_v49, %v3141_v44  ;;  %v7879_v61 = vadd.f32 %v3175_v26, %v3140_v14 }
 0x45c   : > { %3468 = vrot.lane.b32.xlu1 %v9325_v52, %s3848_s28  ;;  %3466 = vrot.lane.b32.xlu0 %v9326_v19, %s3848_s28 }
 0x45e   : > { %v3217_v36 = vpop.permute.xlu1 %3216  ;;  %v7885_v39 = vpop.permute.xlu0 %3214 }
 0x45f   : > { %v3239_v62 = vadd.f32 %v3217_v36, %v3187_v40  ;;  %v3238_v60 = vadd.f32 %v7885_v39, %v7861_v5  ;;  %v9333_v39 = vld [vmem:[#allocation46_spill] sm:$0xff] }
 0x460   : > { %3472 = vrot.lane.b32.xlu1 %v9327_v32, %s3848_s28  ;;  %3470 = vrot.lane.b32.xlu0 %v9328_v47, %s3848_s28 }
 0x462   : > { %v3221_v34 = vpop.permute.xlu1 %3220  ;;  %v7891_v6 = vpop.permute.xlu0 %3218 }
 0x463   : > { %v3241_v18 = vadd.f32 %v3221_v34, %v3189_v30  ;;  %v3240_v49 = vadd.f32 %v7891_v6, %v7867_v22  ;;  %v9334_v6 = vld [vmem:[#allocation55_spill] sm:$0xff] }
 0x464   : > { %3488 = vrot.lane.b32.xlu1 %v9321_v21, %s3849_s30  ;;  %3486 = vrot.lane.b32.xlu0 %v9322_v58, %s3849_s30 }
 0x466   : > { %v3225_v63 = vpop.permute.xlu1 %3224  ;;  %v7897_v27 = vpop.permute.xlu0 %3222 }
 0x467   : > { %v3243_v7 = vadd.f32 %v3225_v63, %v3191_v53 }
 0x468   : > { %3492 = vrot.lane.b32.xlu1 %v9323_v0, %s3849_s30  ;;  %3490 = vrot.lane.b32.xlu0 %v9324_v51, %s3849_s30 }
 0x46a   : > { %v3229_v57 = vpop.permute.xlu1 %3228  ;;  %v7903_v43 = vpop.permute.xlu0 %3226 }
 0x46b   : > { %v3245_v1 = vadd.f32 %v3229_v57, %v3193_v59 }
 0x46c   : > { %3508 = vrot.lane.b32.xlu1 %v9293_v48, %s3850_s2  ;;  %3506 = vrot.lane.b32.xlu0 %v9290_v45, %s3850_s2  ;;  %v3745_v45 = vld [vmem:[%s3960_s29 + $0x58] sm:$0xff] }
 0x46d   : > { %v7921_v15 = vmul.f32 1.7910637e-08, %v3745_v45 }
 0x46e   : > { %v3249_v31 = vpop.permute.xlu1 %3248  ;;  %v3247_v25 = vpop.permute.xlu0 %3246 }
 0x46f   : > { %v3271_v29 = vadd.f32 %v3249_v31, %v3239_v62  ;;  %v3270_v53 = vadd.f32 %v3247_v25, %v3238_v60 }
 0x470   : > { %3512 = vrot.lane.b32.xlu1 %v9316_v56, %s3850_s2  ;;  %3510 = vrot.lane.b32.xlu0 %v9308_v24, %s3850_s2  ;;  %v3746_v56 = vld [vmem:[%s3960_s29 + $0x40] sm:$0xff]  ;;  %s3781_s29 = scalar_lea.vmem %s3780_s26, 2048 }
 0x471   : > { %v7924_v20 = vmul.f32 1.7910637e-08, %v3746_v56  ;;  %v9336_v56 = vld [vmem:[#allocation47_spill] sm:$0xff]  ;;  %p3783_p7 = scmp.lt.s32.totalorder %s3781_s29, %s3775_s21 }
 0x472   : > { %v3253_v48 = vpop.permute.xlu1 %3252  ;;  %v3251_v35 = vpop.permute.xlu0 %3250 }
 0x473   : > { %v3273_v12 = vadd.f32 %v3253_v48, %v3241_v18  ;;  %v3272_v59 = vadd.f32 %v3251_v35, %v3240_v49  ;;  %v3242_v18 = vadd.f32 %v7897_v27, %v7873_v41  ;;  %v9335_v27 = vld [vmem:[#allocation68_spill] sm:$0xff]  ;;  %p3784_p8 = por %p3783_p7, %p3782_p5 }
 0x474   : > { %3532 = vrot.lane.b32.xlu1 %v7914_v28, %s3851_s3  ;;  %3530 = vrot.lane.b32.xlu0 %v3374_v38, %s3851_s3 }
 0x475   : > { %p3785_p10 = pnand %p3784_p8, %p3778_p4 }
 0x476   : > { %v3257_v24 = vpop.permute.xlu1 %3256  ;;  %v3255_v10 = vpop.permute.xlu0 %3254 }
 0x477   : > { %v3275_v21 = vadd.f32 %v3257_v24, %v3243_v7 }
 0x478   : > { %3536 = vrot.lane.b32.xlu1 %v7921_v15, %s3851_s3  ;;  %3534 = vrot.lane.b32.xlu0 %v7924_v20, %s3851_s3 }
 0x47a   : > { %v3261_v58 = vpop.permute.xlu1 %3260  ;;  %v3259_v17 = vpop.permute.xlu0 %3258 }
 0x47b   : > { %v3277_v4 = vadd.f32 %v3261_v58, %v3245_v1  ;;  %v3274_v1 = vadd.f32 %v3255_v10, %v3242_v18  ;;  %v9349_v18 = vld [vmem:[#allocation129_spill] sm:$0xff] }
 0x47e   : > { %v3281_v55 = vpop.permute.xlu1 %3280  ;;  %v3279_v3 = vpop.permute.xlu0 %3278 }
 0x47f   : > { %v3303_v0 = vadd.f32 %v3281_v55, %v3271_v29  ;;  %v3302_v26 = vadd.f32 %v3279_v3, %v3270_v53  ;;  %v9338_v3 = vld [vmem:[#allocation54_spill] sm:$0xff] }
 0x482   : > { %v3285_v51 = vpop.permute.xlu1 %3284  ;;  %v3283_v46 = vpop.permute.xlu0 %3282 }
 0x483   : > { %v3305_v54 = vadd.f32 %v3285_v51, %v3273_v12  ;;  %v3304_v63 = vadd.f32 %v3283_v46, %v3272_v59  ;;  %v3244_v12 = vadd.f32 %v7903_v43, %v7879_v61  ;;  %v9339_v61 = vld [vmem:[#allocation105_spill] sm:$0xff] }
 0x486   : > { %v3289_v44 = vpop.permute.xlu1 %3288  ;;  %v3287_v14 = vpop.permute.xlu0 %3286 }
 0x487   : > { %v3307_v52 = vadd.f32 %v3289_v44, %v3275_v21  ;;  %v3306_v22 = vadd.f32 %v3287_v14, %v3274_v1  ;;  %v9340_v14 = vld [vmem:[#allocation74_spill] sm:$0xff]  ;;  %v9351_v1 = vld [vmem:[#allocation96_spill] sm:$0xff] }
 0x48a   : > { %v3293_v19 = vpop.permute.xlu1 %3292  ;;  %v3291_v33 = vpop.permute.xlu0 %3290 }
 0x48b   : > { %v3309_v23 = vadd.f32 %v3293_v19, %v3277_v4  ;;  %v9337_v4 = vld [vmem:[#allocation88_spill] sm:$0xff]  ;;  %v9341_v19 = vld [vmem:[#allocation49_spill] sm:$0xff] }
 0x48e   : > { %v3313_v40 = vpop.permute.xlu1 %3312  ;;  %v3311_v32 = vpop.permute.xlu0 %3310 }
 0x48f   : > { %v3335_v47 = vadd.f32 %v3313_v40, %v3303_v0  ;;  %v3334_v36 = vadd.f32 %v3311_v32, %v3302_v26  ;;  %v9347_v26 = vld [vmem:[#allocation80_spill] sm:$0xff] }
 0x492   : > { %v3317_v37 = vpop.permute.xlu1 %3316  ;;  %v3315_v11 = vpop.permute.xlu0 %3314 }
 0x493   : > { %v3337_v30 = vadd.f32 %v3317_v37, %v3305_v54  ;;  %v3336_v5 = vadd.f32 %v3315_v11, %v3304_v63  ;;  %v9342_v37 = vld [vmem:[#allocation121_spill] sm:$0xff] }
 0x496   : > { %v3321_v42 = vpop.permute.xlu1 %3320  ;;  %v3319_v9 = vpop.permute.xlu0 %3318 }
 0x497   : > { %v3339_v16 = vadd.f32 %v3321_v42, %v3307_v52  ;;  %v3338_v41 = vadd.f32 %v3319_v9, %v3306_v22  ;;  %v9344_v9 = vld [vmem:[#allocation60_spill] sm:$0xff]  ;;  %v9354_v22 = vld [vmem:[#allocation126_spill] sm:$0xff] }
 0x49a   : > { %v3325_v8 = vpop.permute.xlu1 %3324  ;;  %v3323_v2 = vpop.permute.xlu0 %3322 }
 0x49b   : > { %v3341_v44 = vadd.f32 %v3325_v8, %v3309_v23  ;;  %v9346_v8 = vld [vmem:[#allocation109_spill] sm:$0xff] }
 0x49e   : > { %v3345_v62 = vpop.permute.xlu1 %3344  ;;  %v3343_v34 = vpop.permute.xlu0 %3342 }
 0x49f   : > { %v3367_v7 = vadd.f32 %v3345_v62, %v3335_v47  ;;  %v3366_v57 = vadd.f32 %v3343_v34, %v3334_v36 }
 0x4a1   : > { %v3378_v31 = vadd.f32 %v3366_v57, %v9333_v39  ;;  %v7937_v25 = vadd.f32 %v3374_v38, %v3367_v7  ;;  %v3276_v38 = vadd.f32 %v3259_v17, %v3244_v12  ;;  %v9350_v7 = vld [vmem:[#allocation122_spill] sm:$0xff]  ;;  %v9352_v39 = vld [vmem:[#allocation64_spill] sm:$0xff] }
 0x4a2   : > { %v3349_v29 = vpop.permute.xlu1 %3348  ;;  %v3347_v13 = vpop.permute.xlu0 %3346 }
 0x4a3   : > { %v3398_v50 = vadd.f32 %v3378_v31, %v9334_v6  ;;  %v3369_v48 = vadd.f32 %v3349_v29, %v3337_v30  ;;  %v3368_v35 = vadd.f32 %v3347_v13, %v3336_v5  ;;  %v3308_v54 = vadd.f32 %v3291_v33, %v3276_v38  ;;  %v9343_v30 = vld [vmem:[#allocation92_spill] sm:$0xff]  ;;  %v9353_v29 = vld [vmem:[#allocation133_spill] sm:$0xff] }
 0x4a4   : > { %v9359_v38 = vld [vmem:[#allocation100_spill] sm:$0xff] }
 0x4a5   : > { %v3418_v45 = vadd.f32 %v3398_v50, %v9335_v27  ;;  %v3380_v24 = vadd.f32 %v3368_v35, %v9336_v56  ;;  %v7945_v10 = vadd.f32 %v7914_v28, %v3369_v48  ;;  %v3340_v17 = vadd.f32 %v3323_v2, %v3308_v54  ;;  %v9348_v2 = vld [vmem:[#allocation56_spill] sm:$0xff]  ;;  %v9355_v50 = vld [vmem:[#allocation113_spill] sm:$0xff]  ;;  %v9357_v27 = vld [vmem:[#allocation130_spill] sm:$0xff] }
 0x4a6   : > { %v3353_v21 = vpop.permute.xlu1 %3352  ;;  %v3351_v58 = vpop.permute.xlu0 %3350  ;;  %v9356_v48 = vld [vmem:[#allocation84_spill] sm:$0xff]  ;;  %v9358_v56 = vld [vmem:[#allocation123_spill] sm:$0xff] }
 0x4a7   : > { %v3438_v55 = vadd.f32 %v3418_v45, %v9337_v4  ;;  %v3400_v0 = vadd.f32 %v3380_v24, %v9338_v3  ;;  %v3371_v51 = vadd.f32 %v3353_v21, %v3339_v16  ;;  %v3370_v46 = vadd.f32 %v3351_v58, %v3338_v41  ;;  %v9345_v16 = vld [vmem:[#allocation125_spill] sm:$0xff] }
 0x4a8   : > { %v9360_v58 = vld [vmem:[#allocation101_spill] sm:$0xff] }
 0x4a9   : > { %v3458_v43 = vadd.f32 %v3438_v55, %v9339_v61  ;;  %v3420_v52 = vadd.f32 %v3400_v0, %v9340_v14  ;;  %v3382_v40 = vadd.f32 %v3370_v46, %v9341_v19  ;;  %v7953_v28 = vadd.f32 %v7924_v20, %v3371_v51  ;;  %v9361_v55 = vld [vmem:[#allocation127_spill] sm:$0xff]  ;;  %v9362_v0 = vld [vmem:[#allocation117_spill] sm:$0xff] }
 0x4aa   : > { %v3357_v32 = vpop.permute.xlu1 %3356  ;;  %v3355_v47 = vpop.permute.xlu0 %3354 }
 0x4ab   : > { %v3478_v11 = vadd.f32 %v3458_v43, %v9342_v37  ;;  %v3440_v42 = vadd.f32 %v3420_v52, %v9343_v30  ;;  %v3402_v33 = vadd.f32 %v3382_v40, %v9344_v9  ;;  %v3373_v23 = vadd.f32 %v3357_v32, %v3341_v44  ;;  %v9363_v44 = vld [vmem:[#allocation131_spill] sm:$0xff]  ;;  %v9364_v43 = vld [vmem:[#allocation124_spill] sm:$0xff]  ;;  %v9365_v52 = vld [vmem:[#allocation69_spill] sm:$0xff] }
 0x4ac   : > { %v3372_v60 = vadd.f32 %v3355_v47, %v3340_v17  ;;  %v9366_v40 = vld [vmem:[#allocation128_spill] sm:$0xff]  ;;  %v9368_v30 = vld [vmem:[#allocation77_spill] sm:$0xff] }
 0x4ad   : > { %v3498_v53 = vadd.f32 %v3478_v11, %v9345_v16  ;;  %v3460_v49 = vadd.f32 %v3440_v42, %v9346_v8  ;;  %v3422_v59 = vadd.f32 %v3402_v33, %v9347_v26  ;;  %v3385_v20 = vadd.f32 %v7921_v15, %v3373_v23  ;;  %v9367_v37 = vld [vmem:[#allocation132_spill] sm:$0xff] }
 0x4ae   : > { %v3384_v36 = vadd.f32 %v3372_v60, %v9348_v2  ;;  %v3389_v62 = vpop.permute.xlu1 %3388  ;;  %v3387_v34 = vpop.permute.xlu0 %3386 }
 0x4af   : > { %v3518_v63 = vadd.f32 %v3498_v53, %v9349_v18  ;;  %v3480_v57 = vadd.f32 %v3460_v49, %v9350_v7  ;;  %v3442_v5 = vadd.f32 %v3422_v59, %v9351_v1  ;;  %v3401_v7 = vadd.f32 %v3389_v62, %v7945_v10 }
 0x4b0   : > { %v3404_v31 = vadd.f32 %v3384_v36, %v9352_v39 }
 0x4b1   : > { %v3542_v13 = vadd.f32 %v3518_v63, %v9353_v29  ;;  %v3500_v6 = vadd.f32 %v3480_v57, %v9354_v22  ;;  %v3462_v15 = vadd.f32 %v3442_v5, %v9355_v50  ;;  %v3399_v57 = vadd.f32 %v3387_v34, %v7937_v25 }
 0x4b2   : > { %v3424_v35 = vadd.f32 %v3404_v31, %v9356_v48  ;;  %v3393_v12 = vpop.permute.xlu1 %3392  ;;  %v3391_v41 = vpop.permute.xlu0 %3390 }
 0x4b3   : > { %v3520_v45 = vadd.f32 %v3500_v6, %v9357_v27  ;;  %v3482_v24 = vadd.f32 %v3462_v15, %v9358_v56  ;;  %3551 = vst.msk [vmem:[%s7974_s5] sm:$0xff] %vm3550_vm7, %v3542_v13  ;;  %v3405_v29 = vadd.f32 %v3393_v12, %v3385_v20  ;;  %v3403_v13 = vadd.f32 %v3391_v41, %v7953_v28 }
 0x4b4   : > { %v3444_v21 = vadd.f32 %v3424_v35, %v9359_v38 }
 0x4b5   : > { %v3544_v4 = vadd.f32 %v3520_v45, %v9360_v58  ;;  %v3502_v3 = vadd.f32 %v3482_v24, %v9361_v55 }
 0x4b6   : > { %v3464_v51 = vadd.f32 %v3444_v21, %v9362_v0  ;;  %v3409_v46 = vpop.permute.xlu1 %3408  ;;  %v3407_v54 = vpop.permute.xlu0 %3406 }
 0x4b7   : > { %v3522_v61 = vadd.f32 %v3502_v3, %v9363_v44  ;;  %3553 = vst.msk [vmem:[%s7974_s5 + $0x10] sm:$0xff] %vm3550_vm7, %v3544_v4  ;;  %v3421_v39 = vadd.f32 %v3409_v46, %v3401_v7  ;;  %v3419_v31 = vadd.f32 %v3407_v54, %v3399_v57 }
 0x4b8   : > { %v3484_v14 = vadd.f32 %v3464_v51, %v9364_v43 }
 0x4b9   : > { %v3546_v19 = vadd.f32 %v3522_v61, %v9365_v52 }
 0x4ba   : > { %v3504_v17 = vadd.f32 %v3484_v14, %v9366_v40  ;;  %v3413_v32 = vpop.permute.xlu1 %3412  ;;  %v3411_v47 = vpop.permute.xlu0 %3410 }
 0x4bb   : > { %3555 = vst.msk [vmem:[%s7974_s5 + $0x20] sm:$0xff] %vm3550_vm7, %v3546_v19  ;;  %v3425_v48 = vadd.f32 %v3413_v32, %v3405_v29  ;;  %v3423_v35 = vadd.f32 %v3411_v47, %v3403_v13 }
 0x4bc   : > { %v3524_v11 = vadd.f32 %v3504_v17, %v9367_v37 }
 0x4be   : > { %v3548_v42 = vadd.f32 %v3524_v11, %v9368_v30  ;;  %v3429_v9 = vpop.permute.xlu1 %3428  ;;  %v3427_v33 = vpop.permute.xlu0 %3426 }
 0x4bf   : > { %v3441_v22 = vadd.f32 %v3429_v9, %v3421_v39  ;;  %v3439_v6 = vadd.f32 %v3427_v33, %v3419_v31 }
 0x4c0   : > { %3557 = vst.msk [vmem:[%s7974_s5 + $0x30] sm:$0xff] %vm3550_vm7, %v3548_v42 }
 0x4c2   : > { %v3433_v23 = vpop.permute.xlu1 %3432  ;;  %v3431_v60 = vpop.permute.xlu0 %3430 }
 0x4c3   : > { %v3445_v56 = vadd.f32 %v3433_v23, %v3425_v48  ;;  %v3443_v24 = vadd.f32 %v3431_v60, %v3423_v35 }
 0x4c6   : > { %v3449_v16 = vpop.permute.xlu1 %3448  ;;  %v3447_v53 = vpop.permute.xlu0 %3446 }
 0x4c7   : > { %v3461_v27 = vadd.f32 %v3449_v16, %v3441_v22  ;;  %v3459_v45 = vadd.f32 %v3447_v53, %v3439_v6 }
 0x4ca   : > { %v3453_v8 = vpop.permute.xlu1 %3452  ;;  %v3451_v49 = vpop.permute.xlu0 %3450 }
 0x4cb   : > { %v3465_v38 = vadd.f32 %v3453_v8, %v3445_v56  ;;  %v3463_v20 = vadd.f32 %v3451_v49, %v3443_v24 }
 0x4ce   : > { %v3469_v26 = vpop.permute.xlu1 %3468  ;;  %v3467_v59 = vpop.permute.xlu0 %3466 }
 0x4cf   : > { %v3481_v10 = vadd.f32 %v3469_v26, %v3461_v27  ;;  %v3479_v62 = vadd.f32 %v3467_v59, %v3459_v45 }
 0x4d2   : > { %v3473_v2 = vpop.permute.xlu1 %3472  ;;  %v3471_v36 = vpop.permute.xlu0 %3470 }
 0x4d3   : > { %v3485_v41 = vadd.f32 %v3473_v2, %v3465_v38  ;;  %v3483_v21 = vadd.f32 %v3471_v36, %v3463_v20 }
 0x4d6   : > { %v3489_v18 = vpop.permute.xlu1 %3488  ;;  %v3487_v63 = vpop.permute.xlu0 %3486 }
 0x4d7   : > { %v3501_v12 = vadd.f32 %v3489_v18, %v3481_v10  ;;  %v3499_v28 = vadd.f32 %v3487_v63, %v3479_v62 }
 0x4da   : > { %v3493_v1 = vpop.permute.xlu1 %3492  ;;  %v3491_v5 = vpop.permute.xlu0 %3490 }
 0x4db   : > { %v3505_v0 = vadd.f32 %v3493_v1, %v3485_v41  ;;  %v3503_v51 = vadd.f32 %v3491_v5, %v3483_v21 }
 0x4de   : > { %v3509_v50 = vpop.permute.xlu1 %3508  ;;  %v3507_v15 = vpop.permute.xlu0 %3506 }
 0x4df   : > { %v3521_v58 = vadd.f32 %v3509_v50, %v3501_v12  ;;  %v3519_v4 = vadd.f32 %v3507_v15, %v3499_v28 }
 0x4e2   : > { %v3513_v25 = vpop.permute.xlu1 %3512  ;;  %v3511_v34 = vpop.permute.xlu0 %3510 }
 0x4e3   : > { %v3525_v44 = vadd.f32 %v3513_v25, %v3505_v0  ;;  %v3523_v61 = vadd.f32 %v3511_v34, %v3503_v51 }
 0x4e6   : > { %v3533_v55 = vpop.permute.xlu1 %3532  ;;  %v3531_v3 = vpop.permute.xlu0 %3530 }
 0x4e7   : > { %v3545_v46 = vadd.f32 %v3533_v55, %v3521_v58  ;;  %v3543_v54 = vadd.f32 %v3531_v3, %v3519_v4 }
 0x4e9   : > { %3554 = vst.msk [vmem:[%s7974_s5 + $0x18] sm:$0xff] %vm3550_vm7, %v3545_v46  ;;  %3552 = vst.msk [vmem:[%s7974_s5 + $0x8] sm:$0xff] %vm3550_vm7, %v3543_v54 }
 0x4ea   : > { %v3537_v43 = vpop.permute.xlu1 %3536  ;;  %v3535_v14 = vpop.permute.xlu0 %3534 }
 0x4eb   : > { %v3549_v52 = vadd.f32 %v3537_v43, %v3525_v44  ;;  %v3547_v19 = vadd.f32 %v3535_v14, %v3523_v61 }
 0x4ed   : > { %3558 = vst.msk [vmem:[%s7974_s5 + $0x38] sm:$0xff] %vm3550_vm7, %v3549_v52  ;;  %3556 = vst.msk [vmem:[%s7974_s5 + $0x28] sm:$0xff] %vm3550_vm7, %v3547_v19 }
 0x4ee   : > { %3788 = shalt.err (!%p3785_p10)
}
 0x4ef   : > { %s3789_s16 = scalar_lea.hbm %s8006_s20, 1024  ;;  %s3793_s27 = scalar_lea.hbm %s8056_s1, 2048 }
 0x4f0   : > { %p3790_p0 = scmp.ne.s32.totalorder %s8006_s20, %s3789_s16  ;;  %p3794_p1 = scmp.lt.s32.totalorder %s8006_s20, %s8056_s1 }
 0x4f1   : > { %p3795_p3 = scmp.lt.s32.totalorder %s3793_s27, %s3789_s16 }
 0x4f2   : > { %p3791_p2 = pnand %p3790_p0, %p9369_p12 }
 0x4f3   : > { %p3796_p6 = por %p3795_p3, %p3794_p1 }
 0x4f4   : > { %p3792_p9 = pneg %p3791_p2 }
 0x4f6   : > { %p3797_p11 = pnand %p3796_p6, %p3792_p9 }
 0x4f8   : > { %3800 = shalt.err (!%p3797_p11)
}
 0x4f9   : > { %s3853_s2 = smov 128   ;;  %s3854_s3 = smov 8  }
 0x4fa   : > { %3663 = dma.vmem_to_hbm [thread:$0]  (%p9369_p12), %s8008_s13, 1024, %s8006_s20, %s3560_s10, %s3853_s2, %s3853_s2, %s3854_s3  }
 0x4fb PF: > { %s3588_s4 = sand.u32 1, %s3827_s6   ;;  %p9370_p13 = scmp.ne.s32.totalorder %s8461_s18, 0 }
 0x4fc   : > { %p9371_p4 = scmp.ge.s32.totalorder %s3839_s9, 2  ;;  %s3589_s5 = scalar_lea.sflag [#allocation4], %s3588_s4 }
 0x4fe   : > { %p3670_p5 = pnand %p9371_p4, %p9370_p13 }
 0x500   : > { %p3671_p7 = pneg %p3670_p5 }
 0x502   : > { %3822 = dma.done.wait (%p3671_p7), %s3589_s5, 1024  }
 0x503   : > { %3824 = vsyncadd (%p3671_p7), %s3589_s5, 4294966272  ;;  %p14_p8 = scmp.ge.s32.totalorder %s3890_s12, 4   ;;  %s9372_s6 = smov %s3831_s7 }
 0x504   : > { %s9373_s7 = smov %s3835_s8  ;;  %s9374_s8 = smov %s3902_s15 }
 0x505   : > { %s9375_s9 = smov %s3890_s12  ;;  %16 = sbr.rel (!%p14_p8) target bundleno = 5 (0x5), region = 69 }
 0x50a   :  { %3594 = vsyncpa [#allocation3], 1 }
 0x50b   :  { %3596 = vsyncpa [#allocation3 + $0x1], 1 }
 0x50c   :  { %3597 = vsyncpa [#allocation4], 1 }
 0x50d   :  { %3599 = vsyncpa [#allocation4 + $0x1], 1 }

</bundles_post_ra>
